<compile_context>
chip_gen: v7x
topology: tpu7x:2x2x1
jax: 0.10.0
libtpu: 0.0.40
codegen_flags: <defaults>
</compile_context>

<pallas_src>
import functools

import jax
import jax.numpy as jnp
import numpy as np
from jax import lax
from jax.experimental import pallas as pl
from jax.experimental.pallas import tpu as pltpu


def _cbam_kernel(x_ref, wfc_ref, wsp_ref, o_ref, *, H, W, KS, PAD):
    """One batch block: x_ref (Nb, C, H*W) -> o_ref (Nb, H*W)."""
    Nb, C, L = x_ref.shape
    x = x_ref[...].astype(jnp.float32)                    # f32 math even for bf16 input

    # ---------------- Channel attention ----------------
    # s = sigmoid(W @ global_avg_pool(x) + b): one batched matmul for the whole
    # block; the bias is the last row of the same (C+1, C) VMEM operand.
    m = jnp.mean(x, axis=-1)                              # (Nb, C) global avg pool
    logits = jnp.dot(m, wfc_ref[:C, :],
                     preferred_element_type=jnp.float32) + wfc_ref[C:, :]
    s = jax.nn.sigmoid(logits)                            # (Nb, C)

    # mean_c / max_c of (x * s) without materialising the full `ca` tensor.
    # (C is small and static here; for large C this would be blocked instead.)
    avg_c = jnp.zeros((Nb, L), jnp.float32)
    max_c = jnp.full((Nb, L), -jnp.inf, jnp.float32)
    for c in range(C):
        xc = x[:, c, :] * s[:, c:c + 1]                   # (Nb, L)
        avg_c = avg_c + xc
        max_c = jnp.maximum(max_c, xc)
    avg_c = avg_c * (1.0 / C)

    # ---------------- Spatial attention ----------------
    # KSxKS "same" conv over [avg_c, max_c] done directly in the flattened
    # lane-dense layout: a tap offset (dh, dw) is ONE lane roll of the
    # concatenated [avg | max] buffer by dh*W + dw; taps that fall outside the
    # image (the zero padding of the reference conv) are killed by folding a
    # static boundary mask into the tap weight.
    maps = jnp.concatenate([avg_c, max_c], axis=1)        # (Nb, 2*L)
    L2 = 2 * L

    lane = lax.broadcasted_iota(jnp.int32, (1, L), 1)     # 0 .. H*W-1
    row = (lane.astype(jnp.float32) / float(W)).astype(jnp.int32)   # lane // W
    col = lane - row * W                                             # lane %  W
    row_ok = [(row >= -d) & (row < H - d) for d in range(-PAD, PAD + 1)]
    col_ok = [(col >= -d) & (col < W - d) for d in range(-PAD, PAD + 1)]

    acc = jnp.zeros((Nb, L), jnp.float32)
    for kh in range(KS):
        dh = kh - PAD
        for kw in range(KS):
            dw = kw - PAD
            shift = dh * W + dw                           # tap offset, flattened
            r = maps if shift == 0 else pltpu.roll(maps, (-shift) % L2, axis=1)
            valid = row_ok[kh] & col_ok[kw]               # (1, L) boundary mask
            w_avg = jnp.where(valid, wsp_ref[kh * KS + kw], 0.0)
            w_max = jnp.where(valid, wsp_ref[KS * KS + kh * KS + kw], 0.0)
            acc = acc + r[:, :L] * w_avg + r[:, L:] * w_max

    o_ref[...] = jax.nn.sigmoid(acc).astype(o_ref.dtype)  # lane-dense (Nb, H*W) store


def _round_up(v, m):
    return (v + m - 1) // m * m


def cbam_pallas(x, w_fc, b_fc, w_sp, *, block_n=8):
    """CBAM forward.

    x    : (N, C, H, W) float32 or bfloat16
    w_fc : (C, C) or (C, C, 1, 1)      ChannelAttention.fc (Conv2d C->C, 1x1) weight
    b_fc : (C,)                        ChannelAttention.fc bias
    w_sp : (2, KS, KS) or (1,2,KS,KS)  SpatialAttention.conv1 weight (no bias)
    returns (N, 1, H, W) in x.dtype (the spatial-attention map, as PyTorch CBAM does).
    """
    N, C, H, W = x.shape
    KS = int(w_sp.shape[-1])
    PAD = KS // 2
    L = H * W

    # Batch blocking: several images per grid step to amortise per-step overhead.
    # (For production shapes on v7x, keep block size within the 64 MiB VMEM and
    #  set vmem_limit_bytes explicitly; at these sizes the defaults are ample.)
    nb = N if N <= block_n else _round_up(block_n, 8)
    n_pad = _round_up(N, nb)

    x2 = x.reshape(N, C, L)                               # lane-dense spatial axis
    if n_pad != N:
        x2 = jnp.pad(x2, ((0, n_pad - N), (0, 0), (0, 0)))

    # Fold the 1x1-conv bias into the same VMEM operand as the transposed weight.
    wfc_aug = jnp.concatenate(
        [jnp.asarray(w_fc, jnp.float32).reshape(C, C).T,
         jnp.asarray(b_fc, jnp.float32).reshape(1, C)], axis=0)      # (C+1, C)
    wsp_flat = jnp.asarray(w_sp, jnp.float32).reshape(-1)            # (2*KS*KS,) -> SMEM

    kernel = functools.partial(_cbam_kernel, H=H, W=W, KS=KS, PAD=PAD)

    out2 = pl.pallas_call(
        kernel,
        out_shape=jax.ShapeDtypeStruct((n_pad, L), x.dtype),
        grid=(n_pad // nb,),
        in_specs=[
            pl.BlockSpec((nb, C, L), lambda n: (n, 0, 0)),
            pl.BlockSpec((C + 1, C), lambda n: (0, 0)),
            pl.BlockSpec(memory_space=pltpu.MemorySpace.SMEM),
        ],
        out_specs=pl.BlockSpec((nb, L), lambda n: (n, 0)),
        compiler_params=pltpu.CompilerParams(
            dimension_semantics=("parallel",)),
    )(x2, wfc_aug, wsp_flat)

    return out2[:N].reshape(N, 1, H, W)


def cbam_ref(x, w_fc, b_fc, w_sp):
    """Pure-JAX reference matching the PyTorch forward."""
    m = jnp.mean(x, axis=(2, 3))                                # (N, C) global avg pool
    s = jax.nn.sigmoid(m @ w_fc.T + b_fc)                       # 1x1 conv w/ bias
    ca = x * s[:, :, None, None]                                # channel attention
    avg_c = jnp.mean(ca, axis=1, keepdims=True)                 # (N, 1, H, W)
    max_c = jnp.max(ca, axis=1, keepdims=True)                  # (N, 1, H, W)
    stacked = jnp.concatenate([avg_c, max_c], axis=1)           # (N, 2, H, W)
    out = lax.conv_general_dilated(
        stacked, w_sp[None],                                    # (1, 2, 7, 7) OIHW
        window_strides=(1, 1), padding=[(3, 3), (3, 3)],
        dimension_numbers=('NCHW', 'OIHW', 'NCHW'))
    return jax.nn.sigmoid(out)


if __name__ == "__main__":
    key = jax.random.PRNGKey(0)
    k1, k2, k3, k4 = jax.random.split(key, 4)

    N, C, H, W = 2, 4, 16, 16
    x = jax.random.normal(k1, (N, C, H, W), jnp.float32)
    # Deterministic synthetic parameters (shapes from the PyTorch __init__):
    w_fc = 0.5 * jax.random.normal(k2, (C, C), jnp.float32)     # Conv2d(C, C, 1) weight
    b_fc = 0.1 * jax.random.normal(k3, (C,), jnp.float32)       # Conv2d(C, C, 1) bias
    w_sp = 0.2 * jax.random.normal(k4, (2, 7, 7), jnp.float32)  # Conv2d(2, 1, 7) weight

    # f32 path: tight check against the reference.
    out = jax.block_until_ready(cbam_pallas(x, w_fc, b_fc, w_sp))
    ref = cbam_ref(x, w_fc, b_fc, w_sp)
    assert out.shape == (N, 1, H, W)
    np.testing.assert_allclose(np.asarray(out), np.asarray(ref),
                               rtol=1e-5, atol=1e-5)

    # bf16-input path (v6e / v7x: halves HBM->VMEM traffic; math stays f32 in-kernel).
    out_bf16 = jax.block_until_ready(
        cbam_pallas(x.astype(jnp.bfloat16), w_fc, b_fc, w_sp))
    np.testing.assert_allclose(np.asarray(out_bf16.astype(jnp.float32)),
                               np.asarray(ref), rtol=0, atol=5e-2)

    print("KERNEL_OK")
</pallas_src>

<mosaic_0001>
module attributes {stable_mosaic.version = 11 : i64} {
  func.func @_cbam_kernel(%arg0: i32, %arg1: memref<2x4x256xf32, #tpu.memory_space<vmem>>, %arg2: memref<5x4xf32, #tpu.memory_space<vmem>>, %arg3: memref<98xf32, #tpu.memory_space<smem>>, %arg4: memref<2x256xf32, #tpu.memory_space<vmem>>) attributes {dimension_semantics = [#tpu.dimension_semantics<parallel>], iteration_bounds = array<i64: 1>, scalar_prefetch = 0 : i64, scratch_operands = 0 : i64, tpu.core_type = #tpu.core_type<tc>, window_params = [{transform_indices = @transform_0, window_bounds = array<i64: 2, 4, 256>}, {pipeline_mode = #tpu.pipeline_mode<synchronous>, transform_indices = @transform_1, window_bounds = array<i64: 5, 4>}, {transform_indices = @transform_2, window_bounds = array<i64: 98>}, {transform_indices = @transform_3, window_bounds = array<i64: 2, 256>}]} {
    %c0 = arith.constant 0 : index
    %c0_0 = arith.constant 0 : index
    %c0_1 = arith.constant 0 : index
    %0 = vector.load %arg1[%c0, %c0_0, %c0_1] : memref<2x4x256xf32, #tpu.memory_space<vmem>>, vector<2x4x256xf32>
    %cst = arith.constant dense<0.000000e+00> : vector<2x4xf32>
    %1 = vector.multi_reduction <add>, %0, %cst [2] : vector<2x4x256xf32> to vector<2x4xf32>
    %cst_2 = arith.constant 2.560000e+02 : f32
    %2 = vector.broadcast %cst_2 : f32 to vector<2x4xf32>
    %3 = arith.divf %1, %2 : vector<2x4xf32>
    %c0_3 = arith.constant 0 : index
    %c0_4 = arith.constant 0 : index
    %4 = vector.load %arg2[%c0_3, %c0_4] : memref<5x4xf32, #tpu.memory_space<vmem>>, vector<4x4xf32>
    %cst_5 = arith.constant dense<0.000000e+00> : vector<2x4xf32>
    %5 = tpu.matmul %3, %4, %cst_5 {dimension_numbers = #tpu.dot_dimension_numbers<[1], [0], [0], [1], [0, 0, 1, 1], [], []>} : vector<2x4xf32>, vector<4x4xf32>, vector<2x4xf32> -> vector<2x4xf32>
    %c4 = arith.constant 4 : index
    %c0_6 = arith.constant 0 : index
    %6 = vector.load %arg2[%c4, %c0_6] : memref<5x4xf32, #tpu.memory_space<vmem>>, vector<1x4xf32>
    %7 = vector.broadcast %6 : vector<1x4xf32> to vector<2x4xf32>
    %8 = arith.addf %5, %7 : vector<2x4xf32>
    %9 = arith.negf %8 : vector<2x4xf32>
    %10 = math.exp %9 : vector<2x4xf32>
    %cst_7 = arith.constant 1.000000e+00 : f32
    %11 = vector.broadcast %cst_7 : f32 to vector<2x4xf32>
    %12 = arith.addf %11, %10 : vector<2x4xf32>
    %13 = arith.divf %11, %12 : vector<2x4xf32>
    %cst_8 = arith.constant 0.000000e+00 : f32
    %14 = vector.broadcast %cst_8 : f32 to vector<2x256xf32>
    %cst_9 = arith.constant 0xFF800000 : f32
    %15 = vector.broadcast %cst_9 : f32 to vector<2x256xf32>
    %16 = vector.extract_strided_slice %0 {offsets = [0, 0, 0], sizes = [2, 1, 256], strides = [1, 1, 1]} : vector<2x4x256xf32> to vector<2x1x256xf32>
    %17 = vector.shape_cast %16 : vector<2x1x256xf32> to vector<2x256xf32>
    %18 = vector.extract_strided_slice %13 {offsets = [0, 0], sizes = [2, 1], strides = [1, 1]} : vector<2x4xf32> to vector<2x1xf32>
    %19 = vector.broadcast %18 : vector<2x1xf32> to vector<2x256xf32>
    %20 = arith.mulf %17, %19 : vector<2x256xf32>
    %21 = arith.addf %14, %20 : vector<2x256xf32>
    %22 = arith.maximumf %15, %20 : vector<2x256xf32>
    %23 = vector.extract_strided_slice %0 {offsets = [0, 1, 0], sizes = [2, 1, 256], strides = [1, 1, 1]} : vector<2x4x256xf32> to vector<2x1x256xf32>
    %24 = vector.shape_cast %23 : vector<2x1x256xf32> to vector<2x256xf32>
    %25 = vector.extract_strided_slice %13 {offsets = [0, 1], sizes = [2, 1], strides = [1, 1]} : vector<2x4xf32> to vector<2x1xf32>
    %26 = vector.broadcast %25 : vector<2x1xf32> to vector<2x256xf32>
    %27 = arith.mulf %24, %26 : vector<2x256xf32>
    %28 = arith.addf %21, %27 : vector<2x256xf32>
    %29 = arith.maximumf %22, %27 : vector<2x256xf32>
    %30 = vector.extract_strided_slice %0 {offsets = [0, 2, 0], sizes = [2, 1, 256], strides = [1, 1, 1]} : vector<2x4x256xf32> to vector<2x1x256xf32>
    %31 = vector.shape_cast %30 : vector<2x1x256xf32> to vector<2x256xf32>
    %32 = vector.extract_strided_slice %13 {offsets = [0, 2], sizes = [2, 1], strides = [1, 1]} : vector<2x4xf32> to vector<2x1xf32>
    %33 = vector.broadcast %32 : vector<2x1xf32> to vector<2x256xf32>
    %34 = arith.mulf %31, %33 : vector<2x256xf32>
    %35 = arith.addf %28, %34 : vector<2x256xf32>
    %36 = arith.maximumf %29, %34 : vector<2x256xf32>
    %37 = vector.extract_strided_slice %0 {offsets = [0, 3, 0], sizes = [2, 1, 256], strides = [1, 1, 1]} : vector<2x4x256xf32> to vector<2x1x256xf32>
    %38 = vector.shape_cast %37 : vector<2x1x256xf32> to vector<2x256xf32>
    %39 = vector.extract_strided_slice %13 {offsets = [0, 3], sizes = [2, 1], strides = [1, 1]} : vector<2x4xf32> to vector<2x1xf32>
    %40 = vector.broadcast %39 : vector<2x1xf32> to vector<2x256xf32>
    %41 = arith.mulf %38, %40 : vector<2x256xf32>
    %42 = arith.addf %35, %41 : vector<2x256xf32>
    %43 = arith.maximumf %36, %41 : vector<2x256xf32>
    %cst_10 = arith.constant 2.500000e-01 : f32
    %44 = vector.broadcast %cst_10 : f32 to vector<2x256xf32>
    %45 = arith.mulf %42, %44 : vector<2x256xf32>
    %46 = tpu.concatenate %45, %43 in 1 : vector<2x256xf32>, vector<2x256xf32> -> vector<2x512xf32>
    %47 = tpu.iota {dimensions = array<i32: 1>} : vector<1x256xi32>
    %48 = arith.sitofp %47 : vector<1x256xi32> to vector<1x256xf32>
    %cst_11 = arith.constant 1.600000e+01 : f32
    %49 = vector.broadcast %cst_11 : f32 to vector<1x256xf32>
    %50 = arith.divf %48, %49 : vector<1x256xf32>
    %51 = arith.fptosi %50 : vector<1x256xf32> to vector<1x256xi32>
    %c16_i32 = arith.constant 16 : i32
    %52 = vector.broadcast %c16_i32 : i32 to vector<1x256xi32>
    %53 = arith.muli %51, %52 : vector<1x256xi32>
    %54 = arith.subi %47, %53 : vector<1x256xi32>
    %c3_i32 = arith.constant 3 : i32
    %55 = vector.broadcast %c3_i32 : i32 to vector<1x256xi32>
    %56 = arith.cmpi sge, %51, %55 : vector<1x256xi32>
    %c19_i32 = arith.constant 19 : i32
    %57 = vector.broadcast %c19_i32 : i32 to vector<1x256xi32>
    %58 = arith.cmpi slt, %51, %57 : vector<1x256xi32>
    %59 = arith.andi %56, %58 : vector<1x256xi1>
    %c2_i32 = arith.constant 2 : i32
    %60 = vector.broadcast %c2_i32 : i32 to vector<1x256xi32>
    %61 = arith.cmpi sge, %51, %60 : vector<1x256xi32>
    %c18_i32 = arith.constant 18 : i32
    %62 = vector.broadcast %c18_i32 : i32 to vector<1x256xi32>
    %63 = arith.cmpi slt, %51, %62 : vector<1x256xi32>
    %64 = arith.andi %61, %63 : vector<1x256xi1>
    %c1_i32 = arith.constant 1 : i32
    %65 = vector.broadcast %c1_i32 : i32 to vector<1x256xi32>
    %66 = arith.cmpi sge, %51, %65 : vector<1x256xi32>
    %c17_i32 = arith.constant 17 : i32
    %67 = vector.broadcast %c17_i32 : i32 to vector<1x256xi32>
    %68 = arith.cmpi slt, %51, %67 : vector<1x256xi32>
    %69 = arith.andi %66, %68 : vector<1x256xi1>
    %c0_i32 = arith.constant 0 : i32
    %70 = vector.broadcast %c0_i32 : i32 to vector<1x256xi32>
    %71 = arith.cmpi sge, %51, %70 : vector<1x256xi32>
    %c16_i32_12 = arith.constant 16 : i32
    %72 = vector.broadcast %c16_i32_12 : i32 to vector<1x256xi32>
    %73 = arith.cmpi slt, %51, %72 : vector<1x256xi32>
    %74 = arith.andi %71, %73 : vector<1x256xi1>
    %c-1_i32 = arith.constant -1 : i32
    %75 = vector.broadcast %c-1_i32 : i32 to vector<1x256xi32>
    %76 = arith.cmpi sge, %51, %75 : vector<1x256xi32>
    %c15_i32 = arith.constant 15 : i32
    %77 = vector.broadcast %c15_i32 : i32 to vector<1x256xi32>
    %78 = arith.cmpi slt, %51, %77 : vector<1x256xi32>
    %79 = arith.andi %76, %78 : vector<1x256xi1>
    %c-2_i32 = arith.constant -2 : i32
    %80 = vector.broadcast %c-2_i32 : i32 to vector<1x256xi32>
    %81 = arith.cmpi sge, %51, %80 : vector<1x256xi32>
    %c14_i32 = arith.constant 14 : i32
    %82 = vector.broadcast %c14_i32 : i32 to vector<1x256xi32>
    %83 = arith.cmpi slt, %51, %82 : vector<1x256xi32>
    %84 = arith.andi %81, %83 : vector<1x256xi1>
    %c-3_i32 = arith.constant -3 : i32
    %85 = vector.broadcast %c-3_i32 : i32 to vector<1x256xi32>
    %86 = arith.cmpi sge, %51, %85 : vector<1x256xi32>
    %c13_i32 = arith.constant 13 : i32
    %87 = vector.broadcast %c13_i32 : i32 to vector<1x256xi32>
    %88 = arith.cmpi slt, %51, %87 : vector<1x256xi32>
    %89 = arith.andi %86, %88 : vector<1x256xi1>
    %c3_i32_13 = arith.constant 3 : i32
    %90 = vector.broadcast %c3_i32_13 : i32 to vector<1x256xi32>
    %91 = arith.cmpi sge, %54, %90 : vector<1x256xi32>
    %c19_i32_14 = arith.constant 19 : i32
    %92 = vector.broadcast %c19_i32_14 : i32 to vector<1x256xi32>
    %93 = arith.cmpi slt, %54, %92 : vector<1x256xi32>
    %94 = arith.andi %91, %93 : vector<1x256xi1>
    %c2_i32_15 = arith.constant 2 : i32
    %95 = vector.broadcast %c2_i32_15 : i32 to vector<1x256xi32>
    %96 = arith.cmpi sge, %54, %95 : vector<1x256xi32>
    %c18_i32_16 = arith.constant 18 : i32
    %97 = vector.broadcast %c18_i32_16 : i32 to vector<1x256xi32>
    %98 = arith.cmpi slt, %54, %97 : vector<1x256xi32>
    %99 = arith.andi %96, %98 : vector<1x256xi1>
    %c1_i32_17 = arith.constant 1 : i32
    %100 = vector.broadcast %c1_i32_17 : i32 to vector<1x256xi32>
    %101 = arith.cmpi sge, %54, %100 : vector<1x256xi32>
    %c17_i32_18 = arith.constant 17 : i32
    %102 = vector.broadcast %c17_i32_18 : i32 to vector<1x256xi32>
    %103 = arith.cmpi slt, %54, %102 : vector<1x256xi32>
    %104 = arith.andi %101, %103 : vector<1x256xi1>
    %c0_i32_19 = arith.constant 0 : i32
    %105 = vector.broadcast %c0_i32_19 : i32 to vector<1x256xi32>
    %106 = arith.cmpi sge, %54, %105 : vector<1x256xi32>
    %c16_i32_20 = arith.constant 16 : i32
    %107 = vector.broadcast %c16_i32_20 : i32 to vector<1x256xi32>
    %108 = arith.cmpi slt, %54, %107 : vector<1x256xi32>
    %109 = arith.andi %106, %108 : vector<1x256xi1>
    %c-1_i32_21 = arith.constant -1 : i32
    %110 = vector.broadcast %c-1_i32_21 : i32 to vector<1x256xi32>
    %111 = arith.cmpi sge, %54, %110 : vector<1x256xi32>
    %c15_i32_22 = arith.constant 15 : i32
    %112 = vector.broadcast %c15_i32_22 : i32 to vector<1x256xi32>
    %113 = arith.cmpi slt, %54, %112 : vector<1x256xi32>
    %114 = arith.andi %111, %113 : vector<1x256xi1>
    %c-2_i32_23 = arith.constant -2 : i32
    %115 = vector.broadcast %c-2_i32_23 : i32 to vector<1x256xi32>
    %116 = arith.cmpi sge, %54, %115 : vector<1x256xi32>
    %c14_i32_24 = arith.constant 14 : i32
    %117 = vector.broadcast %c14_i32_24 : i32 to vector<1x256xi32>
    %118 = arith.cmpi slt, %54, %117 : vector<1x256xi32>
    %119 = arith.andi %116, %118 : vector<1x256xi1>
    %c-3_i32_25 = arith.constant -3 : i32
    %120 = vector.broadcast %c-3_i32_25 : i32 to vector<1x256xi32>
    %121 = arith.cmpi sge, %54, %120 : vector<1x256xi32>
    %c13_i32_26 = arith.constant 13 : i32
    %122 = vector.broadcast %c13_i32_26 : i32 to vector<1x256xi32>
    %123 = arith.cmpi slt, %54, %122 : vector<1x256xi32>
    %124 = arith.andi %121, %123 : vector<1x256xi1>
    %cst_27 = arith.constant 0.000000e+00 : f32
    %125 = vector.broadcast %cst_27 : f32 to vector<2x256xf32>
    %c51_i32 = arith.constant 51 : i32
    %126 = tpu.dynamic_rotate %46 by %c51_i32 dim 1 : vector<2x512xf32>, i32 -> vector<2x512xf32>
    %127 = arith.andi %59, %94 : vector<1x256xi1>
    %c0_28 = arith.constant 0 : index
    %128 = memref.load %arg3[%c0_28] : memref<98xf32, #tpu.memory_space<smem>>
    %cst_29 = arith.constant 0.000000e+00 : f32
    %129 = vector.broadcast %128 : f32 to vector<1x256xf32>
    %130 = vector.broadcast %cst_29 : f32 to vector<1x256xf32>
    %131 = arith.select %127, %129, %130 : vector<1x256xi1>, vector<1x256xf32>
    %c49 = arith.constant 49 : index
    %132 = memref.load %arg3[%c49] : memref<98xf32, #tpu.memory_space<smem>>
    %cst_30 = arith.constant 0.000000e+00 : f32
    %133 = vector.broadcast %132 : f32 to vector<1x256xf32>
    %134 = vector.broadcast %cst_30 : f32 to vector<1x256xf32>
    %135 = arith.select %127, %133, %134 : vector<1x256xi1>, vector<1x256xf32>
    %136 = vector.extract_strided_slice %126 {offsets = [0, 0], sizes = [2, 256], strides = [1, 1]} : vector<2x512xf32> to vector<2x256xf32>
    %137 = vector.broadcast %131 : vector<1x256xf32> to vector<2x256xf32>
    %138 = arith.mulf %136, %137 : vector<2x256xf32>
    %139 = arith.addf %125, %138 : vector<2x256xf32>
    %140 = vector.extract_strided_slice %126 {offsets = [0, 256], sizes = [2, 256], strides = [1, 1]} : vector<2x512xf32> to vector<2x256xf32>
    %141 = vector.broadcast %135 : vector<1x256xf32> to vector<2x256xf32>
    %142 = arith.mulf %140, %141 : vector<2x256xf32>
    %143 = arith.addf %139, %142 : vector<2x256xf32>
    %c50_i32 = arith.constant 50 : i32
    %144 = tpu.dynamic_rotate %46 by %c50_i32 dim 1 : vector<2x512xf32>, i32 -> vector<2x512xf32>
    %145 = arith.andi %59, %99 : vector<1x256xi1>
    %c1 = arith.constant 1 : index
    %146 = memref.load %arg3[%c1] : memref<98xf32, #tpu.memory_space<smem>>
    %cst_31 = arith.constant 0.000000e+00 : f32
    %147 = vector.broadcast %146 : f32 to vector<1x256xf32>
    %148 = vector.broadcast %cst_31 : f32 to vector<1x256xf32>
    %149 = arith.select %145, %147, %148 : vector<1x256xi1>, vector<1x256xf32>
    %c50 = arith.constant 50 : index
    %150 = memref.load %arg3[%c50] : memref<98xf32, #tpu.memory_space<smem>>
    %cst_32 = arith.constant 0.000000e+00 : f32
    %151 = vector.broadcast %150 : f32 to vector<1x256xf32>
    %152 = vector.broadcast %cst_32 : f32 to vector<1x256xf32>
    %153 = arith.select %145, %151, %152 : vector<1x256xi1>, vector<1x256xf32>
    %154 = vector.extract_strided_slice %144 {offsets = [0, 0], sizes = [2, 256], strides = [1, 1]} : vector<2x512xf32> to vector<2x256xf32>
    %155 = vector.broadcast %149 : vector<1x256xf32> to vector<2x256xf32>
    %156 = arith.mulf %154, %155 : vector<2x256xf32>
    %157 = arith.addf %143, %156 : vector<2x256xf32>
    %158 = vector.extract_strided_slice %144 {offsets = [0, 256], sizes = [2, 256], strides = [1, 1]} : vector<2x512xf32> to vector<2x256xf32>
    %159 = vector.broadcast %153 : vector<1x256xf32> to vector<2x256xf32>
    %160 = arith.mulf %158, %159 : vector<2x256xf32>
    %161 = arith.addf %157, %160 : vector<2x256xf32>
    %c49_i32 = arith.constant 49 : i32
    %162 = tpu.dynamic_rotate %46 by %c49_i32 dim 1 : vector<2x512xf32>, i32 -> vector<2x512xf32>
    %163 = arith.andi %59, %104 : vector<1x256xi1>
    %c2 = arith.constant 2 : index
    %164 = memref.load %arg3[%c2] : memref<98xf32, #tpu.memory_space<smem>>
    %cst_33 = arith.constant 0.000000e+00 : f32
    %165 = vector.broadcast %164 : f32 to vector<1x256xf32>
    %166 = vector.broadcast %cst_33 : f32 to vector<1x256xf32>
    %167 = arith.select %163, %165, %166 : vector<1x256xi1>, vector<1x256xf32>
    %c51 = arith.constant 51 : index
    %168 = memref.load %arg3[%c51] : memref<98xf32, #tpu.memory_space<smem>>
    %cst_34 = arith.constant 0.000000e+00 : f32
    %169 = vector.broadcast %168 : f32 to vector<1x256xf32>
    %170 = vector.broadcast %cst_34 : f32 to vector<1x256xf32>
    %171 = arith.select %163, %169, %170 : vector<1x256xi1>, vector<1x256xf32>
    %172 = vector.extract_strided_slice %162 {offsets = [0, 0], sizes = [2, 256], strides = [1, 1]} : vector<2x512xf32> to vector<2x256xf32>
    %173 = vector.broadcast %167 : vector<1x256xf32> to vector<2x256xf32>
    %174 = arith.mulf %172, %173 : vector<2x256xf32>
    %175 = arith.addf %161, %174 : vector<2x256xf32>
    %176 = vector.extract_strided_slice %162 {offsets = [0, 256], sizes = [2, 256], strides = [1, 1]} : vector<2x512xf32> to vector<2x256xf32>
    %177 = vector.broadcast %171 : vector<1x256xf32> to vector<2x256xf32>
    %178 = arith.mulf %176, %177 : vector<2x256xf32>
    %179 = arith.addf %175, %178 : vector<2x256xf32>
    %c48_i32 = arith.constant 48 : i32
    %180 = tpu.dynamic_rotate %46 by %c48_i32 dim 1 : vector<2x512xf32>, i32 -> vector<2x512xf32>
    %181 = arith.andi %59, %109 : vector<1x256xi1>
    %c3 = arith.constant 3 : index
    %182 = memref.load %arg3[%c3] : memref<98xf32, #tpu.memory_space<smem>>
    %cst_35 = arith.constant 0.000000e+00 : f32
    %183 = vector.broadcast %182 : f32 to vector<1x256xf32>
    %184 = vector.broadcast %cst_35 : f32 to vector<1x256xf32>
    %185 = arith.select %181, %183, %184 : vector<1x256xi1>, vector<1x256xf32>
    %c52 = arith.constant 52 : index
    %186 = memref.load %arg3[%c52] : memref<98xf32, #tpu.memory_space<smem>>
    %cst_36 = arith.constant 0.000000e+00 : f32
    %187 = vector.broadcast %186 : f32 to vector<1x256xf32>
    %188 = vector.broadcast %cst_36 : f32 to vector<1x256xf32>
    %189 = arith.select %181, %187, %188 : vector<1x256xi1>, vector<1x256xf32>
    %190 = vector.extract_strided_slice %180 {offsets = [0, 0], sizes = [2, 256], strides = [1, 1]} : vector<2x512xf32> to vector<2x256xf32>
    %191 = vector.broadcast %185 : vector<1x256xf32> to vector<2x256xf32>
    %192 = arith.mulf %190, %191 : vector<2x256xf32>
    %193 = arith.addf %179, %192 : vector<2x256xf32>
    %194 = vector.extract_strided_slice %180 {offsets = [0, 256], sizes = [2, 256], strides = [1, 1]} : vector<2x512xf32> to vector<2x256xf32>
    %195 = vector.broadcast %189 : vector<1x256xf32> to vector<2x256xf32>
    %196 = arith.mulf %194, %195 : vector<2x256xf32>
    %197 = arith.addf %193, %196 : vector<2x256xf32>
    %c47_i32 = arith.constant 47 : i32
    %198 = tpu.dynamic_rotate %46 by %c47_i32 dim 1 : vector<2x512xf32>, i32 -> vector<2x512xf32>
    %199 = arith.andi %59, %114 : vector<1x256xi1>
    %c4_37 = arith.constant 4 : index
    %200 = memref.load %arg3[%c4_37] : memref<98xf32, #tpu.memory_space<smem>>
    %cst_38 = arith.constant 0.000000e+00 : f32
    %201 = vector.broadcast %200 : f32 to vector<1x256xf32>
    %202 = vector.broadcast %cst_38 : f32 to vector<1x256xf32>
    %203 = arith.select %199, %201, %202 : vector<1x256xi1>, vector<1x256xf32>
    %c53 = arith.constant 53 : index
    %204 = memref.load %arg3[%c53] : memref<98xf32, #tpu.memory_space<smem>>
    %cst_39 = arith.constant 0.000000e+00 : f32
    %205 = vector.broadcast %204 : f32 to vector<1x256xf32>
    %206 = vector.broadcast %cst_39 : f32 to vector<1x256xf32>
    %207 = arith.select %199, %205, %206 : vector<1x256xi1>, vector<1x256xf32>
    %208 = vector.extract_strided_slice %198 {offsets = [0, 0], sizes = [2, 256], strides = [1, 1]} : vector<2x512xf32> to vector<2x256xf32>
    %209 = vector.broadcast %203 : vector<1x256xf32> to vector<2x256xf32>
    %210 = arith.mulf %208, %209 : vector<2x256xf32>
    %211 = arith.addf %197, %210 : vector<2x256xf32>
    %212 = vector.extract_strided_slice %198 {offsets = [0, 256], sizes = [2, 256], strides = [1, 1]} : vector<2x512xf32> to vector<2x256xf32>
    %213 = vector.broadcast %207 : vector<1x256xf32> to vector<2x256xf32>
    %214 = arith.mulf %212, %213 : vector<2x256xf32>
    %215 = arith.addf %211, %214 : vector<2x256xf32>
    %c46_i32 = arith.constant 46 : i32
    %216 = tpu.dynamic_rotate %46 by %c46_i32 dim 1 : vector<2x512xf32>, i32 -> vector<2x512xf32>
    %217 = arith.andi %59, %119 : vector<1x256xi1>
    %c5 = arith.constant 5 : index
    %218 = memref.load %arg3[%c5] : memref<98xf32, #tpu.memory_space<smem>>
    %cst_40 = arith.constant 0.000000e+00 : f32
    %219 = vector.broadcast %218 : f32 to vector<1x256xf32>
    %220 = vector.broadcast %cst_40 : f32 to vector<1x256xf32>
    %221 = arith.select %217, %219, %220 : vector<1x256xi1>, vector<1x256xf32>
    %c54 = arith.constant 54 : index
    %222 = memref.load %arg3[%c54] : memref<98xf32, #tpu.memory_space<smem>>
    %cst_41 = arith.constant 0.000000e+00 : f32
    %223 = vector.broadcast %222 : f32 to vector<1x256xf32>
    %224 = vector.broadcast %cst_41 : f32 to vector<1x256xf32>
    %225 = arith.select %217, %223, %224 : vector<1x256xi1>, vector<1x256xf32>
    %226 = vector.extract_strided_slice %216 {offsets = [0, 0], sizes = [2, 256], strides = [1, 1]} : vector<2x512xf32> to vector<2x256xf32>
    %227 = vector.broadcast %221 : vector<1x256xf32> to vector<2x256xf32>
    %228 = arith.mulf %226, %227 : vector<2x256xf32>
    %229 = arith.addf %215, %228 : vector<2x256xf32>
    %230 = vector.extract_strided_slice %216 {offsets = [0, 256], sizes = [2, 256], strides = [1, 1]} : vector<2x512xf32> to vector<2x256xf32>
    %231 = vector.broadcast %225 : vector<1x256xf32> to vector<2x256xf32>
    %232 = arith.mulf %230, %231 : vector<2x256xf32>
    %233 = arith.addf %229, %232 : vector<2x256xf32>
    %c45_i32 = arith.constant 45 : i32
    %234 = tpu.dynamic_rotate %46 by %c45_i32 dim 1 : vector<2x512xf32>, i32 -> vector<2x512xf32>
    %235 = arith.andi %59, %124 : vector<1x256xi1>
    %c6 = arith.constant 6 : index
    %236 = memref.load %arg3[%c6] : memref<98xf32, #tpu.memory_space<smem>>
    %cst_42 = arith.constant 0.000000e+00 : f32
    %237 = vector.broadcast %236 : f32 to vector<1x256xf32>
    %238 = vector.broadcast %cst_42 : f32 to vector<1x256xf32>
    %239 = arith.select %235, %237, %238 : vector<1x256xi1>, vector<1x256xf32>
    %c55 = arith.constant 55 : index
    %240 = memref.load %arg3[%c55] : memref<98xf32, #tpu.memory_space<smem>>
    %cst_43 = arith.constant 0.000000e+00 : f32
    %241 = vector.broadcast %240 : f32 to vector<1x256xf32>
    %242 = vector.broadcast %cst_43 : f32 to vector<1x256xf32>
    %243 = arith.select %235, %241, %242 : vector<1x256xi1>, vector<1x256xf32>
    %244 = vector.extract_strided_slice %234 {offsets = [0, 0], sizes = [2, 256], strides = [1, 1]} : vector<2x512xf32> to vector<2x256xf32>
    %245 = vector.broadcast %239 : vector<1x256xf32> to vector<2x256xf32>
    %246 = arith.mulf %244, %245 : vector<2x256xf32>
    %247 = arith.addf %233, %246 : vector<2x256xf32>
    %248 = vector.extract_strided_slice %234 {offsets = [0, 256], sizes = [2, 256], strides = [1, 1]} : vector<2x512xf32> to vector<2x256xf32>
    %249 = vector.broadcast %243 : vector<1x256xf32> to vector<2x256xf32>
    %250 = arith.mulf %248, %249 : vector<2x256xf32>
    %251 = arith.addf %247, %250 : vector<2x256xf32>
    %c35_i32 = arith.constant 35 : i32
    %252 = tpu.dynamic_rotate %46 by %c35_i32 dim 1 : vector<2x512xf32>, i32 -> vector<2x512xf32>
    %253 = arith.andi %64, %94 : vector<1x256xi1>
    %c7 = arith.constant 7 : index
    %254 = memref.load %arg3[%c7] : memref<98xf32, #tpu.memory_space<smem>>
    %cst_44 = arith.constant 0.000000e+00 : f32
    %255 = vector.broadcast %254 : f32 to vector<1x256xf32>
    %256 = vector.broadcast %cst_44 : f32 to vector<1x256xf32>
    %257 = arith.select %253, %255, %256 : vector<1x256xi1>, vector<1x256xf32>
    %c56 = arith.constant 56 : index
    %258 = memref.load %arg3[%c56] : memref<98xf32, #tpu.memory_space<smem>>
    %cst_45 = arith.constant 0.000000e+00 : f32
    %259 = vector.broadcast %258 : f32 to vector<1x256xf32>
    %260 = vector.broadcast %cst_45 : f32 to vector<1x256xf32>
    %261 = arith.select %253, %259, %260 : vector<1x256xi1>, vector<1x256xf32>
    %262 = vector.extract_strided_slice %252 {offsets = [0, 0], sizes = [2, 256], strides = [1, 1]} : vector<2x512xf32> to vector<2x256xf32>
    %263 = vector.broadcast %257 : vector<1x256xf32> to vector<2x256xf32>
    %264 = arith.mulf %262, %263 : vector<2x256xf32>
    %265 = arith.addf %251, %264 : vector<2x256xf32>
    %266 = vector.extract_strided_slice %252 {offsets = [0, 256], sizes = [2, 256], strides = [1, 1]} : vector<2x512xf32> to vector<2x256xf32>
    %267 = vector.broadcast %261 : vector<1x256xf32> to vector<2x256xf32>
    %268 = arith.mulf %266, %267 : vector<2x256xf32>
    %269 = arith.addf %265, %268 : vector<2x256xf32>
    %c34_i32 = arith.constant 34 : i32
    %270 = tpu.dynamic_rotate %46 by %c34_i32 dim 1 : vector<2x512xf32>, i32 -> vector<2x512xf32>
    %271 = arith.andi %64, %99 : vector<1x256xi1>
    %c8 = arith.constant 8 : index
    %272 = memref.load %arg3[%c8] : memref<98xf32, #tpu.memory_space<smem>>
    %cst_46 = arith.constant 0.000000e+00 : f32
    %273 = vector.broadcast %272 : f32 to vector<1x256xf32>
    %274 = vector.broadcast %cst_46 : f32 to vector<1x256xf32>
    %275 = arith.select %271, %273, %274 : vector<1x256xi1>, vector<1x256xf32>
    %c57 = arith.constant 57 : index
    %276 = memref.load %arg3[%c57] : memref<98xf32, #tpu.memory_space<smem>>
    %cst_47 = arith.constant 0.000000e+00 : f32
    %277 = vector.broadcast %276 : f32 to vector<1x256xf32>
    %278 = vector.broadcast %cst_47 : f32 to vector<1x256xf32>
    %279 = arith.select %271, %277, %278 : vector<1x256xi1>, vector<1x256xf32>
    %280 = vector.extract_strided_slice %270 {offsets = [0, 0], sizes = [2, 256], strides = [1, 1]} : vector<2x512xf32> to vector<2x256xf32>
    %281 = vector.broadcast %275 : vector<1x256xf32> to vector<2x256xf32>
    %282 = arith.mulf %280, %281 : vector<2x256xf32>
    %283 = arith.addf %269, %282 : vector<2x256xf32>
    %284 = vector.extract_strided_slice %270 {offsets = [0, 256], sizes = [2, 256], strides = [1, 1]} : vector<2x512xf32> to vector<2x256xf32>
    %285 = vector.broadcast %279 : vector<1x256xf32> to vector<2x256xf32>
    %286 = arith.mulf %284, %285 : vector<2x256xf32>
    %287 = arith.addf %283, %286 : vector<2x256xf32>
    %c33_i32 = arith.constant 33 : i32
    %288 = tpu.dynamic_rotate %46 by %c33_i32 dim 1 : vector<2x512xf32>, i32 -> vector<2x512xf32>
    %289 = arith.andi %64, %104 : vector<1x256xi1>
    %c9 = arith.constant 9 : index
    %290 = memref.load %arg3[%c9] : memref<98xf32, #tpu.memory_space<smem>>
    %cst_48 = arith.constant 0.000000e+00 : f32
    %291 = vector.broadcast %290 : f32 to vector<1x256xf32>
    %292 = vector.broadcast %cst_48 : f32 to vector<1x256xf32>
    %293 = arith.select %289, %291, %292 : vector<1x256xi1>, vector<1x256xf32>
    %c58 = arith.constant 58 : index
    %294 = memref.load %arg3[%c58] : memref<98xf32, #tpu.memory_space<smem>>
    %cst_49 = arith.constant 0.000000e+00 : f32
    %295 = vector.broadcast %294 : f32 to vector<1x256xf32>
    %296 = vector.broadcast %cst_49 : f32 to vector<1x256xf32>
    %297 = arith.select %289, %295, %296 : vector<1x256xi1>, vector<1x256xf32>
    %298 = vector.extract_strided_slice %288 {offsets = [0, 0], sizes = [2, 256], strides = [1, 1]} : vector<2x512xf32> to vector<2x256xf32>
    %299 = vector.broadcast %293 : vector<1x256xf32> to vector<2x256xf32>
    %300 = arith.mulf %298, %299 : vector<2x256xf32>
    %301 = arith.addf %287, %300 : vector<2x256xf32>
    %302 = vector.extract_strided_slice %288 {offsets = [0, 256], sizes = [2, 256], strides = [1, 1]} : vector<2x512xf32> to vector<2x256xf32>
    %303 = vector.broadcast %297 : vector<1x256xf32> to vector<2x256xf32>
    %304 = arith.mulf %302, %303 : vector<2x256xf32>
    %305 = arith.addf %301, %304 : vector<2x256xf32>
    %c32_i32 = arith.constant 32 : i32
    %306 = tpu.dynamic_rotate %46 by %c32_i32 dim 1 : vector<2x512xf32>, i32 -> vector<2x512xf32>
    %307 = arith.andi %64, %109 : vector<1x256xi1>
    %c10 = arith.constant 10 : index
    %308 = memref.load %arg3[%c10] : memref<98xf32, #tpu.memory_space<smem>>
    %cst_50 = arith.constant 0.000000e+00 : f32
    %309 = vector.broadcast %308 : f32 to vector<1x256xf32>
    %310 = vector.broadcast %cst_50 : f32 to vector<1x256xf32>
    %311 = arith.select %307, %309, %310 : vector<1x256xi1>, vector<1x256xf32>
    %c59 = arith.constant 59 : index
    %312 = memref.load %arg3[%c59] : memref<98xf32, #tpu.memory_space<smem>>
    %cst_51 = arith.constant 0.000000e+00 : f32
    %313 = vector.broadcast %312 : f32 to vector<1x256xf32>
    %314 = vector.broadcast %cst_51 : f32 to vector<1x256xf32>
    %315 = arith.select %307, %313, %314 : vector<1x256xi1>, vector<1x256xf32>
    %316 = vector.extract_strided_slice %306 {offsets = [0, 0], sizes = [2, 256], strides = [1, 1]} : vector<2x512xf32> to vector<2x256xf32>
    %317 = vector.broadcast %311 : vector<1x256xf32> to vector<2x256xf32>
    %318 = arith.mulf %316, %317 : vector<2x256xf32>
    %319 = arith.addf %305, %318 : vector<2x256xf32>
    %320 = vector.extract_strided_slice %306 {offsets = [0, 256], sizes = [2, 256], strides = [1, 1]} : vector<2x512xf32> to vector<2x256xf32>
    %321 = vector.broadcast %315 : vector<1x256xf32> to vector<2x256xf32>
    %322 = arith.mulf %320, %321 : vector<2x256xf32>
    %323 = arith.addf %319, %322 : vector<2x256xf32>
    %c31_i32 = arith.constant 31 : i32
    %324 = tpu.dynamic_rotate %46 by %c31_i32 dim 1 : vector<2x512xf32>, i32 -> vector<2x512xf32>
    %325 = arith.andi %64, %114 : vector<1x256xi1>
    %c11 = arith.constant 11 : index
    %326 = memref.load %arg3[%c11] : memref<98xf32, #tpu.memory_space<smem>>
    %cst_52 = arith.constant 0.000000e+00 : f32
    %327 = vector.broadcast %326 : f32 to vector<1x256xf32>
    %328 = vector.broadcast %cst_52 : f32 to vector<1x256xf32>
    %329 = arith.select %325, %327, %328 : vector<1x256xi1>, vector<1x256xf32>
    %c60 = arith.constant 60 : index
    %330 = memref.load %arg3[%c60] : memref<98xf32, #tpu.memory_space<smem>>
    %cst_53 = arith.constant 0.000000e+00 : f32
    %331 = vector.broadcast %330 : f32 to vector<1x256xf32>
    %332 = vector.broadcast %cst_53 : f32 to vector<1x256xf32>
    %333 = arith.select %325, %331, %332 : vector<1x256xi1>, vector<1x256xf32>
    %334 = vector.extract_strided_slice %324 {offsets = [0, 0], sizes = [2, 256], strides = [1, 1]} : vector<2x512xf32> to vector<2x256xf32>
    %335 = vector.broadcast %329 : vector<1x256xf32> to vector<2x256xf32>
    %336 = arith.mulf %334, %335 : vector<2x256xf32>
    %337 = arith.addf %323, %336 : vector<2x256xf32>
    %338 = vector.extract_strided_slice %324 {offsets = [0, 256], sizes = [2, 256], strides = [1, 1]} : vector<2x512xf32> to vector<2x256xf32>
    %339 = vector.broadcast %333 : vector<1x256xf32> to vector<2x256xf32>
    %340 = arith.mulf %338, %339 : vector<2x256xf32>
    %341 = arith.addf %337, %340 : vector<2x256xf32>
    %c30_i32 = arith.constant 30 : i32
    %342 = tpu.dynamic_rotate %46 by %c30_i32 dim 1 : vector<2x512xf32>, i32 -> vector<2x512xf32>
    %343 = arith.andi %64, %119 : vector<1x256xi1>
    %c12 = arith.constant 12 : index
    %344 = memref.load %arg3[%c12] : memref<98xf32, #tpu.memory_space<smem>>
    %cst_54 = arith.constant 0.000000e+00 : f32
    %345 = vector.broadcast %344 : f32 to vector<1x256xf32>
    %346 = vector.broadcast %cst_54 : f32 to vector<1x256xf32>
    %347 = arith.select %343, %345, %346 : vector<1x256xi1>, vector<1x256xf32>
    %c61 = arith.constant 61 : index
    %348 = memref.load %arg3[%c61] : memref<98xf32, #tpu.memory_space<smem>>
    %cst_55 = arith.constant 0.000000e+00 : f32
    %349 = vector.broadcast %348 : f32 to vector<1x256xf32>
    %350 = vector.broadcast %cst_55 : f32 to vector<1x256xf32>
    %351 = arith.select %343, %349, %350 : vector<1x256xi1>, vector<1x256xf32>
    %352 = vector.extract_strided_slice %342 {offsets = [0, 0], sizes = [2, 256], strides = [1, 1]} : vector<2x512xf32> to vector<2x256xf32>
    %353 = vector.broadcast %347 : vector<1x256xf32> to vector<2x256xf32>
    %354 = arith.mulf %352, %353 : vector<2x256xf32>
    %355 = arith.addf %341, %354 : vector<2x256xf32>
    %356 = vector.extract_strided_slice %342 {offsets = [0, 256], sizes = [2, 256], strides = [1, 1]} : vector<2x512xf32> to vector<2x256xf32>
    %357 = vector.broadcast %351 : vector<1x256xf32> to vector<2x256xf32>
    %358 = arith.mulf %356, %357 : vector<2x256xf32>
    %359 = arith.addf %355, %358 : vector<2x256xf32>
    %c29_i32 = arith.constant 29 : i32
    %360 = tpu.dynamic_rotate %46 by %c29_i32 dim 1 : vector<2x512xf32>, i32 -> vector<2x512xf32>
    %361 = arith.andi %64, %124 : vector<1x256xi1>
    %c13 = arith.constant 13 : index
    %362 = memref.load %arg3[%c13] : memref<98xf32, #tpu.memory_space<smem>>
    %cst_56 = arith.constant 0.000000e+00 : f32
    %363 = vector.broadcast %362 : f32 to vector<1x256xf32>
    %364 = vector.broadcast %cst_56 : f32 to vector<1x256xf32>
    %365 = arith.select %361, %363, %364 : vector<1x256xi1>, vector<1x256xf32>
    %c62 = arith.constant 62 : index
    %366 = memref.load %arg3[%c62] : memref<98xf32, #tpu.memory_space<smem>>
    %cst_57 = arith.constant 0.000000e+00 : f32
    %367 = vector.broadcast %366 : f32 to vector<1x256xf32>
    %368 = vector.broadcast %cst_57 : f32 to vector<1x256xf32>
    %369 = arith.select %361, %367, %368 : vector<1x256xi1>, vector<1x256xf32>
    %370 = vector.extract_strided_slice %360 {offsets = [0, 0], sizes = [2, 256], strides = [1, 1]} : vector<2x512xf32> to vector<2x256xf32>
    %371 = vector.broadcast %365 : vector<1x256xf32> to vector<2x256xf32>
    %372 = arith.mulf %370, %371 : vector<2x256xf32>
    %373 = arith.addf %359, %372 : vector<2x256xf32>
    %374 = vector.extract_strided_slice %360 {offsets = [0, 256], sizes = [2, 256], strides = [1, 1]} : vector<2x512xf32> to vector<2x256xf32>
    %375 = vector.broadcast %369 : vector<1x256xf32> to vector<2x256xf32>
    %376 = arith.mulf %374, %375 : vector<2x256xf32>
    %377 = arith.addf %373, %376 : vector<2x256xf32>
    %c19_i32_58 = arith.constant 19 : i32
    %378 = tpu.dynamic_rotate %46 by %c19_i32_58 dim 1 : vector<2x512xf32>, i32 -> vector<2x512xf32>
    %379 = arith.andi %69, %94 : vector<1x256xi1>
    %c14 = arith.constant 14 : index
    %380 = memref.load %arg3[%c14] : memref<98xf32, #tpu.memory_space<smem>>
    %cst_59 = arith.constant 0.000000e+00 : f32
    %381 = vector.broadcast %380 : f32 to vector<1x256xf32>
    %382 = vector.broadcast %cst_59 : f32 to vector<1x256xf32>
    %383 = arith.select %379, %381, %382 : vector<1x256xi1>, vector<1x256xf32>
    %c63 = arith.constant 63 : index
    %384 = memref.load %arg3[%c63] : memref<98xf32, #tpu.memory_space<smem>>
    %cst_60 = arith.constant 0.000000e+00 : f32
    %385 = vector.broadcast %384 : f32 to vector<1x256xf32>
    %386 = vector.broadcast %cst_60 : f32 to vector<1x256xf32>
    %387 = arith.select %379, %385, %386 : vector<1x256xi1>, vector<1x256xf32>
    %388 = vector.extract_strided_slice %378 {offsets = [0, 0], sizes = [2, 256], strides = [1, 1]} : vector<2x512xf32> to vector<2x256xf32>
    %389 = vector.broadcast %383 : vector<1x256xf32> to vector<2x256xf32>
    %390 = arith.mulf %388, %389 : vector<2x256xf32>
    %391 = arith.addf %377, %390 : vector<2x256xf32>
    %392 = vector.extract_strided_slice %378 {offsets = [0, 256], sizes = [2, 256], strides = [1, 1]} : vector<2x512xf32> to vector<2x256xf32>
    %393 = vector.broadcast %387 : vector<1x256xf32> to vector<2x256xf32>
    %394 = arith.mulf %392, %393 : vector<2x256xf32>
    %395 = arith.addf %391, %394 : vector<2x256xf32>
    %c18_i32_61 = arith.constant 18 : i32
    %396 = tpu.dynamic_rotate %46 by %c18_i32_61 dim 1 : vector<2x512xf32>, i32 -> vector<2x512xf32>
    %397 = arith.andi %69, %99 : vector<1x256xi1>
    %c15 = arith.constant 15 : index
    %398 = memref.load %arg3[%c15] : memref<98xf32, #tpu.memory_space<smem>>
    %cst_62 = arith.constant 0.000000e+00 : f32
    %399 = vector.broadcast %398 : f32 to vector<1x256xf32>
    %400 = vector.broadcast %cst_62 : f32 to vector<1x256xf32>
    %401 = arith.select %397, %399, %400 : vector<1x256xi1>, vector<1x256xf32>
    %c64 = arith.constant 64 : index
    %402 = memref.load %arg3[%c64] : memref<98xf32, #tpu.memory_space<smem>>
    %cst_63 = arith.constant 0.000000e+00 : f32
    %403 = vector.broadcast %402 : f32 to vector<1x256xf32>
    %404 = vector.broadcast %cst_63 : f32 to vector<1x256xf32>
    %405 = arith.select %397, %403, %404 : vector<1x256xi1>, vector<1x256xf32>
    %406 = vector.extract_strided_slice %396 {offsets = [0, 0], sizes = [2, 256], strides = [1, 1]} : vector<2x512xf32> to vector<2x256xf32>
    %407 = vector.broadcast %401 : vector<1x256xf32> to vector<2x256xf32>
    %408 = arith.mulf %406, %407 : vector<2x256xf32>
    %409 = arith.addf %395, %408 : vector<2x256xf32>
    %410 = vector.extract_strided_slice %396 {offsets = [0, 256], sizes = [2, 256], strides = [1, 1]} : vector<2x512xf32> to vector<2x256xf32>
    %411 = vector.broadcast %405 : vector<1x256xf32> to vector<2x256xf32>
    %412 = arith.mulf %410, %411 : vector<2x256xf32>
    %413 = arith.addf %409, %412 : vector<2x256xf32>
    %c17_i32_64 = arith.constant 17 : i32
    %414 = tpu.dynamic_rotate %46 by %c17_i32_64 dim 1 : vector<2x512xf32>, i32 -> vector<2x512xf32>
    %415 = arith.andi %69, %104 : vector<1x256xi1>
    %c16 = arith.constant 16 : index
    %416 = memref.load %arg3[%c16] : memref<98xf32, #tpu.memory_space<smem>>
    %cst_65 = arith.constant 0.000000e+00 : f32
    %417 = vector.broadcast %416 : f32 to vector<1x256xf32>
    %418 = vector.broadcast %cst_65 : f32 to vector<1x256xf32>
    %419 = arith.select %415, %417, %418 : vector<1x256xi1>, vector<1x256xf32>
    %c65 = arith.constant 65 : index
    %420 = memref.load %arg3[%c65] : memref<98xf32, #tpu.memory_space<smem>>
    %cst_66 = arith.constant 0.000000e+00 : f32
    %421 = vector.broadcast %420 : f32 to vector<1x256xf32>
    %422 = vector.broadcast %cst_66 : f32 to vector<1x256xf32>
    %423 = arith.select %415, %421, %422 : vector<1x256xi1>, vector<1x256xf32>
    %424 = vector.extract_strided_slice %414 {offsets = [0, 0], sizes = [2, 256], strides = [1, 1]} : vector<2x512xf32> to vector<2x256xf32>
    %425 = vector.broadcast %419 : vector<1x256xf32> to vector<2x256xf32>
    %426 = arith.mulf %424, %425 : vector<2x256xf32>
    %427 = arith.addf %413, %426 : vector<2x256xf32>
    %428 = vector.extract_strided_slice %414 {offsets = [0, 256], sizes = [2, 256], strides = [1, 1]} : vector<2x512xf32> to vector<2x256xf32>
    %429 = vector.broadcast %423 : vector<1x256xf32> to vector<2x256xf32>
    %430 = arith.mulf %428, %429 : vector<2x256xf32>
    %431 = arith.addf %427, %430 : vector<2x256xf32>
    %c16_i32_67 = arith.constant 16 : i32
    %432 = tpu.dynamic_rotate %46 by %c16_i32_67 dim 1 : vector<2x512xf32>, i32 -> vector<2x512xf32>
    %433 = arith.andi %69, %109 : vector<1x256xi1>
    %c17 = arith.constant 17 : index
    %434 = memref.load %arg3[%c17] : memref<98xf32, #tpu.memory_space<smem>>
    %cst_68 = arith.constant 0.000000e+00 : f32
    %435 = vector.broadcast %434 : f32 to vector<1x256xf32>
    %436 = vector.broadcast %cst_68 : f32 to vector<1x256xf32>
    %437 = arith.select %433, %435, %436 : vector<1x256xi1>, vector<1x256xf32>
    %c66 = arith.constant 66 : index
    %438 = memref.load %arg3[%c66] : memref<98xf32, #tpu.memory_space<smem>>
    %cst_69 = arith.constant 0.000000e+00 : f32
    %439 = vector.broadcast %438 : f32 to vector<1x256xf32>
    %440 = vector.broadcast %cst_69 : f32 to vector<1x256xf32>
    %441 = arith.select %433, %439, %440 : vector<1x256xi1>, vector<1x256xf32>
    %442 = vector.extract_strided_slice %432 {offsets = [0, 0], sizes = [2, 256], strides = [1, 1]} : vector<2x512xf32> to vector<2x256xf32>
    %443 = vector.broadcast %437 : vector<1x256xf32> to vector<2x256xf32>
    %444 = arith.mulf %442, %443 : vector<2x256xf32>
    %445 = arith.addf %431, %444 : vector<2x256xf32>
    %446 = vector.extract_strided_slice %432 {offsets = [0, 256], sizes = [2, 256], strides = [1, 1]} : vector<2x512xf32> to vector<2x256xf32>
    %447 = vector.broadcast %441 : vector<1x256xf32> to vector<2x256xf32>
    %448 = arith.mulf %446, %447 : vector<2x256xf32>
    %449 = arith.addf %445, %448 : vector<2x256xf32>
    %c15_i32_70 = arith.constant 15 : i32
    %450 = tpu.dynamic_rotate %46 by %c15_i32_70 dim 1 : vector<2x512xf32>, i32 -> vector<2x512xf32>
    %451 = arith.andi %69, %114 : vector<1x256xi1>
    %c18 = arith.constant 18 : index
    %452 = memref.load %arg3[%c18] : memref<98xf32, #tpu.memory_space<smem>>
    %cst_71 = arith.constant 0.000000e+00 : f32
    %453 = vector.broadcast %452 : f32 to vector<1x256xf32>
    %454 = vector.broadcast %cst_71 : f32 to vector<1x256xf32>
    %455 = arith.select %451, %453, %454 : vector<1x256xi1>, vector<1x256xf32>
    %c67 = arith.constant 67 : index
    %456 = memref.load %arg3[%c67] : memref<98xf32, #tpu.memory_space<smem>>
    %cst_72 = arith.constant 0.000000e+00 : f32
    %457 = vector.broadcast %456 : f32 to vector<1x256xf32>
    %458 = vector.broadcast %cst_72 : f32 to vector<1x256xf32>
    %459 = arith.select %451, %457, %458 : vector<1x256xi1>, vector<1x256xf32>
    %460 = vector.extract_strided_slice %450 {offsets = [0, 0], sizes = [2, 256], strides = [1, 1]} : vector<2x512xf32> to vector<2x256xf32>
    %461 = vector.broadcast %455 : vector<1x256xf32> to vector<2x256xf32>
    %462 = arith.mulf %460, %461 : vector<2x256xf32>
    %463 = arith.addf %449, %462 : vector<2x256xf32>
    %464 = vector.extract_strided_slice %450 {offsets = [0, 256], sizes = [2, 256], strides = [1, 1]} : vector<2x512xf32> to vector<2x256xf32>
    %465 = vector.broadcast %459 : vector<1x256xf32> to vector<2x256xf32>
    %466 = arith.mulf %464, %465 : vector<2x256xf32>
    %467 = arith.addf %463, %466 : vector<2x256xf32>
    %c14_i32_73 = arith.constant 14 : i32
    %468 = tpu.dynamic_rotate %46 by %c14_i32_73 dim 1 : vector<2x512xf32>, i32 -> vector<2x512xf32>
    %469 = arith.andi %69, %119 : vector<1x256xi1>
    %c19 = arith.constant 19 : index
    %470 = memref.load %arg3[%c19] : memref<98xf32, #tpu.memory_space<smem>>
    %cst_74 = arith.constant 0.000000e+00 : f32
    %471 = vector.broadcast %470 : f32 to vector<1x256xf32>
    %472 = vector.broadcast %cst_74 : f32 to vector<1x256xf32>
    %473 = arith.select %469, %471, %472 : vector<1x256xi1>, vector<1x256xf32>
    %c68 = arith.constant 68 : index
    %474 = memref.load %arg3[%c68] : memref<98xf32, #tpu.memory_space<smem>>
    %cst_75 = arith.constant 0.000000e+00 : f32
    %475 = vector.broadcast %474 : f32 to vector<1x256xf32>
    %476 = vector.broadcast %cst_75 : f32 to vector<1x256xf32>
    %477 = arith.select %469, %475, %476 : vector<1x256xi1>, vector<1x256xf32>
    %478 = vector.extract_strided_slice %468 {offsets = [0, 0], sizes = [2, 256], strides = [1, 1]} : vector<2x512xf32> to vector<2x256xf32>
    %479 = vector.broadcast %473 : vector<1x256xf32> to vector<2x256xf32>
    %480 = arith.mulf %478, %479 : vector<2x256xf32>
    %481 = arith.addf %467, %480 : vector<2x256xf32>
    %482 = vector.extract_strided_slice %468 {offsets = [0, 256], sizes = [2, 256], strides = [1, 1]} : vector<2x512xf32> to vector<2x256xf32>
    %483 = vector.broadcast %477 : vector<1x256xf32> to vector<2x256xf32>
    %484 = arith.mulf %482, %483 : vector<2x256xf32>
    %485 = arith.addf %481, %484 : vector<2x256xf32>
    %c13_i32_76 = arith.constant 13 : i32
    %486 = tpu.dynamic_rotate %46 by %c13_i32_76 dim 1 : vector<2x512xf32>, i32 -> vector<2x512xf32>
    %487 = arith.andi %69, %124 : vector<1x256xi1>
    %c20 = arith.constant 20 : index
    %488 = memref.load %arg3[%c20] : memref<98xf32, #tpu.memory_space<smem>>
    %cst_77 = arith.constant 0.000000e+00 : f32
    %489 = vector.broadcast %488 : f32 to vector<1x256xf32>
    %490 = vector.broadcast %cst_77 : f32 to vector<1x256xf32>
    %491 = arith.select %487, %489, %490 : vector<1x256xi1>, vector<1x256xf32>
    %c69 = arith.constant 69 : index
    %492 = memref.load %arg3[%c69] : memref<98xf32, #tpu.memory_space<smem>>
    %cst_78 = arith.constant 0.000000e+00 : f32
    %493 = vector.broadcast %492 : f32 to vector<1x256xf32>
    %494 = vector.broadcast %cst_78 : f32 to vector<1x256xf32>
    %495 = arith.select %487, %493, %494 : vector<1x256xi1>, vector<1x256xf32>
    %496 = vector.extract_strided_slice %486 {offsets = [0, 0], sizes = [2, 256], strides = [1, 1]} : vector<2x512xf32> to vector<2x256xf32>
    %497 = vector.broadcast %491 : vector<1x256xf32> to vector<2x256xf32>
    %498 = arith.mulf %496, %497 : vector<2x256xf32>
    %499 = arith.addf %485, %498 : vector<2x256xf32>
    %500 = vector.extract_strided_slice %486 {offsets = [0, 256], sizes = [2, 256], strides = [1, 1]} : vector<2x512xf32> to vector<2x256xf32>
    %501 = vector.broadcast %495 : vector<1x256xf32> to vector<2x256xf32>
    %502 = arith.mulf %500, %501 : vector<2x256xf32>
    %503 = arith.addf %499, %502 : vector<2x256xf32>
    %c3_i32_79 = arith.constant 3 : i32
    %504 = tpu.dynamic_rotate %46 by %c3_i32_79 dim 1 : vector<2x512xf32>, i32 -> vector<2x512xf32>
    %505 = arith.andi %74, %94 : vector<1x256xi1>
    %c21 = arith.constant 21 : index
    %506 = memref.load %arg3[%c21] : memref<98xf32, #tpu.memory_space<smem>>
    %cst_80 = arith.constant 0.000000e+00 : f32
    %507 = vector.broadcast %506 : f32 to vector<1x256xf32>
    %508 = vector.broadcast %cst_80 : f32 to vector<1x256xf32>
    %509 = arith.select %505, %507, %508 : vector<1x256xi1>, vector<1x256xf32>
    %c70 = arith.constant 70 : index
    %510 = memref.load %arg3[%c70] : memref<98xf32, #tpu.memory_space<smem>>
    %cst_81 = arith.constant 0.000000e+00 : f32
    %511 = vector.broadcast %510 : f32 to vector<1x256xf32>
    %512 = vector.broadcast %cst_81 : f32 to vector<1x256xf32>
    %513 = arith.select %505, %511, %512 : vector<1x256xi1>, vector<1x256xf32>
    %514 = vector.extract_strided_slice %504 {offsets = [0, 0], sizes = [2, 256], strides = [1, 1]} : vector<2x512xf32> to vector<2x256xf32>
    %515 = vector.broadcast %509 : vector<1x256xf32> to vector<2x256xf32>
    %516 = arith.mulf %514, %515 : vector<2x256xf32>
    %517 = arith.addf %503, %516 : vector<2x256xf32>
    %518 = vector.extract_strided_slice %504 {offsets = [0, 256], sizes = [2, 256], strides = [1, 1]} : vector<2x512xf32> to vector<2x256xf32>
    %519 = vector.broadcast %513 : vector<1x256xf32> to vector<2x256xf32>
    %520 = arith.mulf %518, %519 : vector<2x256xf32>
    %521 = arith.addf %517, %520 : vector<2x256xf32>
    %c2_i32_82 = arith.constant 2 : i32
    %522 = tpu.dynamic_rotate %46 by %c2_i32_82 dim 1 : vector<2x512xf32>, i32 -> vector<2x512xf32>
    %523 = arith.andi %74, %99 : vector<1x256xi1>
    %c22 = arith.constant 22 : index
    %524 = memref.load %arg3[%c22] : memref<98xf32, #tpu.memory_space<smem>>
    %cst_83 = arith.constant 0.000000e+00 : f32
    %525 = vector.broadcast %524 : f32 to vector<1x256xf32>
    %526 = vector.broadcast %cst_83 : f32 to vector<1x256xf32>
    %527 = arith.select %523, %525, %526 : vector<1x256xi1>, vector<1x256xf32>
    %c71 = arith.constant 71 : index
    %528 = memref.load %arg3[%c71] : memref<98xf32, #tpu.memory_space<smem>>
    %cst_84 = arith.constant 0.000000e+00 : f32
    %529 = vector.broadcast %528 : f32 to vector<1x256xf32>
    %530 = vector.broadcast %cst_84 : f32 to vector<1x256xf32>
    %531 = arith.select %523, %529, %530 : vector<1x256xi1>, vector<1x256xf32>
    %532 = vector.extract_strided_slice %522 {offsets = [0, 0], sizes = [2, 256], strides = [1, 1]} : vector<2x512xf32> to vector<2x256xf32>
    %533 = vector.broadcast %527 : vector<1x256xf32> to vector<2x256xf32>
    %534 = arith.mulf %532, %533 : vector<2x256xf32>
    %535 = arith.addf %521, %534 : vector<2x256xf32>
    %536 = vector.extract_strided_slice %522 {offsets = [0, 256], sizes = [2, 256], strides = [1, 1]} : vector<2x512xf32> to vector<2x256xf32>
    %537 = vector.broadcast %531 : vector<1x256xf32> to vector<2x256xf32>
    %538 = arith.mulf %536, %537 : vector<2x256xf32>
    %539 = arith.addf %535, %538 : vector<2x256xf32>
    %c1_i32_85 = arith.constant 1 : i32
    %540 = tpu.dynamic_rotate %46 by %c1_i32_85 dim 1 : vector<2x512xf32>, i32 -> vector<2x512xf32>
    %541 = arith.andi %74, %104 : vector<1x256xi1>
    %c23 = arith.constant 23 : index
    %542 = memref.load %arg3[%c23] : memref<98xf32, #tpu.memory_space<smem>>
    %cst_86 = arith.constant 0.000000e+00 : f32
    %543 = vector.broadcast %542 : f32 to vector<1x256xf32>
    %544 = vector.broadcast %cst_86 : f32 to vector<1x256xf32>
    %545 = arith.select %541, %543, %544 : vector<1x256xi1>, vector<1x256xf32>
    %c72 = arith.constant 72 : index
    %546 = memref.load %arg3[%c72] : memref<98xf32, #tpu.memory_space<smem>>
    %cst_87 = arith.constant 0.000000e+00 : f32
    %547 = vector.broadcast %546 : f32 to vector<1x256xf32>
    %548 = vector.broadcast %cst_87 : f32 to vector<1x256xf32>
    %549 = arith.select %541, %547, %548 : vector<1x256xi1>, vector<1x256xf32>
    %550 = vector.extract_strided_slice %540 {offsets = [0, 0], sizes = [2, 256], strides = [1, 1]} : vector<2x512xf32> to vector<2x256xf32>
    %551 = vector.broadcast %545 : vector<1x256xf32> to vector<2x256xf32>
    %552 = arith.mulf %550, %551 : vector<2x256xf32>
    %553 = arith.addf %539, %552 : vector<2x256xf32>
    %554 = vector.extract_strided_slice %540 {offsets = [0, 256], sizes = [2, 256], strides = [1, 1]} : vector<2x512xf32> to vector<2x256xf32>
    %555 = vector.broadcast %549 : vector<1x256xf32> to vector<2x256xf32>
    %556 = arith.mulf %554, %555 : vector<2x256xf32>
    %557 = arith.addf %553, %556 : vector<2x256xf32>
    %558 = arith.andi %74, %109 : vector<1x256xi1>
    %c24 = arith.constant 24 : index
    %559 = memref.load %arg3[%c24] : memref<98xf32, #tpu.memory_space<smem>>
    %cst_88 = arith.constant 0.000000e+00 : f32
    %560 = vector.broadcast %559 : f32 to vector<1x256xf32>
    %561 = vector.broadcast %cst_88 : f32 to vector<1x256xf32>
    %562 = arith.select %558, %560, %561 : vector<1x256xi1>, vector<1x256xf32>
    %c73 = arith.constant 73 : index
    %563 = memref.load %arg3[%c73] : memref<98xf32, #tpu.memory_space<smem>>
    %cst_89 = arith.constant 0.000000e+00 : f32
    %564 = vector.broadcast %563 : f32 to vector<1x256xf32>
    %565 = vector.broadcast %cst_89 : f32 to vector<1x256xf32>
    %566 = arith.select %558, %564, %565 : vector<1x256xi1>, vector<1x256xf32>
    %567 = vector.extract_strided_slice %46 {offsets = [0, 0], sizes = [2, 256], strides = [1, 1]} : vector<2x512xf32> to vector<2x256xf32>
    %568 = vector.broadcast %562 : vector<1x256xf32> to vector<2x256xf32>
    %569 = arith.mulf %567, %568 : vector<2x256xf32>
    %570 = arith.addf %557, %569 : vector<2x256xf32>
    %571 = vector.extract_strided_slice %46 {offsets = [0, 256], sizes = [2, 256], strides = [1, 1]} : vector<2x512xf32> to vector<2x256xf32>
    %572 = vector.broadcast %566 : vector<1x256xf32> to vector<2x256xf32>
    %573 = arith.mulf %571, %572 : vector<2x256xf32>
    %574 = arith.addf %570, %573 : vector<2x256xf32>
    %c511_i32 = arith.constant 511 : i32
    %575 = tpu.dynamic_rotate %46 by %c511_i32 dim 1 : vector<2x512xf32>, i32 -> vector<2x512xf32>
    %576 = arith.andi %74, %114 : vector<1x256xi1>
    %c25 = arith.constant 25 : index
    %577 = memref.load %arg3[%c25] : memref<98xf32, #tpu.memory_space<smem>>
    %cst_90 = arith.constant 0.000000e+00 : f32
    %578 = vector.broadcast %577 : f32 to vector<1x256xf32>
    %579 = vector.broadcast %cst_90 : f32 to vector<1x256xf32>
    %580 = arith.select %576, %578, %579 : vector<1x256xi1>, vector<1x256xf32>
    %c74 = arith.constant 74 : index
    %581 = memref.load %arg3[%c74] : memref<98xf32, #tpu.memory_space<smem>>
    %cst_91 = arith.constant 0.000000e+00 : f32
    %582 = vector.broadcast %581 : f32 to vector<1x256xf32>
    %583 = vector.broadcast %cst_91 : f32 to vector<1x256xf32>
    %584 = arith.select %576, %582, %583 : vector<1x256xi1>, vector<1x256xf32>
    %585 = vector.extract_strided_slice %575 {offsets = [0, 0], sizes = [2, 256], strides = [1, 1]} : vector<2x512xf32> to vector<2x256xf32>
    %586 = vector.broadcast %580 : vector<1x256xf32> to vector<2x256xf32>
    %587 = arith.mulf %585, %586 : vector<2x256xf32>
    %588 = arith.addf %574, %587 : vector<2x256xf32>
    %589 = vector.extract_strided_slice %575 {offsets = [0, 256], sizes = [2, 256], strides = [1, 1]} : vector<2x512xf32> to vector<2x256xf32>
    %590 = vector.broadcast %584 : vector<1x256xf32> to vector<2x256xf32>
    %591 = arith.mulf %589, %590 : vector<2x256xf32>
    %592 = arith.addf %588, %591 : vector<2x256xf32>
    %c510_i32 = arith.constant 510 : i32
    %593 = tpu.dynamic_rotate %46 by %c510_i32 dim 1 : vector<2x512xf32>, i32 -> vector<2x512xf32>
    %594 = arith.andi %74, %119 : vector<1x256xi1>
    %c26 = arith.constant 26 : index
    %595 = memref.load %arg3[%c26] : memref<98xf32, #tpu.memory_space<smem>>
    %cst_92 = arith.constant 0.000000e+00 : f32
    %596 = vector.broadcast %595 : f32 to vector<1x256xf32>
    %597 = vector.broadcast %cst_92 : f32 to vector<1x256xf32>
    %598 = arith.select %594, %596, %597 : vector<1x256xi1>, vector<1x256xf32>
    %c75 = arith.constant 75 : index
    %599 = memref.load %arg3[%c75] : memref<98xf32, #tpu.memory_space<smem>>
    %cst_93 = arith.constant 0.000000e+00 : f32
    %600 = vector.broadcast %599 : f32 to vector<1x256xf32>
    %601 = vector.broadcast %cst_93 : f32 to vector<1x256xf32>
    %602 = arith.select %594, %600, %601 : vector<1x256xi1>, vector<1x256xf32>
    %603 = vector.extract_strided_slice %593 {offsets = [0, 0], sizes = [2, 256], strides = [1, 1]} : vector<2x512xf32> to vector<2x256xf32>
    %604 = vector.broadcast %598 : vector<1x256xf32> to vector<2x256xf32>
    %605 = arith.mulf %603, %604 : vector<2x256xf32>
    %606 = arith.addf %592, %605 : vector<2x256xf32>
    %607 = vector.extract_strided_slice %593 {offsets = [0, 256], sizes = [2, 256], strides = [1, 1]} : vector<2x512xf32> to vector<2x256xf32>
    %608 = vector.broadcast %602 : vector<1x256xf32> to vector<2x256xf32>
    %609 = arith.mulf %607, %608 : vector<2x256xf32>
    %610 = arith.addf %606, %609 : vector<2x256xf32>
    %c509_i32 = arith.constant 509 : i32
    %611 = tpu.dynamic_rotate %46 by %c509_i32 dim 1 : vector<2x512xf32>, i32 -> vector<2x512xf32>
    %612 = arith.andi %74, %124 : vector<1x256xi1>
    %c27 = arith.constant 27 : index
    %613 = memref.load %arg3[%c27] : memref<98xf32, #tpu.memory_space<smem>>
    %cst_94 = arith.constant 0.000000e+00 : f32
    %614 = vector.broadcast %613 : f32 to vector<1x256xf32>
    %615 = vector.broadcast %cst_94 : f32 to vector<1x256xf32>
    %616 = arith.select %612, %614, %615 : vector<1x256xi1>, vector<1x256xf32>
    %c76 = arith.constant 76 : index
    %617 = memref.load %arg3[%c76] : memref<98xf32, #tpu.memory_space<smem>>
    %cst_95 = arith.constant 0.000000e+00 : f32
    %618 = vector.broadcast %617 : f32 to vector<1x256xf32>
    %619 = vector.broadcast %cst_95 : f32 to vector<1x256xf32>
    %620 = arith.select %612, %618, %619 : vector<1x256xi1>, vector<1x256xf32>
    %621 = vector.extract_strided_slice %611 {offsets = [0, 0], sizes = [2, 256], strides = [1, 1]} : vector<2x512xf32> to vector<2x256xf32>
    %622 = vector.broadcast %616 : vector<1x256xf32> to vector<2x256xf32>
    %623 = arith.mulf %621, %622 : vector<2x256xf32>
    %624 = arith.addf %610, %623 : vector<2x256xf32>
    %625 = vector.extract_strided_slice %611 {offsets = [0, 256], sizes = [2, 256], strides = [1, 1]} : vector<2x512xf32> to vector<2x256xf32>
    %626 = vector.broadcast %620 : vector<1x256xf32> to vector<2x256xf32>
    %627 = arith.mulf %625, %626 : vector<2x256xf32>
    %628 = arith.addf %624, %627 : vector<2x256xf32>
    %c499_i32 = arith.constant 499 : i32
    %629 = tpu.dynamic_rotate %46 by %c499_i32 dim 1 : vector<2x512xf32>, i32 -> vector<2x512xf32>
    %630 = arith.andi %79, %94 : vector<1x256xi1>
    %c28 = arith.constant 28 : index
    %631 = memref.load %arg3[%c28] : memref<98xf32, #tpu.memory_space<smem>>
    %cst_96 = arith.constant 0.000000e+00 : f32
    %632 = vector.broadcast %631 : f32 to vector<1x256xf32>
    %633 = vector.broadcast %cst_96 : f32 to vector<1x256xf32>
    %634 = arith.select %630, %632, %633 : vector<1x256xi1>, vector<1x256xf32>
    %c77 = arith.constant 77 : index
    %635 = memref.load %arg3[%c77] : memref<98xf32, #tpu.memory_space<smem>>
    %cst_97 = arith.constant 0.000000e+00 : f32
    %636 = vector.broadcast %635 : f32 to vector<1x256xf32>
    %637 = vector.broadcast %cst_97 : f32 to vector<1x256xf32>
    %638 = arith.select %630, %636, %637 : vector<1x256xi1>, vector<1x256xf32>
    %639 = vector.extract_strided_slice %629 {offsets = [0, 0], sizes = [2, 256], strides = [1, 1]} : vector<2x512xf32> to vector<2x256xf32>
    %640 = vector.broadcast %634 : vector<1x256xf32> to vector<2x256xf32>
    %641 = arith.mulf %639, %640 : vector<2x256xf32>
    %642 = arith.addf %628, %641 : vector<2x256xf32>
    %643 = vector.extract_strided_slice %629 {offsets = [0, 256], sizes = [2, 256], strides = [1, 1]} : vector<2x512xf32> to vector<2x256xf32>
    %644 = vector.broadcast %638 : vector<1x256xf32> to vector<2x256xf32>
    %645 = arith.mulf %643, %644 : vector<2x256xf32>
    %646 = arith.addf %642, %645 : vector<2x256xf32>
    %c498_i32 = arith.constant 498 : i32
    %647 = tpu.dynamic_rotate %46 by %c498_i32 dim 1 : vector<2x512xf32>, i32 -> vector<2x512xf32>
    %648 = arith.andi %79, %99 : vector<1x256xi1>
    %c29 = arith.constant 29 : index
    %649 = memref.load %arg3[%c29] : memref<98xf32, #tpu.memory_space<smem>>
    %cst_98 = arith.constant 0.000000e+00 : f32
    %650 = vector.broadcast %649 : f32 to vector<1x256xf32>
    %651 = vector.broadcast %cst_98 : f32 to vector<1x256xf32>
    %652 = arith.select %648, %650, %651 : vector<1x256xi1>, vector<1x256xf32>
    %c78 = arith.constant 78 : index
    %653 = memref.load %arg3[%c78] : memref<98xf32, #tpu.memory_space<smem>>
    %cst_99 = arith.constant 0.000000e+00 : f32
    %654 = vector.broadcast %653 : f32 to vector<1x256xf32>
    %655 = vector.broadcast %cst_99 : f32 to vector<1x256xf32>
    %656 = arith.select %648, %654, %655 : vector<1x256xi1>, vector<1x256xf32>
    %657 = vector.extract_strided_slice %647 {offsets = [0, 0], sizes = [2, 256], strides = [1, 1]} : vector<2x512xf32> to vector<2x256xf32>
    %658 = vector.broadcast %652 : vector<1x256xf32> to vector<2x256xf32>
    %659 = arith.mulf %657, %658 : vector<2x256xf32>
    %660 = arith.addf %646, %659 : vector<2x256xf32>
    %661 = vector.extract_strided_slice %647 {offsets = [0, 256], sizes = [2, 256], strides = [1, 1]} : vector<2x512xf32> to vector<2x256xf32>
    %662 = vector.broadcast %656 : vector<1x256xf32> to vector<2x256xf32>
    %663 = arith.mulf %661, %662 : vector<2x256xf32>
    %664 = arith.addf %660, %663 : vector<2x256xf32>
    %c497_i32 = arith.constant 497 : i32
    %665 = tpu.dynamic_rotate %46 by %c497_i32 dim 1 : vector<2x512xf32>, i32 -> vector<2x512xf32>
    %666 = arith.andi %79, %104 : vector<1x256xi1>
    %c30 = arith.constant 30 : index
    %667 = memref.load %arg3[%c30] : memref<98xf32, #tpu.memory_space<smem>>
    %cst_100 = arith.constant 0.000000e+00 : f32
    %668 = vector.broadcast %667 : f32 to vector<1x256xf32>
    %669 = vector.broadcast %cst_100 : f32 to vector<1x256xf32>
    %670 = arith.select %666, %668, %669 : vector<1x256xi1>, vector<1x256xf32>
    %c79 = arith.constant 79 : index
    %671 = memref.load %arg3[%c79] : memref<98xf32, #tpu.memory_space<smem>>
    %cst_101 = arith.constant 0.000000e+00 : f32
    %672 = vector.broadcast %671 : f32 to vector<1x256xf32>
    %673 = vector.broadcast %cst_101 : f32 to vector<1x256xf32>
    %674 = arith.select %666, %672, %673 : vector<1x256xi1>, vector<1x256xf32>
    %675 = vector.extract_strided_slice %665 {offsets = [0, 0], sizes = [2, 256], strides = [1, 1]} : vector<2x512xf32> to vector<2x256xf32>
    %676 = vector.broadcast %670 : vector<1x256xf32> to vector<2x256xf32>
    %677 = arith.mulf %675, %676 : vector<2x256xf32>
    %678 = arith.addf %664, %677 : vector<2x256xf32>
    %679 = vector.extract_strided_slice %665 {offsets = [0, 256], sizes = [2, 256], strides = [1, 1]} : vector<2x512xf32> to vector<2x256xf32>
    %680 = vector.broadcast %674 : vector<1x256xf32> to vector<2x256xf32>
    %681 = arith.mulf %679, %680 : vector<2x256xf32>
    %682 = arith.addf %678, %681 : vector<2x256xf32>
    %c496_i32 = arith.constant 496 : i32
    %683 = tpu.dynamic_rotate %46 by %c496_i32 dim 1 : vector<2x512xf32>, i32 -> vector<2x512xf32>
    %684 = arith.andi %79, %109 : vector<1x256xi1>
    %c31 = arith.constant 31 : index
    %685 = memref.load %arg3[%c31] : memref<98xf32, #tpu.memory_space<smem>>
    %cst_102 = arith.constant 0.000000e+00 : f32
    %686 = vector.broadcast %685 : f32 to vector<1x256xf32>
    %687 = vector.broadcast %cst_102 : f32 to vector<1x256xf32>
    %688 = arith.select %684, %686, %687 : vector<1x256xi1>, vector<1x256xf32>
    %c80 = arith.constant 80 : index
    %689 = memref.load %arg3[%c80] : memref<98xf32, #tpu.memory_space<smem>>
    %cst_103 = arith.constant 0.000000e+00 : f32
    %690 = vector.broadcast %689 : f32 to vector<1x256xf32>
    %691 = vector.broadcast %cst_103 : f32 to vector<1x256xf32>
    %692 = arith.select %684, %690, %691 : vector<1x256xi1>, vector<1x256xf32>
    %693 = vector.extract_strided_slice %683 {offsets = [0, 0], sizes = [2, 256], strides = [1, 1]} : vector<2x512xf32> to vector<2x256xf32>
    %694 = vector.broadcast %688 : vector<1x256xf32> to vector<2x256xf32>
    %695 = arith.mulf %693, %694 : vector<2x256xf32>
    %696 = arith.addf %682, %695 : vector<2x256xf32>
    %697 = vector.extract_strided_slice %683 {offsets = [0, 256], sizes = [2, 256], strides = [1, 1]} : vector<2x512xf32> to vector<2x256xf32>
    %698 = vector.broadcast %692 : vector<1x256xf32> to vector<2x256xf32>
    %699 = arith.mulf %697, %698 : vector<2x256xf32>
    %700 = arith.addf %696, %699 : vector<2x256xf32>
    %c495_i32 = arith.constant 495 : i32
    %701 = tpu.dynamic_rotate %46 by %c495_i32 dim 1 : vector<2x512xf32>, i32 -> vector<2x512xf32>
    %702 = arith.andi %79, %114 : vector<1x256xi1>
    %c32 = arith.constant 32 : index
    %703 = memref.load %arg3[%c32] : memref<98xf32, #tpu.memory_space<smem>>
    %cst_104 = arith.constant 0.000000e+00 : f32
    %704 = vector.broadcast %703 : f32 to vector<1x256xf32>
    %705 = vector.broadcast %cst_104 : f32 to vector<1x256xf32>
    %706 = arith.select %702, %704, %705 : vector<1x256xi1>, vector<1x256xf32>
    %c81 = arith.constant 81 : index
    %707 = memref.load %arg3[%c81] : memref<98xf32, #tpu.memory_space<smem>>
    %cst_105 = arith.constant 0.000000e+00 : f32
    %708 = vector.broadcast %707 : f32 to vector<1x256xf32>
    %709 = vector.broadcast %cst_105 : f32 to vector<1x256xf32>
    %710 = arith.select %702, %708, %709 : vector<1x256xi1>, vector<1x256xf32>
    %711 = vector.extract_strided_slice %701 {offsets = [0, 0], sizes = [2, 256], strides = [1, 1]} : vector<2x512xf32> to vector<2x256xf32>
    %712 = vector.broadcast %706 : vector<1x256xf32> to vector<2x256xf32>
    %713 = arith.mulf %711, %712 : vector<2x256xf32>
    %714 = arith.addf %700, %713 : vector<2x256xf32>
    %715 = vector.extract_strided_slice %701 {offsets = [0, 256], sizes = [2, 256], strides = [1, 1]} : vector<2x512xf32> to vector<2x256xf32>
    %716 = vector.broadcast %710 : vector<1x256xf32> to vector<2x256xf32>
    %717 = arith.mulf %715, %716 : vector<2x256xf32>
    %718 = arith.addf %714, %717 : vector<2x256xf32>
    %c494_i32 = arith.constant 494 : i32
    %719 = tpu.dynamic_rotate %46 by %c494_i32 dim 1 : vector<2x512xf32>, i32 -> vector<2x512xf32>
    %720 = arith.andi %79, %119 : vector<1x256xi1>
    %c33 = arith.constant 33 : index
    %721 = memref.load %arg3[%c33] : memref<98xf32, #tpu.memory_space<smem>>
    %cst_106 = arith.constant 0.000000e+00 : f32
    %722 = vector.broadcast %721 : f32 to vector<1x256xf32>
    %723 = vector.broadcast %cst_106 : f32 to vector<1x256xf32>
    %724 = arith.select %720, %722, %723 : vector<1x256xi1>, vector<1x256xf32>
    %c82 = arith.constant 82 : index
    %725 = memref.load %arg3[%c82] : memref<98xf32, #tpu.memory_space<smem>>
    %cst_107 = arith.constant 0.000000e+00 : f32
    %726 = vector.broadcast %725 : f32 to vector<1x256xf32>
    %727 = vector.broadcast %cst_107 : f32 to vector<1x256xf32>
    %728 = arith.select %720, %726, %727 : vector<1x256xi1>, vector<1x256xf32>
    %729 = vector.extract_strided_slice %719 {offsets = [0, 0], sizes = [2, 256], strides = [1, 1]} : vector<2x512xf32> to vector<2x256xf32>
    %730 = vector.broadcast %724 : vector<1x256xf32> to vector<2x256xf32>
    %731 = arith.mulf %729, %730 : vector<2x256xf32>
    %732 = arith.addf %718, %731 : vector<2x256xf32>
    %733 = vector.extract_strided_slice %719 {offsets = [0, 256], sizes = [2, 256], strides = [1, 1]} : vector<2x512xf32> to vector<2x256xf32>
    %734 = vector.broadcast %728 : vector<1x256xf32> to vector<2x256xf32>
    %735 = arith.mulf %733, %734 : vector<2x256xf32>
    %736 = arith.addf %732, %735 : vector<2x256xf32>
    %c493_i32 = arith.constant 493 : i32
    %737 = tpu.dynamic_rotate %46 by %c493_i32 dim 1 : vector<2x512xf32>, i32 -> vector<2x512xf32>
    %738 = arith.andi %79, %124 : vector<1x256xi1>
    %c34 = arith.constant 34 : index
    %739 = memref.load %arg3[%c34] : memref<98xf32, #tpu.memory_space<smem>>
    %cst_108 = arith.constant 0.000000e+00 : f32
    %740 = vector.broadcast %739 : f32 to vector<1x256xf32>
    %741 = vector.broadcast %cst_108 : f32 to vector<1x256xf32>
    %742 = arith.select %738, %740, %741 : vector<1x256xi1>, vector<1x256xf32>
    %c83 = arith.constant 83 : index
    %743 = memref.load %arg3[%c83] : memref<98xf32, #tpu.memory_space<smem>>
    %cst_109 = arith.constant 0.000000e+00 : f32
    %744 = vector.broadcast %743 : f32 to vector<1x256xf32>
    %745 = vector.broadcast %cst_109 : f32 to vector<1x256xf32>
    %746 = arith.select %738, %744, %745 : vector<1x256xi1>, vector<1x256xf32>
    %747 = vector.extract_strided_slice %737 {offsets = [0, 0], sizes = [2, 256], strides = [1, 1]} : vector<2x512xf32> to vector<2x256xf32>
    %748 = vector.broadcast %742 : vector<1x256xf32> to vector<2x256xf32>
    %749 = arith.mulf %747, %748 : vector<2x256xf32>
    %750 = arith.addf %736, %749 : vector<2x256xf32>
    %751 = vector.extract_strided_slice %737 {offsets = [0, 256], sizes = [2, 256], strides = [1, 1]} : vector<2x512xf32> to vector<2x256xf32>
    %752 = vector.broadcast %746 : vector<1x256xf32> to vector<2x256xf32>
    %753 = arith.mulf %751, %752 : vector<2x256xf32>
    %754 = arith.addf %750, %753 : vector<2x256xf32>
    %c483_i32 = arith.constant 483 : i32
    %755 = tpu.dynamic_rotate %46 by %c483_i32 dim 1 : vector<2x512xf32>, i32 -> vector<2x512xf32>
    %756 = arith.andi %84, %94 : vector<1x256xi1>
    %c35 = arith.constant 35 : index
    %757 = memref.load %arg3[%c35] : memref<98xf32, #tpu.memory_space<smem>>
    %cst_110 = arith.constant 0.000000e+00 : f32
    %758 = vector.broadcast %757 : f32 to vector<1x256xf32>
    %759 = vector.broadcast %cst_110 : f32 to vector<1x256xf32>
    %760 = arith.select %756, %758, %759 : vector<1x256xi1>, vector<1x256xf32>
    %c84 = arith.constant 84 : index
    %761 = memref.load %arg3[%c84] : memref<98xf32, #tpu.memory_space<smem>>
    %cst_111 = arith.constant 0.000000e+00 : f32
    %762 = vector.broadcast %761 : f32 to vector<1x256xf32>
    %763 = vector.broadcast %cst_111 : f32 to vector<1x256xf32>
    %764 = arith.select %756, %762, %763 : vector<1x256xi1>, vector<1x256xf32>
    %765 = vector.extract_strided_slice %755 {offsets = [0, 0], sizes = [2, 256], strides = [1, 1]} : vector<2x512xf32> to vector<2x256xf32>
    %766 = vector.broadcast %760 : vector<1x256xf32> to vector<2x256xf32>
    %767 = arith.mulf %765, %766 : vector<2x256xf32>
    %768 = arith.addf %754, %767 : vector<2x256xf32>
    %769 = vector.extract_strided_slice %755 {offsets = [0, 256], sizes = [2, 256], strides = [1, 1]} : vector<2x512xf32> to vector<2x256xf32>
    %770 = vector.broadcast %764 : vector<1x256xf32> to vector<2x256xf32>
    %771 = arith.mulf %769, %770 : vector<2x256xf32>
    %772 = arith.addf %768, %771 : vector<2x256xf32>
    %c482_i32 = arith.constant 482 : i32
    %773 = tpu.dynamic_rotate %46 by %c482_i32 dim 1 : vector<2x512xf32>, i32 -> vector<2x512xf32>
    %774 = arith.andi %84, %99 : vector<1x256xi1>
    %c36 = arith.constant 36 : index
    %775 = memref.load %arg3[%c36] : memref<98xf32, #tpu.memory_space<smem>>
    %cst_112 = arith.constant 0.000000e+00 : f32
    %776 = vector.broadcast %775 : f32 to vector<1x256xf32>
    %777 = vector.broadcast %cst_112 : f32 to vector<1x256xf32>
    %778 = arith.select %774, %776, %777 : vector<1x256xi1>, vector<1x256xf32>
    %c85 = arith.constant 85 : index
    %779 = memref.load %arg3[%c85] : memref<98xf32, #tpu.memory_space<smem>>
    %cst_113 = arith.constant 0.000000e+00 : f32
    %780 = vector.broadcast %779 : f32 to vector<1x256xf32>
    %781 = vector.broadcast %cst_113 : f32 to vector<1x256xf32>
    %782 = arith.select %774, %780, %781 : vector<1x256xi1>, vector<1x256xf32>
    %783 = vector.extract_strided_slice %773 {offsets = [0, 0], sizes = [2, 256], strides = [1, 1]} : vector<2x512xf32> to vector<2x256xf32>
    %784 = vector.broadcast %778 : vector<1x256xf32> to vector<2x256xf32>
    %785 = arith.mulf %783, %784 : vector<2x256xf32>
    %786 = arith.addf %772, %785 : vector<2x256xf32>
    %787 = vector.extract_strided_slice %773 {offsets = [0, 256], sizes = [2, 256], strides = [1, 1]} : vector<2x512xf32> to vector<2x256xf32>
    %788 = vector.broadcast %782 : vector<1x256xf32> to vector<2x256xf32>
    %789 = arith.mulf %787, %788 : vector<2x256xf32>
    %790 = arith.addf %786, %789 : vector<2x256xf32>
    %c481_i32 = arith.constant 481 : i32
    %791 = tpu.dynamic_rotate %46 by %c481_i32 dim 1 : vector<2x512xf32>, i32 -> vector<2x512xf32>
    %792 = arith.andi %84, %104 : vector<1x256xi1>
    %c37 = arith.constant 37 : index
    %793 = memref.load %arg3[%c37] : memref<98xf32, #tpu.memory_space<smem>>
    %cst_114 = arith.constant 0.000000e+00 : f32
    %794 = vector.broadcast %793 : f32 to vector<1x256xf32>
    %795 = vector.broadcast %cst_114 : f32 to vector<1x256xf32>
    %796 = arith.select %792, %794, %795 : vector<1x256xi1>, vector<1x256xf32>
    %c86 = arith.constant 86 : index
    %797 = memref.load %arg3[%c86] : memref<98xf32, #tpu.memory_space<smem>>
    %cst_115 = arith.constant 0.000000e+00 : f32
    %798 = vector.broadcast %797 : f32 to vector<1x256xf32>
    %799 = vector.broadcast %cst_115 : f32 to vector<1x256xf32>
    %800 = arith.select %792, %798, %799 : vector<1x256xi1>, vector<1x256xf32>
    %801 = vector.extract_strided_slice %791 {offsets = [0, 0], sizes = [2, 256], strides = [1, 1]} : vector<2x512xf32> to vector<2x256xf32>
    %802 = vector.broadcast %796 : vector<1x256xf32> to vector<2x256xf32>
    %803 = arith.mulf %801, %802 : vector<2x256xf32>
    %804 = arith.addf %790, %803 : vector<2x256xf32>
    %805 = vector.extract_strided_slice %791 {offsets = [0, 256], sizes = [2, 256], strides = [1, 1]} : vector<2x512xf32> to vector<2x256xf32>
    %806 = vector.broadcast %800 : vector<1x256xf32> to vector<2x256xf32>
    %807 = arith.mulf %805, %806 : vector<2x256xf32>
    %808 = arith.addf %804, %807 : vector<2x256xf32>
    %c480_i32 = arith.constant 480 : i32
    %809 = tpu.dynamic_rotate %46 by %c480_i32 dim 1 : vector<2x512xf32>, i32 -> vector<2x512xf32>
    %810 = arith.andi %84, %109 : vector<1x256xi1>
    %c38 = arith.constant 38 : index
    %811 = memref.load %arg3[%c38] : memref<98xf32, #tpu.memory_space<smem>>
    %cst_116 = arith.constant 0.000000e+00 : f32
    %812 = vector.broadcast %811 : f32 to vector<1x256xf32>
    %813 = vector.broadcast %cst_116 : f32 to vector<1x256xf32>
    %814 = arith.select %810, %812, %813 : vector<1x256xi1>, vector<1x256xf32>
    %c87 = arith.constant 87 : index
    %815 = memref.load %arg3[%c87] : memref<98xf32, #tpu.memory_space<smem>>
    %cst_117 = arith.constant 0.000000e+00 : f32
    %816 = vector.broadcast %815 : f32 to vector<1x256xf32>
    %817 = vector.broadcast %cst_117 : f32 to vector<1x256xf32>
    %818 = arith.select %810, %816, %817 : vector<1x256xi1>, vector<1x256xf32>
    %819 = vector.extract_strided_slice %809 {offsets = [0, 0], sizes = [2, 256], strides = [1, 1]} : vector<2x512xf32> to vector<2x256xf32>
    %820 = vector.broadcast %814 : vector<1x256xf32> to vector<2x256xf32>
    %821 = arith.mulf %819, %820 : vector<2x256xf32>
    %822 = arith.addf %808, %821 : vector<2x256xf32>
    %823 = vector.extract_strided_slice %809 {offsets = [0, 256], sizes = [2, 256], strides = [1, 1]} : vector<2x512xf32> to vector<2x256xf32>
    %824 = vector.broadcast %818 : vector<1x256xf32> to vector<2x256xf32>
    %825 = arith.mulf %823, %824 : vector<2x256xf32>
    %826 = arith.addf %822, %825 : vector<2x256xf32>
    %c479_i32 = arith.constant 479 : i32
    %827 = tpu.dynamic_rotate %46 by %c479_i32 dim 1 : vector<2x512xf32>, i32 -> vector<2x512xf32>
    %828 = arith.andi %84, %114 : vector<1x256xi1>
    %c39 = arith.constant 39 : index
    %829 = memref.load %arg3[%c39] : memref<98xf32, #tpu.memory_space<smem>>
    %cst_118 = arith.constant 0.000000e+00 : f32
    %830 = vector.broadcast %829 : f32 to vector<1x256xf32>
    %831 = vector.broadcast %cst_118 : f32 to vector<1x256xf32>
    %832 = arith.select %828, %830, %831 : vector<1x256xi1>, vector<1x256xf32>
    %c88 = arith.constant 88 : index
    %833 = memref.load %arg3[%c88] : memref<98xf32, #tpu.memory_space<smem>>
    %cst_119 = arith.constant 0.000000e+00 : f32
    %834 = vector.broadcast %833 : f32 to vector<1x256xf32>
    %835 = vector.broadcast %cst_119 : f32 to vector<1x256xf32>
    %836 = arith.select %828, %834, %835 : vector<1x256xi1>, vector<1x256xf32>
    %837 = vector.extract_strided_slice %827 {offsets = [0, 0], sizes = [2, 256], strides = [1, 1]} : vector<2x512xf32> to vector<2x256xf32>
    %838 = vector.broadcast %832 : vector<1x256xf32> to vector<2x256xf32>
    %839 = arith.mulf %837, %838 : vector<2x256xf32>
    %840 = arith.addf %826, %839 : vector<2x256xf32>
    %841 = vector.extract_strided_slice %827 {offsets = [0, 256], sizes = [2, 256], strides = [1, 1]} : vector<2x512xf32> to vector<2x256xf32>
    %842 = vector.broadcast %836 : vector<1x256xf32> to vector<2x256xf32>
    %843 = arith.mulf %841, %842 : vector<2x256xf32>
    %844 = arith.addf %840, %843 : vector<2x256xf32>
    %c478_i32 = arith.constant 478 : i32
    %845 = tpu.dynamic_rotate %46 by %c478_i32 dim 1 : vector<2x512xf32>, i32 -> vector<2x512xf32>
    %846 = arith.andi %84, %119 : vector<1x256xi1>
    %c40 = arith.constant 40 : index
    %847 = memref.load %arg3[%c40] : memref<98xf32, #tpu.memory_space<smem>>
    %cst_120 = arith.constant 0.000000e+00 : f32
    %848 = vector.broadcast %847 : f32 to vector<1x256xf32>
    %849 = vector.broadcast %cst_120 : f32 to vector<1x256xf32>
    %850 = arith.select %846, %848, %849 : vector<1x256xi1>, vector<1x256xf32>
    %c89 = arith.constant 89 : index
    %851 = memref.load %arg3[%c89] : memref<98xf32, #tpu.memory_space<smem>>
    %cst_121 = arith.constant 0.000000e+00 : f32
    %852 = vector.broadcast %851 : f32 to vector<1x256xf32>
    %853 = vector.broadcast %cst_121 : f32 to vector<1x256xf32>
    %854 = arith.select %846, %852, %853 : vector<1x256xi1>, vector<1x256xf32>
    %855 = vector.extract_strided_slice %845 {offsets = [0, 0], sizes = [2, 256], strides = [1, 1]} : vector<2x512xf32> to vector<2x256xf32>
    %856 = vector.broadcast %850 : vector<1x256xf32> to vector<2x256xf32>
    %857 = arith.mulf %855, %856 : vector<2x256xf32>
    %858 = arith.addf %844, %857 : vector<2x256xf32>
    %859 = vector.extract_strided_slice %845 {offsets = [0, 256], sizes = [2, 256], strides = [1, 1]} : vector<2x512xf32> to vector<2x256xf32>
    %860 = vector.broadcast %854 : vector<1x256xf32> to vector<2x256xf32>
    %861 = arith.mulf %859, %860 : vector<2x256xf32>
    %862 = arith.addf %858, %861 : vector<2x256xf32>
    %c477_i32 = arith.constant 477 : i32
    %863 = tpu.dynamic_rotate %46 by %c477_i32 dim 1 : vector<2x512xf32>, i32 -> vector<2x512xf32>
    %864 = arith.andi %84, %124 : vector<1x256xi1>
    %c41 = arith.constant 41 : index
    %865 = memref.load %arg3[%c41] : memref<98xf32, #tpu.memory_space<smem>>
    %cst_122 = arith.constant 0.000000e+00 : f32
    %866 = vector.broadcast %865 : f32 to vector<1x256xf32>
    %867 = vector.broadcast %cst_122 : f32 to vector<1x256xf32>
    %868 = arith.select %864, %866, %867 : vector<1x256xi1>, vector<1x256xf32>
    %c90 = arith.constant 90 : index
    %869 = memref.load %arg3[%c90] : memref<98xf32, #tpu.memory_space<smem>>
    %cst_123 = arith.constant 0.000000e+00 : f32
    %870 = vector.broadcast %869 : f32 to vector<1x256xf32>
    %871 = vector.broadcast %cst_123 : f32 to vector<1x256xf32>
    %872 = arith.select %864, %870, %871 : vector<1x256xi1>, vector<1x256xf32>
    %873 = vector.extract_strided_slice %863 {offsets = [0, 0], sizes = [2, 256], strides = [1, 1]} : vector<2x512xf32> to vector<2x256xf32>
    %874 = vector.broadcast %868 : vector<1x256xf32> to vector<2x256xf32>
    %875 = arith.mulf %873, %874 : vector<2x256xf32>
    %876 = arith.addf %862, %875 : vector<2x256xf32>
    %877 = vector.extract_strided_slice %863 {offsets = [0, 256], sizes = [2, 256], strides = [1, 1]} : vector<2x512xf32> to vector<2x256xf32>
    %878 = vector.broadcast %872 : vector<1x256xf32> to vector<2x256xf32>
    %879 = arith.mulf %877, %878 : vector<2x256xf32>
    %880 = arith.addf %876, %879 : vector<2x256xf32>
    %c467_i32 = arith.constant 467 : i32
    %881 = tpu.dynamic_rotate %46 by %c467_i32 dim 1 : vector<2x512xf32>, i32 -> vector<2x512xf32>
    %882 = arith.andi %89, %94 : vector<1x256xi1>
    %c42 = arith.constant 42 : index
    %883 = memref.load %arg3[%c42] : memref<98xf32, #tpu.memory_space<smem>>
    %cst_124 = arith.constant 0.000000e+00 : f32
    %884 = vector.broadcast %883 : f32 to vector<1x256xf32>
    %885 = vector.broadcast %cst_124 : f32 to vector<1x256xf32>
    %886 = arith.select %882, %884, %885 : vector<1x256xi1>, vector<1x256xf32>
    %c91 = arith.constant 91 : index
    %887 = memref.load %arg3[%c91] : memref<98xf32, #tpu.memory_space<smem>>
    %cst_125 = arith.constant 0.000000e+00 : f32
    %888 = vector.broadcast %887 : f32 to vector<1x256xf32>
    %889 = vector.broadcast %cst_125 : f32 to vector<1x256xf32>
    %890 = arith.select %882, %888, %889 : vector<1x256xi1>, vector<1x256xf32>
    %891 = vector.extract_strided_slice %881 {offsets = [0, 0], sizes = [2, 256], strides = [1, 1]} : vector<2x512xf32> to vector<2x256xf32>
    %892 = vector.broadcast %886 : vector<1x256xf32> to vector<2x256xf32>
    %893 = arith.mulf %891, %892 : vector<2x256xf32>
    %894 = arith.addf %880, %893 : vector<2x256xf32>
    %895 = vector.extract_strided_slice %881 {offsets = [0, 256], sizes = [2, 256], strides = [1, 1]} : vector<2x512xf32> to vector<2x256xf32>
    %896 = vector.broadcast %890 : vector<1x256xf32> to vector<2x256xf32>
    %897 = arith.mulf %895, %896 : vector<2x256xf32>
    %898 = arith.addf %894, %897 : vector<2x256xf32>
    %c466_i32 = arith.constant 466 : i32
    %899 = tpu.dynamic_rotate %46 by %c466_i32 dim 1 : vector<2x512xf32>, i32 -> vector<2x512xf32>
    %900 = arith.andi %89, %99 : vector<1x256xi1>
    %c43 = arith.constant 43 : index
    %901 = memref.load %arg3[%c43] : memref<98xf32, #tpu.memory_space<smem>>
    %cst_126 = arith.constant 0.000000e+00 : f32
    %902 = vector.broadcast %901 : f32 to vector<1x256xf32>
    %903 = vector.broadcast %cst_126 : f32 to vector<1x256xf32>
    %904 = arith.select %900, %902, %903 : vector<1x256xi1>, vector<1x256xf32>
    %c92 = arith.constant 92 : index
    %905 = memref.load %arg3[%c92] : memref<98xf32, #tpu.memory_space<smem>>
    %cst_127 = arith.constant 0.000000e+00 : f32
    %906 = vector.broadcast %905 : f32 to vector<1x256xf32>
    %907 = vector.broadcast %cst_127 : f32 to vector<1x256xf32>
    %908 = arith.select %900, %906, %907 : vector<1x256xi1>, vector<1x256xf32>
    %909 = vector.extract_strided_slice %899 {offsets = [0, 0], sizes = [2, 256], strides = [1, 1]} : vector<2x512xf32> to vector<2x256xf32>
    %910 = vector.broadcast %904 : vector<1x256xf32> to vector<2x256xf32>
    %911 = arith.mulf %909, %910 : vector<2x256xf32>
    %912 = arith.addf %898, %911 : vector<2x256xf32>
    %913 = vector.extract_strided_slice %899 {offsets = [0, 256], sizes = [2, 256], strides = [1, 1]} : vector<2x512xf32> to vector<2x256xf32>
    %914 = vector.broadcast %908 : vector<1x256xf32> to vector<2x256xf32>
    %915 = arith.mulf %913, %914 : vector<2x256xf32>
    %916 = arith.addf %912, %915 : vector<2x256xf32>
    %c465_i32 = arith.constant 465 : i32
    %917 = tpu.dynamic_rotate %46 by %c465_i32 dim 1 : vector<2x512xf32>, i32 -> vector<2x512xf32>
    %918 = arith.andi %89, %104 : vector<1x256xi1>
    %c44 = arith.constant 44 : index
    %919 = memref.load %arg3[%c44] : memref<98xf32, #tpu.memory_space<smem>>
    %cst_128 = arith.constant 0.000000e+00 : f32
    %920 = vector.broadcast %919 : f32 to vector<1x256xf32>
    %921 = vector.broadcast %cst_128 : f32 to vector<1x256xf32>
    %922 = arith.select %918, %920, %921 : vector<1x256xi1>, vector<1x256xf32>
    %c93 = arith.constant 93 : index
    %923 = memref.load %arg3[%c93] : memref<98xf32, #tpu.memory_space<smem>>
    %cst_129 = arith.constant 0.000000e+00 : f32
    %924 = vector.broadcast %923 : f32 to vector<1x256xf32>
    %925 = vector.broadcast %cst_129 : f32 to vector<1x256xf32>
    %926 = arith.select %918, %924, %925 : vector<1x256xi1>, vector<1x256xf32>
    %927 = vector.extract_strided_slice %917 {offsets = [0, 0], sizes = [2, 256], strides = [1, 1]} : vector<2x512xf32> to vector<2x256xf32>
    %928 = vector.broadcast %922 : vector<1x256xf32> to vector<2x256xf32>
    %929 = arith.mulf %927, %928 : vector<2x256xf32>
    %930 = arith.addf %916, %929 : vector<2x256xf32>
    %931 = vector.extract_strided_slice %917 {offsets = [0, 256], sizes = [2, 256], strides = [1, 1]} : vector<2x512xf32> to vector<2x256xf32>
    %932 = vector.broadcast %926 : vector<1x256xf32> to vector<2x256xf32>
    %933 = arith.mulf %931, %932 : vector<2x256xf32>
    %934 = arith.addf %930, %933 : vector<2x256xf32>
    %c464_i32 = arith.constant 464 : i32
    %935 = tpu.dynamic_rotate %46 by %c464_i32 dim 1 : vector<2x512xf32>, i32 -> vector<2x512xf32>
    %936 = arith.andi %89, %109 : vector<1x256xi1>
    %c45 = arith.constant 45 : index
    %937 = memref.load %arg3[%c45] : memref<98xf32, #tpu.memory_space<smem>>
    %cst_130 = arith.constant 0.000000e+00 : f32
    %938 = vector.broadcast %937 : f32 to vector<1x256xf32>
    %939 = vector.broadcast %cst_130 : f32 to vector<1x256xf32>
    %940 = arith.select %936, %938, %939 : vector<1x256xi1>, vector<1x256xf32>
    %c94 = arith.constant 94 : index
    %941 = memref.load %arg3[%c94] : memref<98xf32, #tpu.memory_space<smem>>
    %cst_131 = arith.constant 0.000000e+00 : f32
    %942 = vector.broadcast %941 : f32 to vector<1x256xf32>
    %943 = vector.broadcast %cst_131 : f32 to vector<1x256xf32>
    %944 = arith.select %936, %942, %943 : vector<1x256xi1>, vector<1x256xf32>
    %945 = vector.extract_strided_slice %935 {offsets = [0, 0], sizes = [2, 256], strides = [1, 1]} : vector<2x512xf32> to vector<2x256xf32>
    %946 = vector.broadcast %940 : vector<1x256xf32> to vector<2x256xf32>
    %947 = arith.mulf %945, %946 : vector<2x256xf32>
    %948 = arith.addf %934, %947 : vector<2x256xf32>
    %949 = vector.extract_strided_slice %935 {offsets = [0, 256], sizes = [2, 256], strides = [1, 1]} : vector<2x512xf32> to vector<2x256xf32>
    %950 = vector.broadcast %944 : vector<1x256xf32> to vector<2x256xf32>
    %951 = arith.mulf %949, %950 : vector<2x256xf32>
    %952 = arith.addf %948, %951 : vector<2x256xf32>
    %c463_i32 = arith.constant 463 : i32
    %953 = tpu.dynamic_rotate %46 by %c463_i32 dim 1 : vector<2x512xf32>, i32 -> vector<2x512xf32>
    %954 = arith.andi %89, %114 : vector<1x256xi1>
    %c46 = arith.constant 46 : index
    %955 = memref.load %arg3[%c46] : memref<98xf32, #tpu.memory_space<smem>>
    %cst_132 = arith.constant 0.000000e+00 : f32
    %956 = vector.broadcast %955 : f32 to vector<1x256xf32>
    %957 = vector.broadcast %cst_132 : f32 to vector<1x256xf32>
    %958 = arith.select %954, %956, %957 : vector<1x256xi1>, vector<1x256xf32>
    %c95 = arith.constant 95 : index
    %959 = memref.load %arg3[%c95] : memref<98xf32, #tpu.memory_space<smem>>
    %cst_133 = arith.constant 0.000000e+00 : f32
    %960 = vector.broadcast %959 : f32 to vector<1x256xf32>
    %961 = vector.broadcast %cst_133 : f32 to vector<1x256xf32>
    %962 = arith.select %954, %960, %961 : vector<1x256xi1>, vector<1x256xf32>
    %963 = vector.extract_strided_slice %953 {offsets = [0, 0], sizes = [2, 256], strides = [1, 1]} : vector<2x512xf32> to vector<2x256xf32>
    %964 = vector.broadcast %958 : vector<1x256xf32> to vector<2x256xf32>
    %965 = arith.mulf %963, %964 : vector<2x256xf32>
    %966 = arith.addf %952, %965 : vector<2x256xf32>
    %967 = vector.extract_strided_slice %953 {offsets = [0, 256], sizes = [2, 256], strides = [1, 1]} : vector<2x512xf32> to vector<2x256xf32>
    %968 = vector.broadcast %962 : vector<1x256xf32> to vector<2x256xf32>
    %969 = arith.mulf %967, %968 : vector<2x256xf32>
    %970 = arith.addf %966, %969 : vector<2x256xf32>
    %c462_i32 = arith.constant 462 : i32
    %971 = tpu.dynamic_rotate %46 by %c462_i32 dim 1 : vector<2x512xf32>, i32 -> vector<2x512xf32>
    %972 = arith.andi %89, %119 : vector<1x256xi1>
    %c47 = arith.constant 47 : index
    %973 = memref.load %arg3[%c47] : memref<98xf32, #tpu.memory_space<smem>>
    %cst_134 = arith.constant 0.000000e+00 : f32
    %974 = vector.broadcast %973 : f32 to vector<1x256xf32>
    %975 = vector.broadcast %cst_134 : f32 to vector<1x256xf32>
    %976 = arith.select %972, %974, %975 : vector<1x256xi1>, vector<1x256xf32>
    %c96 = arith.constant 96 : index
    %977 = memref.load %arg3[%c96] : memref<98xf32, #tpu.memory_space<smem>>
    %cst_135 = arith.constant 0.000000e+00 : f32
    %978 = vector.broadcast %977 : f32 to vector<1x256xf32>
    %979 = vector.broadcast %cst_135 : f32 to vector<1x256xf32>
    %980 = arith.select %972, %978, %979 : vector<1x256xi1>, vector<1x256xf32>
    %981 = vector.extract_strided_slice %971 {offsets = [0, 0], sizes = [2, 256], strides = [1, 1]} : vector<2x512xf32> to vector<2x256xf32>
    %982 = vector.broadcast %976 : vector<1x256xf32> to vector<2x256xf32>
    %983 = arith.mulf %981, %982 : vector<2x256xf32>
    %984 = arith.addf %970, %983 : vector<2x256xf32>
    %985 = vector.extract_strided_slice %971 {offsets = [0, 256], sizes = [2, 256], strides = [1, 1]} : vector<2x512xf32> to vector<2x256xf32>
    %986 = vector.broadcast %980 : vector<1x256xf32> to vector<2x256xf32>
    %987 = arith.mulf %985, %986 : vector<2x256xf32>
    %988 = arith.addf %984, %987 : vector<2x256xf32>
    %c461_i32 = arith.constant 461 : i32
    %989 = tpu.dynamic_rotate %46 by %c461_i32 dim 1 : vector<2x512xf32>, i32 -> vector<2x512xf32>
    %990 = arith.andi %89, %124 : vector<1x256xi1>
    %c48 = arith.constant 48 : index
    %991 = memref.load %arg3[%c48] : memref<98xf32, #tpu.memory_space<smem>>
    %cst_136 = arith.constant 0.000000e+00 : f32
    %992 = vector.broadcast %991 : f32 to vector<1x256xf32>
    %993 = vector.broadcast %cst_136 : f32 to vector<1x256xf32>
    %994 = arith.select %990, %992, %993 : vector<1x256xi1>, vector<1x256xf32>
    %c97 = arith.constant 97 : index
    %995 = memref.load %arg3[%c97] : memref<98xf32, #tpu.memory_space<smem>>
    %cst_137 = arith.constant 0.000000e+00 : f32
    %996 = vector.broadcast %995 : f32 to vector<1x256xf32>
    %997 = vector.broadcast %cst_137 : f32 to vector<1x256xf32>
    %998 = arith.select %990, %996, %997 : vector<1x256xi1>, vector<1x256xf32>
    %999 = vector.extract_strided_slice %989 {offsets = [0, 0], sizes = [2, 256], strides = [1, 1]} : vector<2x512xf32> to vector<2x256xf32>
    %1000 = vector.broadcast %994 : vector<1x256xf32> to vector<2x256xf32>
    %1001 = arith.mulf %999, %1000 : vector<2x256xf32>
    %1002 = arith.addf %988, %1001 : vector<2x256xf32>
    %1003 = vector.extract_strided_slice %989 {offsets = [0, 256], sizes = [2, 256], strides = [1, 1]} : vector<2x512xf32> to vector<2x256xf32>
    %1004 = vector.broadcast %998 : vector<1x256xf32> to vector<2x256xf32>
    %1005 = arith.mulf %1003, %1004 : vector<2x256xf32>
    %1006 = arith.addf %1002, %1005 : vector<2x256xf32>
    %1007 = arith.negf %1006 : vector<2x256xf32>
    %1008 = math.exp %1007 : vector<2x256xf32>
    %cst_138 = arith.constant 1.000000e+00 : f32
    %1009 = vector.broadcast %cst_138 : f32 to vector<2x256xf32>
    %1010 = arith.addf %1009, %1008 : vector<2x256xf32>
    %1011 = arith.divf %1009, %1010 : vector<2x256xf32>
    %c0_139 = arith.constant 0 : index
    %c0_140 = arith.constant 0 : index
    %1012 = vector.load %arg4[%c0_139, %c0_140] : memref<2x256xf32, #tpu.memory_space<vmem>>, vector<2x256xf32>
    tpu.vector_store %arg4[%c0_139, %c0_140], %1011 {strides = array<i32>} : memref<2x256xf32, #tpu.memory_space<vmem>>, vector<2x256xf32>,
    return
  }
  func.func @transform_0(%arg0: i32) -> (i32, i32, i32) {
    %c0_i32 = arith.constant 0 : i32
    %c0_i32_0 = arith.constant 0 : i32
    %c0_i32_1 = arith.constant 0 : i32
    return %arg0, %c0_i32, %c0_i32_0 : i32, i32, i32
  }
  func.func @transform_1(%arg0: i32) -> (i32, i32) {
    %c0_i32 = arith.constant 0 : i32
    %c0_i32_0 = arith.constant 0 : i32
    %c0_i32_1 = arith.constant 0 : i32
    return %c0_i32, %c0_i32_0 : i32, i32
  }
  func.func @transform_2(%arg0: i32) -> i32 {
    %c0_i32 = arith.constant 0 : i32
    %c0_i32_0 = arith.constant 0 : i32
    return %c0_i32 : i32
  }
  func.func @transform_3(%arg0: i32) -> (i32, i32) {
    %c0_i32 = arith.constant 0 : i32
    %c0_i32_0 = arith.constant 0 : i32
    return %arg0, %c0_i32 : i32, i32
  }
}

</mosaic_0001>

<bundles_post_ra>
// kernel: tpu_custom_call.1
= control target key start
LH: loop header
LB: loop body
LE: loop exit
PB: predicated region body
PF: predicated region fallthrough
CT: control target
= control target key end

     0   :  { %s5954_s0 = inlined_call_operand.hbm [shape: f32[2,4,256], index: 0, kind: input, shape index: {}]   ;;  %s5955_s1 = inlined_call_operand.vmem [shape: f32[5,4], index: 1, kind: input, shape index: {}]   ;;  %s5956_s2 = inlined_call_operand.vmem [shape: f32[98], index: 2, kind: input, shape index: {}]   ;;  %s5957_s3 = inlined_call_operand.hbm [shape: f32[2,256], index: 3, kind: output, shape index: {}]  }
   0x1   :  { %6205 = sst [smem:[#allocation151_spill]] %s5957_s3 }
   0x2   :  { %8 = vsyncpa [#allocation3], 0 }
   0x3   :  { %9 = vsyncpa [#allocation5], 0 }
   0x4   :  { %10 = vsyncpa [#allocation4], 0  ;;  %s2211_s12 = smov [#allocation2]   ;;  %s31_s16 = sshll.u32 %s5956_s2, 4  ;;  %s32_s16 = int_to_ptr.vmem [resolvable:$true] %s31_s16 }
   0x5   :  { %s16_s13 = sshll.u32 %s2211_s12, 4  ;;  %s2149_s19 = scalar_lea.hbm %s5954_s0, 256  ;;  %s17_s13 = int_to_ptr.vmem [resolvable:$true] %s16_s13 }
   0x6   :  { %p2150_p0 = scmp.ne.s32.totalorder %s5954_s0, %s2149_s19  ;;  %p2153_p1 = scmp.lt.u32.totalorder %s2149_s19, %s5954_s0 }
   0x8   :  { %p2155_p2 = pnand %p2153_p1, %p2150_p0 }
   0xa   :  { %2158 = shalt.err (!%p2155_p2)
}
   0xb   :  { %s2159_s24 = scalar_lea.vmem %s17_s13, 256  ;;  %p2164_p4 = scmp.lt.s32.totalorder %s17_s13, %s17_s13 }
   0xc   :  { %p2160_p3 = scmp.ne.s32.totalorder %s17_s13, %s2159_s24  ;;  %p2165_p5 = scmp.lt.s32.totalorder %s2159_s24, %s2159_s24 }
   0xe   :  { %p2166_p6 = por %p2165_p5, %p2164_p4 }
  0x10   :  { %p2167_p7 = pnand %p2166_p6, %p2160_p3 }
  0x12   :  { %2170 = shalt.err (!%p2167_p7)
}
  0x13   :  { %s2212_s2 = smov 128   ;;  %s2213_s25 = smov 8  }
  0x14   :  { %22 = dma.hbm_to_vmem [thread:$0]  %s5954_s0, 256, %s17_s13, [#allocation3], %s2212_s2, %s2212_s2, %s2213_s25  }
  0x15   :  { %s2171_s28 = scalar_lea.vmem %s32_s16, 16  ;;  %p2176_p9 = scmp.lt.s32.totalorder %s32_s16, %s32_s16 }
  0x16   :  { %p2172_p8 = scmp.ne.s32.totalorder %s32_s16, %s2171_s28  ;;  %p2177_p10 = scmp.lt.s32.totalorder %s2171_s28, %s2171_s28 }
  0x18   :  { %p2178_p11 = por %p2177_p10, %p2176_p9 }
  0x1a   :  { %p2179_p12 = pnand %p2178_p11, %p2172_p8 }
  0x1c   :  { %2182 = shalt.err (!%p2179_p12)
}
  0x1d   :  { %s2214_s29 = smov [#allocation6]  }
  0x1e   :  { %34 = dma.vmem_to_smem %s32_s16, 16, %s2214_s29, [#allocation5]  }
  0x1f   :  { %2205 = dma.done.wait [#allocation3], 256  }
  0x20   :  { %2206 = vsyncadd [#allocation3], 4294967040 }
  0x21   :  { %2207 = dma.done.wait [#allocation5], 16  }
  0x22   :  { %2208 = vsyncadd [#allocation5], 4294967280 }
  0x23   :  { %41 = sfence }
  0x24   :  { %v2306_v0 = vld [vmem:[#allocation2] sm:$0xff]  ;;  %vm50_vm0 = vcmask 1043456   ;;  %v2308_v1 = vld [vmem:[#allocation2 + $0x8] sm:$0xff]  ;;  %v2215_v11 = vmov 0.0   ;;  %vm2216_vm1 = vmmov 0   ;;  %v72_v12 = vlaneseq  ;;  %s2223_s6 = smov 51  }
  0x25   :  { %v46_v2 = vcombine.high %v2306_v0, %v2306_v0  ;;  %v51_v3 = vsel %vm50_vm0, %v2306_v0, 0.0  ;;  %v47_v4 = vcombine.high %v2308_v1, %v2308_v1  ;;  %v56_v6 = vsel %vm50_vm0, %v2308_v1, 0.0  ;;  %v64_v10 = vld [vmem:[%s5955_s1] sm:$0xf]  ;;  %2061 = vmatprep.subr.mxu0 %v2215_v11  ;;  %2063 = vmatprep.mubr.msk.f32.mxu0 %vm2216_vm1, %v2215_v11  ;;  %v1955_v25 = vld [vmem:[%s5955_s1 + $0x4] ss:$0 sm:$0xff] }
  0x26   :  { %2062 = vmatpush3.msk.msra.mxu0 %vm50_vm0, %v64_v10  ;;  %v2324_v13 = vand.u32 127, %v72_v12  ;;  %v2326_v14 = vshrl.u32 %v72_v12, 7  ;;  %vm82_vm2 = vcmask 1041409   ;;  %vm84_vm3 = vcmask 31744   ;;  %s2222_s1 = smov 49   ;;  %s2224_s7 = smov 48  }
  0x27   :  { %v52_v5 = vsel %vm50_vm0, %v46_v2, 0.0  ;;  %v57_v7 = vsel %vm50_vm0, %v47_v4, 0.0  ;;  %v2217_v23 = vmov 2   ;;  %v2218_v24 = vmov 0   ;;  %s2225_s8 = smov 47   ;;  %s2226_s9 = smov 50  }
  0x28   :  { %v53_v8 = vadd.f32 %v52_v5, %v51_v3  ;;  %v58_v9 = vadd.f32 %v57_v7, %v56_v6  ;;  %v76_v16 = vsub.s32 %v2324_v13, %v2326_v14  ;;  %2132 = vset.pattern.permute.xlu0 %v2217_v23  ;;  %2130 = vset.pattern.permute.xlu1 %v2218_v24  ;;  %v2219_v33 = vmov 1   ;;  %s2227_s10 = smov 46   ;;  %s2228_s11 = smov 45  }
  0x29   :  { %v2220_v34 = vmov 3   ;;  %v2221_v35 = vmov 839922192   ;;  %s2229_s12 = smov 35   ;;  %s2230_s13 = smov 34  }
  0x2a   :  { %54 = vadd.xlane.f32.xlu0 %v53_v8  ;;  %v171_v36 = vunpack.c.l.s4 %v2221_v35  ;;  %s2231_s14 = smov 33   ;;  %s2232_s15 = smov 32  }
  0x2b   :  { %s2233_s16 = smov 31   ;;  %s2234_s17 = smov 30  }
  0x2c   :  { %v172_v37 = vunpack.c.0.s8 %v171_v36  ;;  %s2235_s18 = smov 29   ;;  %s2236_s19 = smov 19  }
  0x2d   :  { %s2237_s20 = smov 18   ;;  %s2238_s21 = smov 17  }
  0x2e   :  { %59 = vadd.xlane.f32.xlu0 %v58_v9  ;;  %v175_v38 = vsub.s32 %v172_v37, %v2326_v14  ;;  %s2239_s22 = smov 16   ;;  %s2240_s23 = smov 15  }
  0x2f   :  { %s2241_s24 = smov 14   ;;  %s2242_s2 = smov 13  }
  0x30   :  { %s2243_s25 = smov 3   ;;  %s5958_s26 = smov 2  }
  0x31   :  { %s5960_s27 = smov 1   ;;  %s6074_s28 = smov 127  }
  0x32   :  { %s5962_s29 = smov 126   ;;  %s5964_s0 = smov 125  }
  0x33   :  { %s5966_s30 = smov 115   ;;  %s5968_s4 = smov 114  }
  0x34   :  { %s5970_s5 = smov 113   ;;  %s3220_s3 = sld [smem:[#allocation6 + $0x47]] }
  0xb7   :  { %v55_v15 = vpop.xlane.xlu0 %54 }
  0xb8   :  { %v62_v17 = vmul.f32 0.00390625, %v55_v15 }
  0xba   :  { %v77_v20 = vrot.slane %v62_v17, %v76_v16 }
  0xbb   :  { %v60_v18 = vpop.xlane.xlu0 %59 }
  0xbc   :  { %v63_v19 = vmul.f32 0.00390625, %v60_v18 }
  0xbe   :  { %v81_v21 = vrot.slane %v63_v19, %v76_v16  ;;  %v273_v19 = vsub.s32 0, %v2326_v14 }
  0xc0   :  { %v83_v22 = vsel %vm82_vm2, %v81_v21, %v77_v20 }
  0xc1   :  { %2064 = vmatmul.mubr.msk.f32.vlgmr.msra.gmra.mrb[0].mxu0 %vm84_vm3, %v83_v22 }
 0x194   :  { %v156_v26 = vpop.f32.mrb[0].mxu0 }
 0x195   :  { %v157_v27 = vadd.f32 %v1955_v25, %v156_v26  ;;  %v2065_v28 = vpop.f32.mrb[1].mxu0 }
 0x197   :  { %v1958_v29 = vmul.f32 -1.442695, %v157_v27 }
 0x199   :  { %2137 = vpow2.f32 %v1958_v29 }
 0x1a3   :  { %v2138_v30 = vpop.eup %2137 }
 0x1a4   :  { %v163_v31 = vadd.f32 1.0, %v2138_v30 }
 0x1a6   :  { %2139 = vrcp.f32 %v163_v31 }
 0x1b0   :  { %v2140_v32 = vpop.eup %2139 }
 0x1b1   :  { %212 = vperm.xlu0 %2132, %v2140_v32   ;;  %168 = vperm.xlu1 %2130, %v2140_v32  }
 0x1b5   :  { %2131 = vset.pattern.permute.xlu1 %v2219_v33  ;;  %2134 = vset.pattern.permute.xlu0 %v2220_v34 }
 0x1b6   :  { %185 = vperm.xlu1 %2131, %v2140_v32  }
 0x1ba   :  { %2133 = vset.pattern.permute.xlu1 %v2220_v34 }
 0x1bb   :  { %240 = vperm.xlu1 %2133, %v2140_v32  }
 0x230   :  { %v213_v39 = vpop.permute.xlu0 %212  ;;  %v169_v40 = vpop.permute.xlu1 %168 }
 0x231   :  { %v220_v41 = vrot.slane %v213_v39, %v175_v38  ;;  %v176_v44 = vrot.slane %v169_v40, %v175_v38 }
 0x233   :  { %v222_v42 = vrot.slane %v220_v41, 7  ;;  %v221_v43 = vrot.slane %v220_v41, 6  ;;  %v177_v49 = vrot.slane %v176_v44, 1  ;;  %v180_v2 = vmul.f32 %v176_v44, %v2306_v0 }
 0x235   :  { %v186_v45 = vpop.permute.xlu1 %185  ;;  %v226_v46 = vmul.f32 %v222_v42, %v2308_v1  ;;  %v225_v48 = vmul.f32 %v221_v43, %v2306_v0  ;;  %v181_v58 = vmul.f32 %v177_v49, %v2308_v1 }
 0x236   :  { %v193_v47 = vrot.slane %v186_v45, %v175_v38 }
 0x237   :  { %v231_v52 = vrot.slane %v226_v46, 6  ;;  %v229_v57 = vrot.slane %v225_v48, 6 }
 0x238   :  { %v194_v50 = vrot.slane %v193_v47, 7  ;;  %v198_v51 = vmul.f32 %v193_v47, %v2308_v1 }
 0x239   :  { %v232_v63 = vrot.slane %v231_v52, 4  ;;  %v230_v8 = vrot.slane %v229_v57, 4 }
 0x23a   :  { %v197_v53 = vmul.f32 %v194_v50, %v2306_v0  ;;  %v203_v54 = vrot.slane %v198_v51, 5  ;;  %v241_v55 = vpop.permute.xlu1 %240 }
 0x23b   :  { %v248_v56 = vrot.slane %v241_v55, %v175_v38 }
 0x23c   :  { %v201_v59 = vrot.slane %v197_v53, 5  ;;  %v204_v60 = vrot.slane %v203_v54, 4 }
 0x23d   :  { %v249_v61 = vrot.slane %v248_v56, 5  ;;  %v250_v62 = vrot.slane %v248_v56, 6 }
 0x23e   :  { %v202_v3 = vrot.slane %v201_v59, 4  ;;  %v208_v4 = vadd.f32 %v204_v60, %v181_v58  ;;  %v210_v5 = vmax.f32 %v181_v58, %v204_v60 }
 0x23f   :  { %v253_v6 = vmul.f32 %v249_v61, %v2306_v0  ;;  %v254_v7 = vmul.f32 %v250_v62, %v2308_v1  ;;  %v277_v0 = vsub.s32 4, %v2326_v14 }
 0x240   :  { %v207_v9 = vadd.f32 %v202_v3, %v180_v2  ;;  %v209_v10 = vmax.f32 %v180_v2, %v202_v3  ;;  %v236_v11 = vadd.f32 %v232_v63, %v208_v4  ;;  %v238_v18 = vmax.f32 %v210_v5, %v232_v63 }
 0x241   :  { %v257_v12 = vrot.slane %v253_v6, 7  ;;  %v259_v15 = vrot.slane %v254_v7, 7 }
 0x242   :  { %v235_v16 = vadd.f32 %v230_v8, %v207_v9  ;;  %v237_v17 = vmax.f32 %v209_v10, %v230_v8 }
 0x243   :  { %v258_v20 = vrot.slane %v257_v12, 4  ;;  %v260_v21 = vrot.slane %v259_v15, 4 }
 0x245   :  { %v263_v22 = vadd.f32 %v258_v20, %v235_v16  ;;  %v264_v23 = vadd.f32 %v260_v21, %v236_v11  ;;  %v265_v24 = vmax.f32 %v237_v17, %v258_v20  ;;  %v266_v25 = vmax.f32 %v238_v18, %v260_v21 }
 0x247   :  { %v267_v1 = vmul.f32 0.25, %v263_v22  ;;  %v268_v26 = vmul.f32 0.25, %v264_v23  ;;  %v296_v27 = vrot.slane %v265_v24, %v273_v19  ;;  %v304_v28 = vrot.slane %v266_v25, %v273_v19 }
 0x248   :  { %v300_v33 = vrot.slane %v265_v24, %v277_v0  ;;  %v308_v34 = vrot.slane %v266_v25, %v277_v0 }
 0x249   :  { %v274_v29 = vrot.slane %v267_v1, %v273_v19  ;;  %v278_v30 = vrot.slane %v267_v1, %v277_v0  ;;  %v282_v31 = vrot.slane %v268_v26, %v273_v19  ;;  %v286_v32 = vrot.slane %v268_v26, %v277_v0 }
 0x24a   :  { %v2346_v35 = vsel %vm82_vm2, %v304_v28, %v296_v27  ;;  %v2359_v14 = vsel %vm82_vm2, %v308_v34, %v300_v33 }
 0x24b   :  { %6206 = vst [vmem:[#allocation11_spill] sm:$0xff] %v2346_v35  ;;  %v2349_v36 = vsel %vm82_vm2, %v282_v31, %v274_v29  ;;  %v2352_v37 = vsel %vm82_vm2, %v286_v32, %v278_v30  ;;  %475 = vrot.lane.b32.xlu0 %v2346_v35, %s2222_s1  ;;  %413 = vrot.lane.b32.xlu1 %v2346_v35, %s2223_s6  ;;  %6207 = vst [vmem:[#allocation12_spill] sm:$0xff] %v2359_v14 }
 0x24f   :  { %506 = vrot.lane.b32.xlu0 %v2346_v35, %s2224_s7  ;;  %415 = vrot.lane.b32.xlu1 %v2359_v14, %s2223_s6 }
 0x253   :  { %537 = vrot.lane.b32.xlu0 %v2346_v35, %s2225_s8  ;;  %444 = vrot.lane.b32.xlu1 %v2346_v35, %s2226_s9 }
 0x257   :  { %568 = vrot.lane.b32.xlu0 %v2346_v35, %s2227_s10  ;;  %446 = vrot.lane.b32.xlu1 %v2359_v14, %s2226_s9 }
 0x25b   :  { %599 = vrot.lane.b32.xlu0 %v2346_v35, %s2228_s11  ;;  %477 = vrot.lane.b32.xlu1 %v2359_v14, %s2222_s1 }
 0x25f   :  { %630 = vrot.lane.b32.xlu0 %v2346_v35, %s2229_s12  ;;  %508 = vrot.lane.b32.xlu1 %v2359_v14, %s2224_s7 }
 0x263   :  { %661 = vrot.lane.b32.xlu0 %v2346_v35, %s2230_s13  ;;  %539 = vrot.lane.b32.xlu1 %v2359_v14, %s2225_s8 }
 0x267   :  { %692 = vrot.lane.b32.xlu0 %v2346_v35, %s2231_s14  ;;  %570 = vrot.lane.b32.xlu1 %v2359_v14, %s2227_s10 }
 0x26b   :  { %723 = vrot.lane.b32.xlu0 %v2346_v35, %s2232_s15  ;;  %601 = vrot.lane.b32.xlu1 %v2359_v14, %s2228_s11 }
 0x26f   :  { %754 = vrot.lane.b32.xlu0 %v2346_v35, %s2233_s16  ;;  %632 = vrot.lane.b32.xlu1 %v2359_v14, %s2229_s12 }
 0x273   :  { %785 = vrot.lane.b32.xlu0 %v2346_v35, %s2234_s17  ;;  %663 = vrot.lane.b32.xlu1 %v2359_v14, %s2230_s13 }
 0x277   :  { %816 = vrot.lane.b32.xlu0 %v2346_v35, %s2235_s18  ;;  %694 = vrot.lane.b32.xlu1 %v2359_v14, %s2231_s14 }
 0x27b   :  { %847 = vrot.lane.b32.xlu0 %v2346_v35, %s2236_s19  ;;  %725 = vrot.lane.b32.xlu1 %v2359_v14, %s2232_s15 }
 0x27f   :  { %878 = vrot.lane.b32.xlu0 %v2346_v35, %s2237_s20  ;;  %756 = vrot.lane.b32.xlu1 %v2359_v14, %s2233_s16 }
 0x283   :  { %909 = vrot.lane.b32.xlu0 %v2346_v35, %s2238_s21  ;;  %787 = vrot.lane.b32.xlu1 %v2359_v14, %s2234_s17 }
 0x287   :  { %940 = vrot.lane.b32.xlu0 %v2346_v35, %s2239_s22  ;;  %818 = vrot.lane.b32.xlu1 %v2359_v14, %s2235_s18 }
 0x28b   :  { %971 = vrot.lane.b32.xlu0 %v2346_v35, %s2240_s23  ;;  %849 = vrot.lane.b32.xlu1 %v2359_v14, %s2236_s19 }
 0x28f   :  { %1002 = vrot.lane.b32.xlu0 %v2346_v35, %s2241_s24  ;;  %880 = vrot.lane.b32.xlu1 %v2359_v14, %s2237_s20 }
 0x293   :  { %1033 = vrot.lane.b32.xlu0 %v2346_v35, %s2242_s2  ;;  %911 = vrot.lane.b32.xlu1 %v2359_v14, %s2238_s21 }
 0x297   :  { %1064 = vrot.lane.b32.xlu0 %v2346_v35, %s2243_s25  ;;  %942 = vrot.lane.b32.xlu1 %v2359_v14, %s2239_s22 }
 0x29b   :  { %1095 = vrot.lane.b32.xlu0 %v2346_v35, %s5958_s26  ;;  %973 = vrot.lane.b32.xlu1 %v2359_v14, %s2240_s23 }
 0x29f   :  { %1126 = vrot.lane.b32.xlu0 %v2346_v35, %s5960_s27  ;;  %1004 = vrot.lane.b32.xlu1 %v2359_v14, %s2241_s24 }
 0x2a3   :  { %1175 = vrot.lane.b32.xlu0 %v2346_v35, %s6074_s28  ;;  %1035 = vrot.lane.b32.xlu1 %v2359_v14, %s2242_s2 }
 0x2a7   :  { %1206 = vrot.lane.b32.xlu0 %v2346_v35, %s5962_s29  ;;  %1066 = vrot.lane.b32.xlu1 %v2359_v14, %s2243_s25 }
 0x2ab   :  { %1237 = vrot.lane.b32.xlu0 %v2346_v35, %s5964_s0  ;;  %1097 = vrot.lane.b32.xlu1 %v2359_v14, %s5958_s26  ;;  %s5972_s26 = smov 112  }
 0x2af   :  { %1268 = vrot.lane.b32.xlu0 %v2346_v35, %s5966_s30  ;;  %1128 = vrot.lane.b32.xlu1 %v2359_v14, %s5960_s27  ;;  %s5974_s27 = smov 111  }
 0x2b3   :  { %1299 = vrot.lane.b32.xlu0 %v2346_v35, %s5968_s4  ;;  %1177 = vrot.lane.b32.xlu1 %v2359_v14, %s6074_s28 }
 0x2b7   :  { %1330 = vrot.lane.b32.xlu0 %v2346_v35, %s5970_s5  ;;  %1208 = vrot.lane.b32.xlu1 %v2359_v14, %s5962_s29  ;;  %s5976_s29 = smov 110  }
 0x2bb   :  { %1361 = vrot.lane.b32.xlu0 %v2346_v35, %s5972_s26  ;;  %1239 = vrot.lane.b32.xlu1 %v2359_v14, %s5964_s0  ;;  %s5978_s0 = smov 109  }
 0x2bd   :  { %v2473_v38 = vpop.permute.xlu0 %475  ;;  %v2475_v39 = vpop.permute.xlu1 %413 }
 0x2bf   :  { %1392 = vrot.lane.b32.xlu0 %v2346_v35, %s5974_s27  ;;  %1270 = vrot.lane.b32.xlu1 %v2359_v14, %s5966_s30  ;;  %s5980_s30 = smov 99  }
 0x2c1   :  { %v2481_v40 = vpop.permute.xlu0 %506  ;;  %v2483_v41 = vpop.permute.xlu1 %415 }
 0x2c3   :  { %1423 = vrot.lane.b32.xlu0 %v2346_v35, %s5976_s29  ;;  %1301 = vrot.lane.b32.xlu1 %v2359_v14, %s5968_s4  ;;  %s5982_s4 = smov 98  }
 0x2c5   :  { %v2489_v42 = vpop.permute.xlu0 %537  ;;  %v2491_v43 = vpop.permute.xlu1 %444 }
 0x2c7   :  { %1454 = vrot.lane.b32.xlu0 %v2346_v35, %s5978_s0  ;;  %1332 = vrot.lane.b32.xlu1 %v2359_v14, %s5970_s5  ;;  %s5984_s5 = smov 97  }
 0x2c9   :  { %v2497_v44 = vpop.permute.xlu0 %568  ;;  %v2499_v45 = vpop.permute.xlu1 %446 }
 0x2cb   :  { %1485 = vrot.lane.b32.xlu0 %v2346_v35, %s5980_s30  ;;  %1363 = vrot.lane.b32.xlu1 %v2359_v14, %s5972_s26  ;;  %s5986_s26 = smov 96  }
 0x2cd   :  { %v2505_v46 = vpop.permute.xlu0 %599  ;;  %v2507_v47 = vpop.permute.xlu1 %477 }
 0x2cf   :  { %1516 = vrot.lane.b32.xlu0 %v2346_v35, %s5982_s4  ;;  %1394 = vrot.lane.b32.xlu1 %v2359_v14, %s5974_s27  ;;  %s5988_s27 = smov 95  }
 0x2d1   :  { %v2513_v48 = vpop.permute.xlu0 %630  ;;  %v2515_v49 = vpop.permute.xlu1 %508 }
 0x2d3   :  { %1547 = vrot.lane.b32.xlu0 %v2346_v35, %s5984_s5  ;;  %1425 = vrot.lane.b32.xlu1 %v2359_v14, %s5976_s29  ;;  %s5990_s29 = smov 94  }
 0x2d5   :  { %v2521_v50 = vpop.permute.xlu0 %661  ;;  %v2523_v51 = vpop.permute.xlu1 %539 }
 0x2d6   :  { %6208 = vst [vmem:[#allocation13_spill] sm:$0xff] %v2521_v50 }
 0x2d7   :  { %1578 = vrot.lane.b32.xlu0 %v2346_v35, %s5986_s26  ;;  %1456 = vrot.lane.b32.xlu1 %v2359_v14, %s5978_s0  ;;  %s6071_s0 = smov 93  }
 0x2d9   :  { %v2529_v52 = vpop.permute.xlu0 %692  ;;  %v2531_v53 = vpop.permute.xlu1 %570 }
 0x2da   :  { %6209 = vst [vmem:[#allocation14_spill] sm:$0xff] %v2529_v52  ;;  %v6402_v52 = vmov 0 }
 0x2db   :  { %1609 = vrot.lane.b32.xlu0 %v2346_v35, %s5988_s27  ;;  %1487 = vrot.lane.b32.xlu1 %v2359_v14, %s5980_s30  ;;  %s6069_s30 = smov 83  }
 0x2dd   :  { %v2537_v54 = vpop.permute.xlu0 %723  ;;  %v2539_v55 = vpop.permute.xlu1 %601 }
 0x2de   :  { %6210 = vst [vmem:[#allocation15_spill] sm:$0xff] %v2537_v54 }
 0x2df   :  { %1640 = vrot.lane.b32.xlu0 %v2346_v35, %s5990_s29  ;;  %1518 = vrot.lane.b32.xlu1 %v2359_v14, %s5982_s4  ;;  %s6062_s4 = smov 82  }
 0x2e1   :  { %v2545_v56 = vpop.permute.xlu0 %754  ;;  %v2547_v57 = vpop.permute.xlu1 %632 }
 0x2e2   :  { %6211 = vst [vmem:[#allocation16_spill] sm:$0xff] %v2545_v56 }
 0x2e3   :  { %1671 = vrot.lane.b32.xlu0 %v2346_v35, %s6071_s0  ;;  %1549 = vrot.lane.b32.xlu1 %v2359_v14, %s5984_s5  ;;  %s6060_s5 = smov 81  }
 0x2e5   :  { %v2553_v58 = vpop.permute.xlu0 %785  ;;  %v2555_v59 = vpop.permute.xlu1 %663 }
 0x2e6   :  { %6212 = vst [vmem:[#allocation17_spill] sm:$0xff] %v2553_v58  ;;  %6213 = vst [vmem:[#allocation18_spill] sm:$0xff] %v2555_v59 }
 0x2e7   :  { %1702 = vrot.lane.b32.xlu0 %v2346_v35, %s6069_s30  ;;  %1580 = vrot.lane.b32.xlu1 %v2359_v14, %s5986_s26  ;;  %s6054_s26 = smov 80  }
 0x2e9   :  { %v2561_v60 = vpop.permute.xlu0 %816  ;;  %v2563_v61 = vpop.permute.xlu1 %694 }
 0x2ea   :  { %6214 = vst [vmem:[#allocation19_spill] sm:$0xff] %v2561_v60  ;;  %6215 = vst [vmem:[#allocation20_spill] sm:$0xff] %v2563_v61  ;;  %v6373_v60 = vmov 0 }
 0x2eb   :  { %1733 = vrot.lane.b32.xlu0 %v2346_v35, %s6062_s4  ;;  %1611 = vrot.lane.b32.xlu1 %v2359_v14, %s5988_s27  ;;  %s6052_s27 = smov 79  }
 0x2ed   :  { %v2569_v62 = vpop.permute.xlu0 %847  ;;  %v2571_v63 = vpop.permute.xlu1 %725 }
 0x2ee   :  { %6216 = vst [vmem:[#allocation21_spill] sm:$0xff] %v2569_v62  ;;  %6217 = vst [vmem:[#allocation22_spill] sm:$0xff] %v2571_v63  ;;  %v6379_v62 = vmov 0 }
 0x2ef   :  { %1764 = vrot.lane.b32.xlu0 %v2346_v35, %s6060_s5  ;;  %1642 = vrot.lane.b32.xlu1 %v2359_v14, %s5990_s29  ;;  %s6075_s29 = smov 78  }
 0x2f1   :  { %v2577_v2 = vpop.permute.xlu0 %878  ;;  %v2579_v3 = vpop.permute.xlu1 %756 }
 0x2f2   :  { %6218 = vst [vmem:[#allocation23_spill] sm:$0xff] %v2577_v2  ;;  %6219 = vst [vmem:[#allocation24_spill] sm:$0xff] %v2579_v3 }
 0x2f3   :  { %1795 = vrot.lane.b32.xlu0 %v2346_v35, %s6054_s26  ;;  %1673 = vrot.lane.b32.xlu1 %v2359_v14, %s6071_s0  ;;  %s3174_s0 = sld [smem:[#allocation6 + $0x44]] }
 0x2f5   :  { %v2585_v4 = vpop.permute.xlu0 %909  ;;  %v2587_v5 = vpop.permute.xlu1 %787 }
 0x2f6   :  { %6220 = vst [vmem:[#allocation25_spill] sm:$0xff] %v2585_v4  ;;  %6221 = vst [vmem:[#allocation26_spill] sm:$0xff] %v2587_v5 }
 0x2f7   :  { %1826 = vrot.lane.b32.xlu0 %v2346_v35, %s6052_s27  ;;  %1704 = vrot.lane.b32.xlu1 %v2359_v14, %s6069_s30  ;;  %s3172_s30 = sld [smem:[#allocation6 + $0x43]] }
 0x2f9   :  { %v2593_v6 = vpop.permute.xlu0 %940  ;;  %v2595_v7 = vpop.permute.xlu1 %818 }
 0x2fa   :  { %6222 = vst [vmem:[#allocation27_spill] sm:$0xff] %v2593_v6  ;;  %6223 = vst [vmem:[#allocation28_spill] sm:$0xff] %v2595_v7 }
 0x2fb   :  { %1857 = vrot.lane.b32.xlu0 %v2346_v35, %s6075_s29  ;;  %1735 = vrot.lane.b32.xlu1 %v2359_v14, %s6062_s4  ;;  %s6351_s4 = smov 111   ;;  %s3202_s29 = sld [smem:[#allocation6 + $0x46]] }
 0x2fd   :  { %v2601_v8 = vpop.permute.xlu0 %971  ;;  %v2603_v9 = vpop.permute.xlu1 %849 }
 0x2fe   :  { %6224 = vst [vmem:[#allocation29_spill] sm:$0xff] %v2601_v8  ;;  %6225 = vst [vmem:[#allocation30_spill] sm:$0xff] %v2603_v9 }
 0x2ff   :  { %1766 = vrot.lane.b32.xlu1 %v2359_v14, %s6060_s5  ;;  %502 = vrot.lane.b32.xlu0 %v2349_v36, %s2224_s7  ;;  %s3112_s5 = sld [smem:[#allocation6 + $0x41]] }
 0x301   :  { %v2609_v10 = vpop.permute.xlu0 %1002  ;;  %v2611_v11 = vpop.permute.xlu1 %880 }
 0x302   :  { %6226 = vst [vmem:[#allocation31_spill] sm:$0xff] %v2609_v10  ;;  %6227 = vst [vmem:[#allocation32_spill] sm:$0xff] %v2611_v11 }
 0x303   :  { %1797 = vrot.lane.b32.xlu1 %v2359_v14, %s6054_s26  ;;  %533 = vrot.lane.b32.xlu0 %v2349_v36, %s2225_s8  ;;  %s3086_s26 = sld [smem:[#allocation6 + $0x40]] }
 0x305   :  { %v2617_v12 = vpop.permute.xlu0 %1033  ;;  %v2619_v15 = vpop.permute.xlu1 %911  ;;  %6350 = sst [smem:[#allocation105_spill]] %s3112_s5 }
 0x306   :  { %6228 = vst [vmem:[#allocation33_spill] sm:$0xff] %v2617_v12  ;;  %6229 = vst [vmem:[#allocation34_spill] sm:$0xff] %v2619_v15  ;;  %v6315_v12 = vmov 0 }
 0x307   :  { %1828 = vrot.lane.b32.xlu1 %v2359_v14, %s6052_s27  ;;  %564 = vrot.lane.b32.xlu0 %v2349_v36, %s2227_s10  ;;  %s3084_s27 = sld [smem:[#allocation6 + $0x3f]] }
 0x309   :  { %v2625_v16 = vpop.permute.xlu0 %1064  ;;  %v2627_v17 = vpop.permute.xlu1 %942  ;;  %6345 = sst [smem:[#allocation104_spill]] %s3086_s26 }
 0x30a   :  { %6230 = vst [vmem:[#allocation35_spill] sm:$0xff] %v2625_v16  ;;  %6231 = vst [vmem:[#allocation36_spill] sm:$0xff] %v2627_v17 }
 0x30b   :  { %595 = vrot.lane.b32.xlu0 %v2349_v36, %s2228_s11  ;;  %409 = vrot.lane.b32.xlu1 %v2349_v36, %s2223_s6 }
 0x30d   :  { %v2633_v18 = vpop.permute.xlu0 %1095  ;;  %v2635_v19 = vpop.permute.xlu1 %973  ;;  %6344 = sst [smem:[#allocation103_spill]] %s3084_s27 }
 0x30e   :  { %6232 = vst [vmem:[#allocation37_spill] sm:$0xff] %v2633_v18  ;;  %6233 = vst [vmem:[#allocation38_spill] sm:$0xff] %v2635_v19 }
 0x30f   :  { %626 = vrot.lane.b32.xlu0 %v2349_v36, %s2229_s12  ;;  %411 = vrot.lane.b32.xlu1 %v2352_v37, %s2223_s6  ;;  %s6268_s6 = smov 1  }
 0x311   :  { %v2641_v20 = vpop.permute.xlu0 %1126  ;;  %v2643_v21 = vpop.permute.xlu1 %1004 }
 0x312   :  { %6234 = vst [vmem:[#allocation39_spill] sm:$0xff] %v2641_v20  ;;  %6235 = vst [vmem:[#allocation40_spill] sm:$0xff] %v2643_v21  ;;  %v6291_v20 = vmov 0  ;;  %v6323_v21 = vmov 0 }
 0x313   :  { %657 = vrot.lane.b32.xlu0 %v2349_v36, %s2230_s13  ;;  %440 = vrot.lane.b32.xlu1 %v2349_v36, %s2226_s9 }
 0x315   :  { %v2649_v22 = vpop.permute.xlu0 %1175  ;;  %v2651_v23 = vpop.permute.xlu1 %1035 }
 0x316   :  { %6236 = vst [vmem:[#allocation41_spill] sm:$0xff] %v2649_v22  ;;  %6237 = vst [vmem:[#allocation42_spill] sm:$0xff] %v2651_v23 }
 0x317   :  { %688 = vrot.lane.b32.xlu0 %v2349_v36, %s2231_s14  ;;  %442 = vrot.lane.b32.xlu1 %v2352_v37, %s2226_s9  ;;  %s6294_s9 = smov 115  }
 0x319   :  { %v2657_v24 = vpop.permute.xlu0 %1206  ;;  %v2659_v25 = vpop.permute.xlu1 %1066 }
 0x31a   :  { %6238 = vst [vmem:[#allocation43_spill] sm:$0xff] %v2657_v24  ;;  %6239 = vst [vmem:[#allocation44_spill] sm:$0xff] %v2659_v25  ;;  %v6311_v25 = vmov 0 }
 0x31b   :  { %719 = vrot.lane.b32.xlu0 %v2349_v36, %s2232_s15  ;;  %471 = vrot.lane.b32.xlu1 %v2349_v36, %s2222_s1 }
 0x31d   :  { %v2665_v0 = vpop.permute.xlu0 %1237  ;;  %v2667_v1 = vpop.permute.xlu1 %1097 }
 0x31e   :  { %6240 = vst [vmem:[#allocation45_spill] sm:$0xff] %v2665_v0  ;;  %6241 = vst [vmem:[#allocation46_spill] sm:$0xff] %v2667_v1 }
 0x31f   :  { %750 = vrot.lane.b32.xlu0 %v2349_v36, %s2233_s16  ;;  %473 = vrot.lane.b32.xlu1 %v2352_v37, %s2222_s1  ;;  %s6265_s1 = smov 2  }
 0x321   :  { %v2673_v26 = vpop.permute.xlu0 %1268  ;;  %v2675_v27 = vpop.permute.xlu1 %1128 }
 0x322   :  { %6242 = vst [vmem:[#allocation47_spill] sm:$0xff] %v2673_v26  ;;  %6243 = vst [vmem:[#allocation48_spill] sm:$0xff] %v2675_v27 }
 0x323   :  { %781 = vrot.lane.b32.xlu0 %v2349_v36, %s2234_s17  ;;  %504 = vrot.lane.b32.xlu1 %v2352_v37, %s2224_s7  ;;  %s6273_s7 = smov 126  }
 0x325   :  { %v2681_v28 = vpop.permute.xlu0 %1299  ;;  %v2683_v29 = vpop.permute.xlu1 %1177 }
 0x326   :  { %6244 = vst [vmem:[#allocation49_spill] sm:$0xff] %v2681_v28  ;;  %6245 = vst [vmem:[#allocation50_spill] sm:$0xff] %v2683_v29 }
 0x327   :  { %812 = vrot.lane.b32.xlu0 %v2349_v36, %s2235_s18  ;;  %535 = vrot.lane.b32.xlu1 %v2352_v37, %s2225_s8  ;;  %s6281_s8 = smov 125  }
 0x329   :  { %v2689_v30 = vpop.permute.xlu0 %1330  ;;  %v2691_v31 = vpop.permute.xlu1 %1208 }
 0x32a   :  { %6246 = vst [vmem:[#allocation51_spill] sm:$0xff] %v2689_v30  ;;  %6247 = vst [vmem:[#allocation52_spill] sm:$0xff] %v2691_v31 }
 0x32b   :  { %843 = vrot.lane.b32.xlu0 %v2349_v36, %s2236_s19  ;;  %566 = vrot.lane.b32.xlu1 %v2352_v37, %s2227_s10  ;;  %s2864_s10 = sld [smem:[#allocation6 + $0x18]] }
 0x32d   :  { %v2697_v32 = vpop.permute.xlu0 %1361  ;;  %v2699_v33 = vpop.permute.xlu1 %1239 }
 0x32e   :  { %6248 = vst [vmem:[#allocation53_spill] sm:$0xff] %v2697_v32  ;;  %6249 = vst [vmem:[#allocation54_spill] sm:$0xff] %v2699_v33  ;;  %v314_v33 = vcvt.s32.f32 %v2324_v13 }
 0x32f   :  { %874 = vrot.lane.b32.xlu0 %v2349_v36, %s2237_s20  ;;  %597 = vrot.lane.b32.xlu1 %v2352_v37, %s2228_s11  ;;  %s2866_s11 = sld [smem:[#allocation6 + $0x49]] }
 0x330   :  { %v317_v31 = vmul.f32 0.0625, %v314_v33 }
 0x331   :  { %v2705_v34 = vpop.permute.xlu0 %1392  ;;  %v2707_v30 = vpop.permute.xlu1 %1270 }
 0x332   :  { %6250 = vst [vmem:[#allocation55_spill] sm:$0xff] %v2705_v34  ;;  %6251 = vst [vmem:[#allocation56_spill] sm:$0xff] %v2707_v30  ;;  %v313_v30 = vadd.s32 128, %v2324_v13 }
 0x333   :  { %905 = vrot.lane.b32.xlu0 %v2349_v36, %s2238_s21  ;;  %628 = vrot.lane.b32.xlu1 %v2352_v37, %s2229_s12  ;;  %s2884_s12 = sld [smem:[#allocation6 + $0x31]] }
 0x334   :  { %v315_v0 = vcvt.s32.f32 %v313_v30 }
 0x335   :  { %v2713_v28 = vpop.permute.xlu0 %1423  ;;  %v2715_v32 = vpop.permute.xlu1 %1301 }
 0x336   :  { %6252 = vst [vmem:[#allocation57_spill] sm:$0xff] %v2713_v28  ;;  %6253 = vst [vmem:[#allocation58_spill] sm:$0xff] %v2715_v32  ;;  %v318_v24 = vmul.f32 0.0625, %v315_v0 }
 0x337   :  { %936 = vrot.lane.b32.xlu0 %v2349_v36, %s2239_s22  ;;  %659 = vrot.lane.b32.xlu1 %v2352_v37, %s2230_s13  ;;  %s2886_s13 = sld [smem:[#allocation6 + $0x32]] }
 0x338   :  { %v2068_v22 = vtrunc.f32 %v318_v24 }
 0x339   :  { %v2721_v26 = vpop.permute.xlu0 %1454  ;;  %v2723_v34 = vpop.permute.xlu1 %1332  ;;  %v6335_v8 = vstv %s2884_s12 }
 0x33a   :  { %6254 = vst [vmem:[#allocation59_spill] sm:$0xff] %v2721_v26  ;;  %6255 = vst [vmem:[#allocation60_spill] sm:$0xff] %v2723_v34  ;;  %v2759_v29 = vcvt.f32.s32 %v2068_v22 }
 0x33b   :  { %967 = vrot.lane.b32.xlu0 %v2349_v36, %s2240_s23  ;;  %690 = vrot.lane.b32.xlu1 %v2352_v37, %s2231_s14  ;;  %s6303_s14 = smov 114  }
 0x33c   :  { %6264 = vst [vmem:[#allocation69_spill] sm:$0xff] %v2759_v29  ;;  %vm344_vm6 = vcmp.ge.s32.totalorder %v2759_v29, 0  ;;  %vm346_vm7 = vcmp.lt.s32.totalorder %v2759_v29, 16  ;;  %vm326_vm13 = vcmp.ge.s32.totalorder %v2759_v29, 3  ;;  %vm328_vm14 = vcmp.lt.s32.totalorder %v2759_v29, 19 }
 0x33d   :  { %v2730_v28 = vpop.permute.xlu0 %1485  ;;  %v2732_v32 = vpop.permute.xlu1 %1363  ;;  %vm2816_vm15 = vmand %vm344_vm6, %vm346_vm7  ;;  %v6337_v6 = vstv %s2886_s13 }
 0x33e   :  { %6256 = vst [vmem:[#allocation61_spill] sm:$0xff] %v2730_v28  ;;  %6257 = vst [vmem:[#allocation62_spill] sm:$0xff] %v2732_v32 }
 0x33f   :  { %998 = vrot.lane.b32.xlu0 %v2349_v36, %s2241_s24  ;;  %721 = vrot.lane.b32.xlu1 %v2352_v37, %s2232_s15  ;;  %vm2840_vm6 = vmand %vm326_vm13, %vm328_vm14  ;;  %s2910_s15 = sld [smem:[#allocation6 + $0x33]] }
 0x341   :  { %v2738_v26 = vpop.permute.xlu0 %1516  ;;  %v2740_v34 = vpop.permute.xlu1 %1394 }
 0x342   :  { %6258 = vst [vmem:[#allocation63_spill] sm:$0xff] %v2738_v26  ;;  %6259 = vst [vmem:[#allocation64_spill] sm:$0xff] %v2740_v34  ;;  %v2066_v34 = vtrunc.f32 %v317_v31 }
 0x343   :  { %1029 = vrot.lane.b32.xlu0 %v2349_v36, %s2242_s2  ;;  %752 = vrot.lane.b32.xlu1 %v2352_v37, %s2233_s16  ;;  %s2916_s16 = sld [smem:[#allocation6 + $0x34]] }
 0x345   :  { %v2747_v28 = vpop.permute.xlu0 %1547  ;;  %v2749_v32 = vpop.permute.xlu1 %1425 }
 0x346   :  { %6260 = vst [vmem:[#allocation65_spill] sm:$0xff] %v2747_v28  ;;  %6261 = vst [vmem:[#allocation66_spill] sm:$0xff] %v2749_v32  ;;  %v2769_v28 = vcvt.f32.s32 %v2066_v34  ;;  %v322_v32 = vmul.u32 16, %v2759_v29 }
 0x347   :  { %1060 = vrot.lane.b32.xlu0 %v2349_v36, %s2243_s25  ;;  %783 = vrot.lane.b32.xlu1 %v2352_v37, %s2234_s17  ;;  %s2924_s17 = sld [smem:[#allocation6 + $0x35]] }
 0x348   :  { %vm343_vm8 = vcmp.ge.s32.totalorder %v2769_v28, 0  ;;  %vm345_vm9 = vcmp.lt.s32.totalorder %v2769_v28, 16 }
 0x349   :  { %v2755_v26 = vpop.permute.xlu0 %1578  ;;  %v2757_v0 = vpop.permute.xlu1 %1456  ;;  %vm2826_vm2 = vmand %vm343_vm8, %vm345_vm9 }
 0x34a   :  { %6262 = vst [vmem:[#allocation67_spill] sm:$0xff] %v2755_v26  ;;  %6263 = vst [vmem:[#allocation68_spill] sm:$0xff] %v2757_v0  ;;  %v321_v26 = vmul.u32 16, %v2769_v28  ;;  %v2781_v0 = vsub.s32 %v313_v30, %v322_v32  ;;  %v6276_v32 = vmov 0 }
 0x34b   :  { %1091 = vrot.lane.b32.xlu0 %v2349_v36, %s6265_s1  ;;  %814 = vrot.lane.b32.xlu1 %v2352_v37, %s2235_s18  ;;  %s2932_s18 = sld [smem:[#allocation6 + $0x36]] }
 0x34c   :  { %vm386_vm4 = vcmp.ge.s32.totalorder %v2781_v0, 0  ;;  %vm388_vm5 = vcmp.lt.s32.totalorder %v2781_v0, 16  ;;  %vm368_vm0 = vcmp.ge.s32.totalorder %v2781_v0, 3  ;;  %vm370_vm1 = vcmp.lt.s32.totalorder %v2781_v0, 19 }
 0x34d   :  { %v2765_v24 = vpop.permute.xlu0 %1609  ;;  %v2767_v33 = vpop.permute.xlu1 %1487  ;;  %vm2808_vm10 = vmand %vm386_vm4, %vm388_vm5  ;;  %vm374_vm3 = vcmp.ge.s32.totalorder %v2781_v0, 2  ;;  %vm376_vm4 = vcmp.lt.s32.totalorder %v2781_v0, 18  ;;  %vm380_vm7 = vcmp.ge.s32.totalorder %v2781_v0, 1  ;;  %vm382_vm8 = vcmp.lt.s32.totalorder %v2781_v0, 17 }
 0x34e   :  { %6266 = vst [vmem:[#allocation70_spill] sm:$0xff] %v2765_v24  ;;  %6267 = vst [vmem:[#allocation71_spill] sm:$0xff] %v2767_v33  ;;  %v2792_v33 = vsub.s32 %v2324_v13, %v321_v26  ;;  %v6277_v32 = vsel %vm2808_vm10, 4294967295, %v6276_v32  ;;  %vm6310_vm14 = vcmp.ge.s32.totalorder %v2781_v0, 4294967293 }
 0x34f   :  { %1122 = vrot.lane.b32.xlu0 %v2349_v36, %s6268_s6  ;;  %845 = vrot.lane.b32.xlu1 %v2352_v37, %s2236_s19  ;;  %vm2846_vm9 = vmand %vm368_vm0, %vm370_vm1  ;;  %vm332_vm1 = vcmp.ge.s32.totalorder %v2759_v29, 2  ;;  %s2946_s19 = sld [smem:[#allocation6 + $0x37]] }
 0x350   :  { %vm385_vm11 = vcmp.ge.s32.totalorder %v2792_v33, 0  ;;  %vm387_vm12 = vcmp.lt.s32.totalorder %v2792_v33, 16  ;;  %v6292_v20 = vsel %vm2846_vm9, 4294967295, %v6291_v20  ;;  %vm2856_vm13 = vmand %vm374_vm3, %vm376_vm4  ;;  %vm334_vm3 = vcmp.lt.s32.totalorder %v2759_v29, 18 }
 0x351   :  { %v2776_v22 = vpop.permute.xlu0 %1640  ;;  %v2778_v31 = vpop.permute.xlu1 %1518  ;;  %vm2832_vm5 = vmand %vm385_vm11, %vm387_vm12  ;;  %6293 = vst [vmem:[#allocation82_spill] sm:$0xff] %v6292_v20  ;;  %vm392_vm11 = vcmp.ge.s32.totalorder %v2781_v0, 4294967295  ;;  %vm394_vm12 = vcmp.lt.s32.totalorder %v2781_v0, 15  ;;  %6306 = sst [smem:[#allocation85_spill]] %s2932_s18 }
 0x352   :  { %6269 = vst [vmem:[#allocation72_spill] sm:$0xff] %v2776_v22  ;;  %6270 = vst [vmem:[#allocation73_spill] sm:$0xff] %v2778_v31  ;;  %v6285_v22 = vmov 0  ;;  %v6289_v31 = vmov 0 }
 0x353   :  { %1171 = vrot.lane.b32.xlu0 %v2349_v36, %s6074_s28  ;;  %876 = vrot.lane.b32.xlu1 %v2352_v37, %s2237_s20  ;;  %v6286_v22 = vsel %vm2832_vm5, 4294967295, %v6285_v22  ;;  %v6290_v31 = vsel %vm2840_vm6, 4294967295, %v6289_v31  ;;  %vm2868_vm0 = vmand %vm380_vm7, %vm382_vm8  ;;  %vm398_vm7 = vcmp.ge.s32.totalorder %v2781_v0, 4294967294  ;;  %vm400_vm8 = vcmp.lt.s32.totalorder %v2781_v0, 14  ;;  %s2948_s20 = sld [smem:[#allocation6 + $0x38]]  ;;  %s3196_s28 = sld [smem:[#allocation6 + $0x45]] }
 0x354   :  { %vm2890_vm4 = vmand %vm392_vm11, %vm394_vm12  ;;  %vm6309_vm12 = vcmp.lt.s32.totalorder %v2781_v0, 13  ;;  %v1156_v0 = vstv %s2864_s10  ;;  %s3066_s10 = sld [smem:[#allocation6 + $0x3d]] }
 0x355   :  { %v2787_v34 = vpop.permute.xlu0 %1671  ;;  %v2789_v24 = vpop.permute.xlu1 %1549  ;;  %vm2928_vm11 = vmand %vm398_vm7, %vm400_vm8  ;;  %6313 = sst [smem:[#allocation88_spill]] %s2946_s19  ;;  %vm338_vm8 = vcmp.ge.s32.totalorder %v2759_v29, 1 }
 0x356   :  { %6271 = vst [vmem:[#allocation74_spill] sm:$0xff] %v2787_v34  ;;  %6272 = vst [vmem:[#allocation75_spill] sm:$0xff] %v2789_v24  ;;  %v6278_v34 = vmov 0 }
 0x357   :  { %1202 = vrot.lane.b32.xlu0 %v2349_v36, %s6273_s7  ;;  %907 = vrot.lane.b32.xlu1 %v2352_v37, %s2238_s21  ;;  %v6279_v34 = vsel %vm2816_vm15, 4294967295, %v6278_v34  ;;  %vm2942_vm15 = vmand %vm6310_vm14, %vm6309_vm12  ;;  %s6318_s21 = smov 113   ;;  %vm340_vm12 = vcmp.lt.s32.totalorder %v2759_v29, 17 }
 0x358   :  { %6280 = vst [vmem:[#allocation78_spill] sm:$0xff] %v6279_v34  ;;  %v6312_v25 = vsel %vm2942_vm15, 4294967295, %v6311_v25  ;;  %vm2950_vm7 = vmand %vm332_vm1, %vm334_vm3 }
 0x359   :  { %v2804_v26 = vpop.permute.xlu0 %1702  ;;  %v2806_v30 = vpop.permute.xlu1 %1580  ;;  %6314 = sst [smem:[#allocation89_spill]] %s2948_s20  ;;  %v6316_v12 = vsel %vm2950_vm7, 4294967295, %v6315_v12  ;;  %vm2992_vm15 = vmand %vm338_vm8, %vm340_vm12 }
 0x35a   :  { %6274 = vst [vmem:[#allocation76_spill] sm:$0xff] %v2804_v26  ;;  %6275 = vst [vmem:[#allocation77_spill] sm:$0xff] %v2806_v30  ;;  %v6282_v26 = vmov 0  ;;  %v6324_v21 = vsel %vm2992_vm15, 4294967295, %v6323_v21  ;;  %6339 = sst [smem:[#allocation99_spill]] %s3066_s10  ;;  %vm6415_vm15 = vcmp.ge.s32.totalorder %v2792_v33, 1 }
 0x35b   :  { %1233 = vrot.lane.b32.xlu0 %v2349_v36, %s6281_s8  ;;  %938 = vrot.lane.b32.xlu1 %v2352_v37, %s2239_s22  ;;  %v6283_v26 = vsel %vm2826_vm2, 4294967295, %v6282_v26  ;;  %6317 = vst [vmem:[#allocation90_spill] sm:$0xff] %v6316_v12  ;;  %s2984_s22 = sld [smem:[#allocation6 + $0x39]]  ;;  %6325 = vst [vmem:[#allocation95_spill] sm:$0xff] %v6324_v21 }
 0x35c   :  { %6284 = vst [vmem:[#allocation79_spill] sm:$0xff] %v6283_v26  ;;  %vm6327_vm1 = vmand %vm2826_vm2, %vm2832_vm5 }
 0x35d   :  { %v2836_v30 = vpop.permute.xlu0 %1733  ;;  %v2838_v24 = vpop.permute.xlu1 %1611  ;;  %v3005_v10 = vsel %vm6327_vm1, %v1156_v0, 0.0  ;;  %vm6328_vm8 = vmmov %vm6327_vm1 }
 0x35e   :  { %6287 = vst [vmem:[#allocation80_spill] sm:$0xff] %v2836_v30  ;;  %6288 = vst [vmem:[#allocation81_spill] sm:$0xff] %v2838_v24  ;;  %v6295_v30 = vmov 0  ;;  %v6297_v24 = vmov 0 }
 0x35f   :  { %1264 = vrot.lane.b32.xlu0 %v2349_v36, %s6294_s9  ;;  %969 = vrot.lane.b32.xlu1 %v2352_v37, %s2240_s23  ;;  %v6296_v30 = vsel %vm2856_vm13, 4294967295, %v6295_v30  ;;  %v6298_v24 = vsel %vm2868_vm0, 4294967295, %v6297_v24  ;;  %s2990_s23 = sld [smem:[#allocation6 + $0x3a]]  ;;  %vm6336_vm1 = vmand %vm2840_vm6, %vm2846_vm9 }
 0x360   :  { %v3049_v19 = vsel %vm6336_vm1, %v6335_v8, 0.0  ;;  %vm6340_vm1 = vnez %v6312_v25  ;;  %vm6347_vm5 = vmand %vm2840_vm6, %vm2868_vm0 }
 0x361   :  { %v2872_v27 = vpop.permute.xlu0 %1764  ;;  %v2874_v18 = vpop.permute.xlu1 %1642  ;;  %6321 = sst [smem:[#allocation93_spill]] %s2984_s22  ;;  %vm6355_vm3 = vmand %vm2840_vm6, %vm2928_vm11  ;;  %v6383_v9 = vstv %s2984_s22  ;;  %s3308_s22 = sld [smem:[#allocation6 + $0x4d]] }
 0x362   :  { %6299 = vst [vmem:[#allocation83_spill] sm:$0xff] %v2872_v27  ;;  %6300 = vst [vmem:[#allocation84_spill] sm:$0xff] %v2874_v18  ;;  %v6301_v27 = vmov 0  ;;  %v6304_v18 = vmov 0 }
 0x363   :  { %v6302_v27 = vsel %vm2890_vm4, 4294967295, %v6301_v27  ;;  %1295 = vrot.lane.b32.xlu0 %v2349_v36, %s6303_s14  ;;  %1000 = vrot.lane.b32.xlu1 %v2352_v37, %s2241_s24  ;;  %v6305_v18 = vsel %vm2928_vm11, 4294967295, %v6304_v18  ;;  %s6326_s24 = smov 112   ;;  %vm6358_vm2 = vmand %vm2840_vm6, %vm6340_vm1  ;;  %vm6377_vm1 = vcmp.lt.s32.totalorder %v2769_v28, 15 }
 0x365   :  { %v2934_v1 = vpop.permute.xlu0 %1795  ;;  %v2936_v16 = vpop.permute.xlu1 %1673  ;;  %6322 = sst [smem:[#allocation94_spill]] %s2990_s23  ;;  %v6386_v56 = vstv %s2990_s23 }
 0x366   :  { %6307 = vst [vmem:[#allocation86_spill] sm:$0xff] %v2934_v1  ;;  %6308 = vst [vmem:[#allocation87_spill] sm:$0xff] %v2936_v16  ;;  %v1160_v1 = vstv %s2866_s11  ;;  %s3072_s11 = sld [smem:[#allocation6 + $0x3e]]  ;;  %s3298_s23 = sld [smem:[#allocation6 + $0x4c]] }
 0x367   :  { %1326 = vrot.lane.b32.xlu0 %v2349_v36, %s6318_s21  ;;  %1031 = vrot.lane.b32.xlu1 %v2352_v37, %s2242_s2  ;;  %s3020_s2 = sld [smem:[#allocation6 + $0x3b]] }
 0x369   :  { %v2970_v16 = vpop.permute.xlu0 %1826  ;;  %v2972_v23 = vpop.permute.xlu1 %1704 }
 0x36a   :  { %6319 = vst [vmem:[#allocation91_spill] sm:$0xff] %v2970_v16  ;;  %6320 = vst [vmem:[#allocation92_spill] sm:$0xff] %v2972_v23  ;;  %v3012_v16 = vsel %vm6328_vm8, %v1160_v1, 0.0  ;;  %vm6331_vm8 = vnez %v6279_v34 }
 0x36b   :  { %1357 = vrot.lane.b32.xlu0 %v2349_v36, %s6326_s24  ;;  %1062 = vrot.lane.b32.xlu1 %v2352_v37, %s2243_s25  ;;  %s3026_s25 = sld [smem:[#allocation6 + $0x3c]]  ;;  %vm6332_vm14 = vmand %vm6331_vm8, %vm2808_vm10 }
 0x36c   :  { %v3033_v29 = vsel %vm6332_vm14, %v1156_v0, 0.0  ;;  %vm6333_vm12 = vmmov %vm6332_vm14  ;;  %6341 = sst [smem:[#allocation100_spill]] %s3072_s11 }
 0x36d   :  { %6329 = sst [smem:[#allocation96_spill]] %s3020_s2  ;;  %v3040_v23 = vsel %vm6333_vm12, %v1160_v1, 0.0  ;;  %vm6338_vm14 = vmand %vm2840_vm6, %vm2856_vm13  ;;  %v3076_v8 = vpop.permute.xlu1 %1735  ;;  %v6348_v1 = vstv %s2916_s16 }
 0x36e   :  { %6334 = vst [vmem:[#allocation98_spill] sm:$0xff] %v3040_v23  ;;  %v3058_v0 = vsel %vm6338_vm14, %v6337_v6, 0.0  ;;  %v3074_v6 = vpop.permute.xlu0 %1857  ;;  %6343 = vst [vmem:[#allocation102_spill] sm:$0xff] %v3076_v8  ;;  %v6354_v23 = vstv %s2932_s18  ;;  %6389 = sst [smem:[#allocation113_spill]] %s3298_s23  ;;  %s6405_s18 = smov 109  }
 0x36f   :  { %6342 = vst [vmem:[#allocation101_spill] sm:$0xff] %v3074_v6  ;;  %v6346_v6 = vstv %s2910_s15  ;;  %vm6349_vm14 = vmand %vm2840_vm6, %vm2808_vm10  ;;  %1388 = vrot.lane.b32.xlu0 %v2349_v36, %s6351_s4  ;;  %1093 = vrot.lane.b32.xlu1 %v2352_v37, %s6265_s1  ;;  %v3136_v4 = vsel %vm6355_vm3, %v6354_v23, 0.0  ;;  %s3142_s1 = sld [smem:[#allocation6 + $0x42]]  ;;  %v6359_v23 = vstv %s2948_s20  ;;  %s3222_s20 = sld [smem:[#allocation6 + $0x48]] }
 0x370   :  { %v3097_v17 = vsel %vm6347_vm5, %v6346_v6, 0.0  ;;  %v3106_v8 = vsel %vm6349_vm14, %v6348_v1, 0.0  ;;  %v6352_v6 = vstv %s2924_s17  ;;  %vm6353_vm14 = vmand %vm2840_vm6, %vm2890_vm4  ;;  %vm6361_vm5 = vcmp.lt.s32.totalorder %v2792_v33, 15  ;;  %s6406_s4 = smov 78  }
 0x371   :  { %6330 = sst [smem:[#allocation97_spill]] %s3026_s25  ;;  %v3127_v1 = vsel %vm6353_vm14, %v6352_v6, 0.0  ;;  %v6357_v6 = vstv %s2946_s19  ;;  %vm6360_vm3 = vmand %vm2950_vm7, %vm2846_vm9  ;;  %s6375_s19 = smov 110   ;;  %v6397_v54 = vstv %s3026_s25 }
 0x372   :  { %v3153_v15 = vsel %vm6358_vm2, %v6357_v6, 0.0  ;;  %v3162_v2 = vsel %vm6360_vm3, %v6359_v23, 0.0  ;;  %vm6362_vm3 = vcmp.ge.s32.totalorder %v2792_v33, 4294967295  ;;  %v6363_v6 = vmov 0  ;;  %v3184_v23 = vpop.permute.xlu1 %1766  ;;  %v3186_v11 = vpop.permute.xlu0 %502  ;;  %vm6384_vm9 = vmand %vm2950_vm7, %vm2856_vm13  ;;  %s3340_s25 = sld [smem:[#allocation6 + $0x4f]] }
 0x373   :  { %vm3180_vm14 = vmand %vm6362_vm3, %vm6361_vm5  ;;  %6365 = vst [vmem:[#allocation107_spill] sm:$0xff] %v3184_v23  ;;  %vm6366_vm3 = vcmp.lt.s32.totalorder %v2792_v33, 14  ;;  %vm6367_vm2 = vcmp.ge.s32.totalorder %v2792_v33, 4294967294  ;;  %v6368_v23 = vmov 0  ;;  %1419 = vrot.lane.b32.xlu0 %v2349_v36, %s6375_s19  ;;  %1124 = vrot.lane.b32.xlu1 %v2352_v37, %s6268_s6  ;;  %s3252_s6 = sld [smem:[#allocation6 + $0x4a]]  ;;  %s3254_s19 = sld [smem:[#allocation6 + $0x4b]] }
 0x374   :  { %v6364_v6 = vsel %vm3180_vm14, 4294967295, %v6363_v6  ;;  %vm3208_vm6 = vmand %vm6367_vm2, %vm6366_vm3  ;;  %vm6371_vm2 = vcmp.lt.s32.totalorder %v2792_v33, 13  ;;  %vm6372_vm3 = vcmp.ge.s32.totalorder %v2792_v33, 4294967293  ;;  %v3277_v5 = vsel %vm6384_vm9, %v6383_v9, 0.0 }
 0x375   :  { %6356 = sst [smem:[#allocation106_spill]] %s3142_s1  ;;  %v6369_v23 = vsel %vm3208_vm6, 4294967295, %v6368_v23  ;;  %vm3228_vm12 = vmand %vm6372_vm3, %vm6371_vm2  ;;  %vm6378_vm2 = vcmp.ge.s32.totalorder %v2769_v28, 4294967295  ;;  %6385 = vst [vmem:[#allocation111_spill] sm:$0xff] %v3277_v5  ;;  %vm6390_vm3 = vcmp.lt.s32.totalorder %v2792_v33, 19  ;;  %v6394_v9 = vstv %s3020_s2  ;;  %s3338_s2 = sld [smem:[#allocation6 + $0x4e]] }
 0x376   :  { %6370 = sst [smem:[#allocation108_spill]] %s3222_s20  ;;  %v6374_v60 = vsel %vm3228_vm12, 4294967295, %v6373_v60  ;;  %vm3260_vm8 = vmand %vm6378_vm2, %vm6377_vm1  ;;  %v3266_v58 = vpop.permute.xlu1 %1797  ;;  %v3268_v7 = vpop.permute.xlu0 %533  ;;  %vm6401_vm2 = vcmp.ge.s32.totalorder %v2792_v33, 2 }
 0x377   :  { %v6380_v62 = vsel %vm3260_vm8, 4294967295, %v6379_v62  ;;  %6382 = vst [vmem:[#allocation110_spill] sm:$0xff] %v3266_v58  ;;  %vm6387_vm1 = vmand %vm2950_vm7, %vm2868_vm0  ;;  %1450 = vrot.lane.b32.xlu0 %v2349_v36, %s6405_s18  ;;  %1859 = vrot.lane.b32.xlu1 %v2359_v14, %s6406_s4  ;;  %v6416_v14 = vmov 0  ;;  %s3374_s4 = sld [smem:[#allocation6 + $0x51]]  ;;  %s6432_s18 = smov 127  }
 0x378   :  { %6381 = vst [vmem:[#allocation109_spill] sm:$0xff] %v6380_v62  ;;  %v3286_v3 = vsel %vm6387_vm1, %v6386_v56, 0.0  ;;  %vm6391_vm1 = vcmp.ge.s32.totalorder %v2792_v33, 3  ;;  %vm6395_vm9 = vmand %vm2950_vm7, %vm2808_vm10  ;;  %6404 = sst [smem:[#allocation116_spill]] %s3340_s25 }
 0x379   :  { %6388 = vst [vmem:[#allocation112_spill] sm:$0xff] %v3286_v3  ;;  %vm3304_vm5 = vmand %vm6391_vm1, %vm6390_vm3  ;;  %v3318_v58 = vsel %vm6395_vm9, %v6394_v9, 0.0  ;;  %vm6400_vm1 = vcmp.lt.s32.totalorder %v2792_v33, 18  ;;  %v6410_v3 = vstv %s3072_s11  ;;  %vm6411_vm9 = vnez %v6312_v25  ;;  %s6431_s11 = smov 99  }
 0x37a   :  { %6396 = vst [vmem:[#allocation114_spill] sm:$0xff] %v3318_v58  ;;  %vm6398_vm3 = vmand %vm2950_vm7, %vm2890_vm4  ;;  %v3401_v61 = vpop.permute.xlu1 %1828  ;;  %v3403_v5 = vpop.permute.xlu0 %564  ;;  %v6130_v58 = vstv %s3196_s28 }
 0x37b   :  { %v3327_v63 = vsel %vm6398_vm3, %v6397_v54, 0.0  ;;  %vm3334_vm12 = vmand %vm6401_vm2, %vm6400_vm1  ;;  %v6407_v54 = vstv %s3066_s10  ;;  %vm6414_vm1 = vcmp.lt.s32.totalorder %v2792_v33, 17  ;;  %s3372_s10 = sld [smem:[#allocation6 + $0x50]]  ;;  %v6424_v33 = vstv %s3086_s26  ;;  %6427 = vst [vmem:[#allocation122_spill] sm:$0xff] %v3401_v61  ;;  %s3421_s26 = sld [smem:[#allocation6 + $0x52]]  ;;  %1481 = vrot.lane.b32.xlu0 %v2349_v36, %s6431_s11  ;;  %1173 = vrot.lane.b32.xlu1 %v2352_v37, %s6432_s18 }
 0x37c   :  { %6399 = vst [vmem:[#allocation115_spill] sm:$0xff] %v3327_v63  ;;  %v6403_v52 = vsel %vm3334_vm12, 4294967295, %v6402_v52  ;;  %vm6408_vm2 = vmand %vm2950_vm7, %vm2928_vm11  ;;  %v6436_v61 = vstv %s3172_s30  ;;  %s3462_s18 = sld [smem:[#allocation6]] }
 0x37d   :  { %v3353_v9 = vsel %vm6408_vm2, %v6407_v54, 0.0  ;;  %vm6412_vm3 = vmand %vm2950_vm7, %vm6411_vm9  ;;  %v6419_v54 = vstv %s3084_s27  ;;  %vm6420_vm7 = vnez %v6324_v21  ;;  %s3434_s27 = sld [smem:[#allocation6 + $0x54]]  ;;  %v6458_v21 = vmov 0 }
 0x37e   :  { %6409 = vst [vmem:[#allocation117_spill] sm:$0xff] %v3353_v9  ;;  %v3362_v63 = vsel %vm6412_vm3, %v6410_v3, 0.0  ;;  %vm3368_vm6 = vmand %vm6415_vm15, %vm6414_vm1  ;;  %vm6421_vm3 = vnez %v6292_v20  ;;  %vm6439_vm1 = vnez %v6286_v22  ;;  %v6509_v20 = vstv %s2884_s12  ;;  %s3739_s12 = sld [smem:[#allocation6 + $0x57]] }
 0x37f   :  { %6413 = vst [vmem:[#allocation118_spill] sm:$0xff] %v3362_v63  ;;  %v6417_v14 = vsel %vm3368_vm6, 4294967295, %v6416_v14  ;;  %vm6422_vm14 = vmand %vm6420_vm7, %vm6421_vm3  ;;  %1204 = vrot.lane.b32.xlu1 %v2352_v37, %s6273_s7  ;;  %s3586_s7 = sld [smem:[#allocation6 + $0x55]] }
 0x380   :  { %v3384_v3 = vsel %vm6422_vm14, %v6419_v54, 0.0  ;;  %vm6425_vm15 = vmand %vm6420_vm7, %vm2856_vm13  ;;  %v6428_v54 = vstv %s3112_s5  ;;  %s3430_s5 = sld [smem:[#allocation6 + $0x53]] }
 0x381   :  { %6418 = sst [smem:[#allocation119_spill]] %s3372_s10  ;;  %6423 = vst [vmem:[#allocation120_spill] sm:$0xff] %v3384_v3  ;;  %v3393_v63 = vsel %vm6425_vm15, %v6424_v33, 0.0  ;;  %vm6429_vm14 = vmand %vm6420_vm7, %vm2868_vm0  ;;  %v6129_v33 = vstv %s3174_s0  ;;  %vm6446_vm15 = vnez %v6279_v34 }
 0x382   :  { %6426 = vst [vmem:[#allocation121_spill] sm:$0xff] %v3393_v63  ;;  %v3412_v3 = vsel %vm6429_vm14, %v6428_v54, 0.0  ;;  %v6433_v54 = vstv %s3142_s1  ;;  %vm6434_vm2 = vmand %vm6420_vm7, %vm2808_vm10  ;;  %s3464_s1 = sld [smem:[#allocation6 + $0x1]] }
 0x383   :  { %6430 = vst [vmem:[#allocation123_spill] sm:$0xff] %v3412_v3  ;;  %v3447_v63 = vsel %vm6434_vm2, %v6433_v54, 0.0  ;;  %vm6437_vm14 = vmand %vm6420_vm7, %vm2890_vm4  ;;  %v3468_v54 = vmul.f32 %v3005_v10, %v2349_v36  ;;  %v6470_v3 = vstv %s3298_s23  ;;  %s3590_s23 = sld [smem:[#allocation6 + $0x2]]  ;;  %1235 = vrot.lane.b32.xlu1 %v2352_v37, %s6281_s8  ;;  %s3715_s8 = sld [smem:[#allocation6 + $0x3]] }
 0x384   :  { %6435 = vst [vmem:[#allocation124_spill] sm:$0xff] %v3447_v63  ;;  %v3456_v9 = vsel %vm6437_vm14, %v6436_v61, 0.0  ;;  %vm6441_vm2 = vmand %vm6420_vm7, %vm2928_vm11  ;;  %v6445_v63 = vstv %s3202_s29  ;;  %vm6456_vm11 = vcmp.lt.s32.totalorder %v2769_v28, 14 }
 0x385   :  { %6438 = vst [vmem:[#allocation125_spill] sm:$0xff] %v3456_v9  ;;  %6440 = vst [vmem:[#allocation126_spill] sm:$0xff] %v3468_v54  ;;  %v3477_v61 = vsel %vm6441_vm2, %v6129_v33, 0.0  ;;  %vm6449_vm2 = vnez %v6364_v6  ;;  %v3502_v33 = vpop.permute.xlu0 %595  ;;  %v6453_v54 = vstv %s3222_s20  ;;  %s6461_s20 = smov 98  }
 0x386   :  { %6442 = vst [vmem:[#allocation127_spill] sm:$0xff] %v3477_v61  ;;  %vm6443_vm14 = vmand %vm6420_vm7, %vm6411_vm9  ;;  %vm6457_vm7 = vcmp.ge.s32.totalorder %v2769_v28, 4294967294  ;;  %1512 = vrot.lane.b32.xlu0 %v2349_v36, %s6461_s20 }
 0x387   :  { %v3486_v9 = vsel %vm6443_vm14, %v6130_v58, 0.0  ;;  %vm6447_vm4 = vmand %vm6446_vm15, %vm6421_vm3  ;;  %v3504_v58 = vpop.permute.xlu1 %409  ;;  %1266 = vrot.lane.b32.xlu1 %v2352_v37, %s6294_s9  ;;  %s3777_s9 = sld [smem:[#allocation6 + $0x4]] }
 0x388   :  { %6444 = vst [vmem:[#allocation128_spill] sm:$0xff] %v3486_v9  ;;  %v3495_v10 = vsel %vm6447_vm4, %v6445_v63, 0.0  ;;  %v6450_v9 = vstv %s3220_s3  ;;  %vm6451_vm14 = vmand %vm6446_vm15, %vm2856_vm13 }
 0x389   :  { %6448 = vst [vmem:[#allocation129_spill] sm:$0xff] %v3495_v10  ;;  %v3513_v63 = vsel %vm6451_vm14, %v6450_v9, 0.0  ;;  %vm6454_vm4 = vmand %vm6446_vm15, %vm2868_vm0  ;;  %vm6460_vm15 = vnez %v6369_v23  ;;  %vm6466_vm14 = vnez %v6374_v60 }
 0x38a   :  { %6452 = vst [vmem:[#allocation130_spill] sm:$0xff] %v3513_v63  ;;  %v3522_v10 = vsel %vm6454_vm4, %v6453_v54, 0.0  ;;  %vm3530_vm9 = vmand %vm6457_vm7, %vm6456_vm11  ;;  %v6462_v54 = vstv %s3252_s6  ;;  %vm6463_vm11 = vnez %v6283_v26 }
 0x38b   :  { %6455 = vst [vmem:[#allocation131_spill] sm:$0xff] %v3522_v10  ;;  %v6459_v21 = vsel %vm3530_vm9, 4294967295, %v6458_v21  ;;  %vm6464_vm7 = vmand %vm6463_vm11, %vm6449_vm2  ;;  %v6467_v10 = vstv %s3254_s19  ;;  %v412_v9 = vpop.permute.xlu1 %411  ;;  %1297 = vrot.lane.b32.xlu1 %v2352_v37, %s6303_s14  ;;  %s3852_s14 = sld [smem:[#allocation6 + $0x5]] }
 0x38c   :  { %v3554_v63 = vsel %vm6464_vm7, %v6462_v54, 0.0  ;;  %vm6468_vm7 = vmand %vm6463_vm11, %vm6460_vm15 }
 0x38d   :  { %6465 = vst [vmem:[#allocation132_spill] sm:$0xff] %v3554_v63  ;;  %v3571_v54 = vsel %vm6468_vm7, %v6467_v10, 0.0  ;;  %vm6471_vm0 = vmand %vm6463_vm11, %vm6466_vm14  ;;  %v3588_v10 = vpop.permute.xlu0 %626  ;;  %v6477_v63 = vstv %s3308_s22  ;;  %vm6484_vm7 = vcmp.ge.s32.totalorder %v2769_v28, 3 }
 0x38e   :  { %6469 = vst [vmem:[#allocation133_spill] sm:$0xff] %v3571_v54  ;;  %v3580_v61 = vsel %vm6471_vm0, %v6470_v3, 0.0  ;;  %6473 = vst [vmem:[#allocation135_spill] sm:$0xff] %v3588_v10  ;;  %v3594_v54 = vmul.f32 %v3033_v29, %v2352_v37  ;;  %v3598_v3 = vmul.f32 %v3012_v16, %v2346_v35  ;;  %vm6476_vm0 = vcmp.lt.s32.totalorder %v2324_v13, 51 }
 0x38f   :  { %6472 = vst [vmem:[#allocation134_spill] sm:$0xff] %v3580_v61  ;;  %v418_v61 = vsel %vm6476_vm0, %v2475_v39, %v2483_v41  ;;  %vm6478_vm10 = vmand %vm3260_vm8, %vm3304_vm5  ;;  %vm6483_vm0 = vcmp.lt.s32.totalorder %v2769_v28, 19  ;;  %v456_v35 = vstv %s3464_s1  ;;  %v6512_v10 = vstv %s3434_s27  ;;  %s6516_s1 = smov 96   ;;  %1328 = vrot.lane.b32.xlu1 %v2352_v37, %s6318_s21  ;;  %s3894_s21 = sld [smem:[#allocation6 + $0x59]] }
 0x390   :  { %6474 = vst [vmem:[#allocation136_spill] sm:$0xff] %v3594_v54  ;;  %6475 = vst [vmem:[#allocation137_spill] sm:$0xff] %v3598_v3  ;;  %v3612_v29 = vsel %vm6478_vm10, %v6477_v63, 0.0  ;;  %v6480_v54 = vstv %s3338_s2  ;;  %v6487_v63 = vstv %s3340_s25  ;;  %s3660_s25 = sld [smem:[#allocation6 + $0x56]] }
 0x391   :  { %6479 = vst [vmem:[#allocation138_spill] sm:$0xff] %v3612_v29  ;;  %vm6481_vm4 = vmand %vm3260_vm8, %vm3334_vm12  ;;  %v3699_v50 = vpop.permute.xlu0 %657 }
 0x392   :  { %v3621_v16 = vsel %vm6481_vm4, %v6480_v54, 0.0  ;;  %vm3628_vm11 = vmand %vm6484_vm7, %vm6483_vm0  ;;  %v6490_v54 = vstv %s3372_s10  ;;  %s6496_s10 = smov 97   ;;  %6504 = vst [vmem:[#allocation144_spill] sm:$0xff] %v3699_v50 }
 0x393   :  { %6482 = vst [vmem:[#allocation139_spill] sm:$0xff] %v3621_v16  ;;  %vm6488_vm10 = vmand %vm3260_vm8, %vm3368_vm6  ;;  %v6493_v16 = vstv %s3374_s4  ;;  %1543 = vrot.lane.b32.xlu0 %v2349_v36, %s6496_s10  ;;  %1359 = vrot.lane.b32.xlu1 %v2352_v37, %s6326_s24  ;;  %s3955_s24 = sld [smem:[#allocation6 + $0x7]] }
 0x394   :  { %v3639_v29 = vsel %vm6488_vm10, %v6487_v63, 0.0  ;;  %vm6491_vm4 = vmand %vm3260_vm8, %vm6439_vm1  ;;  %vm6497_vm10 = vcmp.lt.s32.totalorder %v2324_v13, 50 }
 0x395   :  { %6489 = vst [vmem:[#allocation140_spill] sm:$0xff] %v3639_v29  ;;  %v3648_v3 = vsel %vm6491_vm4, %v6490_v54, 0.0  ;;  %vm6494_vm7 = vmand %vm3260_vm8, %vm6449_vm2  ;;  %v425_v54 = vstv %s3462_s18  ;;  %vm6503_vm4 = vcmp.lt.s32.totalorder %v2324_v13, 51  ;;  %vm6505_vm2 = vcmp.lt.s32.totalorder %v2324_v13, 49  ;;  %s3759_s18 = sld [smem:[#allocation6 + $0x58]]  ;;  %6541 = sst [smem:[#allocation149_spill]] %s3894_s21 }
 0x396   :  { %6492 = vst [vmem:[#allocation141_spill] sm:$0xff] %v3648_v3  ;;  %v3657_v26 = vsel %vm6494_vm7, %v6493_v16, 0.0  ;;  %v449_v16 = vsel %vm6497_vm10, %v2491_v43, %v2499_v45  ;;  %v6498_v3 = vstv %s3421_s26  ;;  %vm6499_vm7 = vmand %vm3260_vm8, %vm6460_vm15  ;;  %vm6501_vm10 = vnez %v6290_v31 }
 0x397   :  { %6495 = vst [vmem:[#allocation142_spill] sm:$0xff] %v3657_v26  ;;  %v437_v26 = vmul.f32 %v3049_v19, %v418_v61  ;;  %v3689_v29 = vsel %vm6499_vm7, %v6498_v3, 0.0  ;;  %vm6502_vm0 = vmand %vm6501_vm10, %vm6421_vm3  ;;  %v420_v12 = vsel %vm6503_vm4, %v3504_v58, %v412_v9  ;;  %v441_v19 = vpop.permute.xlu1 %440  ;;  %v480_v61 = vsel %vm6505_vm2, %v2473_v38, %v2507_v47  ;;  %1574 = vrot.lane.b32.xlu0 %v2349_v36, %s6516_s1 }
 0x398   :  { %6500 = vst [vmem:[#allocation143_spill] sm:$0xff] %v3689_v29  ;;  %v427_v63 = vsel %vm6502_vm0, %v425_v54, 0.0  ;;  %v6506_v3 = vstv %s3430_s5  ;;  %vm6507_vm0 = vmand %vm3260_vm8, %vm6466_vm14  ;;  %vm6511_vm2 = vcmp.lt.s32.totalorder %v2324_v13, 51  ;;  %v3728_v62 = vmul.f32 %v3058_v0, %v449_v16 }
 0x399   :  { %v3713_v29 = vsel %vm6507_vm0, %v6506_v3, 0.0  ;;  %vm6510_vm4 = vmand %vm3628_vm11, %vm3304_vm5  ;;  %v419_v59 = vsel %vm6511_vm2, %v412_v9, %v2475_v39  ;;  %v433_v9 = vmul.f32 %v427_v63, %v420_v12  ;;  %v6523_v12 = vstv %s2886_s13  ;;  %s6527_s13 = smov 95  }
 0x39a   :  { %6508 = vst [vmem:[#allocation145_spill] sm:$0xff] %v3713_v29  ;;  %v430_v50 = vsel %vm6510_vm4, %v6509_v20, 0.0  ;;  %vm6513_vm0 = vmand %vm3530_vm9, %vm3304_vm5  ;;  %v426_v20 = vsel %vm6510_vm4, %v425_v54, 0.0  ;;  %vm6518_vm4 = vcmp.lt.s32.totalorder %v2324_v13, 51  ;;  %v3774_v54 = vmul.f32 %v3097_v17, %v480_v61 }
 0x39b   :  { %v3737_v3 = vsel %vm6513_vm0, %v6512_v10, 0.0  ;;  %vm6515_vm2 = vmand %vm3628_vm11, %vm3334_vm12  ;;  %6517 = sst [smem:[#allocation147_spill]] %s3759_s18  ;;  %v421_v0 = vsel %vm6518_vm4, %v2483_v41, %v3504_v58  ;;  %v436_v29 = vmul.f32 %v430_v50, %v419_v59  ;;  %v3779_v41 = vpop.permute.xlu0 %688  ;;  %v443_v58 = vpop.permute.xlu1 %442  ;;  %vm6525_vm0 = vcmp.lt.s32.totalorder %v2324_v13, 50  ;;  %1605 = vrot.lane.b32.xlu0 %v2349_v36, %s6527_s13 }
 0x39c   :  { %6514 = vst [vmem:[#allocation146_spill] sm:$0xff] %v3737_v3  ;;  %v457_v39 = vsel %vm6515_vm2, %v456_v35, 0.0  ;;  %vm6519_vm2 = vcmp.lt.s32.totalorder %v2324_v13, 50  ;;  %vm6520_vm7 = vmand %vm6501_vm10, %vm2856_vm13  ;;  %v450_v59 = vsel %vm6525_vm0, %v443_v58, %v2491_v43  ;;  %v6167_v63 = vstv %s3660_s25 }
 0x39d   :  { %v452_v10 = vsel %vm6519_vm2, %v2499_v45, %v441_v19  ;;  %v458_v16 = vsel %vm6520_vm7, %v456_v35, 0.0  ;;  %6521 = vst [vmem:[#allocation148_spill] sm:$0xff] %v3779_v41  ;;  %v487_v45 = vstv %s3590_s23  ;;  %vm6522_vm7 = vcmp.lt.s32.totalorder %v2324_v13, 48  ;;  %vm6524_vm2 = vmand %vm3628_vm11, %vm3334_vm12  ;;  %s6534_s23 = smov 94  }
 0x39e   :  { %v511_v35 = vsel %vm6522_vm7, %v2481_v40, %v2515_v49  ;;  %v461_v50 = vsel %vm6524_vm2, %v6523_v12, 0.0  ;;  %vm6526_vm8 = vmmov %vm6525_vm0  ;;  %v432_v61 = vmul.f32 %v426_v20, %v421_v0  ;;  %v463_v3 = vmul.f32 %v457_v39, %v452_v10 }
 0x39f   :  { %v451_v17 = vsel %vm6526_vm8, %v441_v19, %v443_v58  ;;  %vm6164_vm4 = vmand %vm3530_vm9, %vm3368_vm6  ;;  %vm6528_vm8 = vcmp.lt.s32.totalorder %v2324_v13, 47  ;;  %v6529_v19 = vstv %s3586_s7  ;;  %v439_v39 = vadd.f32 %v437_v26, %v433_v9  ;;  %v472_v26 = vpop.permute.xlu1 %471  ;;  %1636 = vrot.lane.b32.xlu0 %v2349_v36, %s6534_s23 }
 0x3a0   :  { %v464_v41 = vmul.f32 %v458_v16, %v451_v17  ;;  %v542_v43 = vsel %vm6528_vm8, %v2489_v42, %v2523_v51  ;;  %vm6530_vm0 = vmand %vm3530_vm9, %vm3334_vm12  ;;  %v3830_v10 = vmul.f32 %v3106_v8, %v511_v35  ;;  %vm6532_vm2 = vcmp.lt.s32.totalorder %v2324_v13, 46  ;;  %v3836_v17 = vpop.permute.xlu0 %719 }
 0x3a1   :  { %v3822_v20 = vsel %vm6530_vm0, %v6529_v19, 0.0  ;;  %vm6531_vm7 = vmand %vm3628_vm11, %vm3368_vm6  ;;  %v573_v16 = vsel %vm6532_vm2, %v2497_v44, %v2531_v53  ;;  %v438_v58 = vadd.f32 %v436_v29, %v432_v61  ;;  %v467_v12 = vmul.f32 %v461_v50, %v450_v59 }
 0x3a2   :  { %v488_v0 = vsel %vm6531_vm7, %v487_v45, 0.0  ;;  %v3845_v9 = vsel %vm6164_vm4, %v6167_v63, 0.0  ;;  %v518_v8 = vstv %s3715_s8  ;;  %v466_v29 = vadd.f32 %v464_v41, %v439_v39  ;;  %vm6539_vm8 = vmand %vm3628_vm11, %vm3368_vm6  ;;  %s6546_s8 = smov 93  }
 0x3a3   :  { %vm6533_vm0 = vcmp.lt.s32.totalorder %v2324_v13, 49  ;;  %v3858_v50 = vmul.f32 %v3127_v1, %v542_v43  ;;  %v6193_v59 = vstv %s3739_s12  ;;  %v465_v61 = vadd.f32 %v463_v3, %v438_v58  ;;  %v474_v58 = vpop.permute.xlu1 %473  ;;  %1667 = vrot.lane.b32.xlu0 %v2349_v36, %s6546_s8 }
 0x3a4   :  { %v483_v35 = vsel %vm6533_vm0, %v2507_v47, %v472_v26  ;;  %v3870_v47 = vmul.f32 %v3136_v4, %v573_v16  ;;  %vm6535_vm2 = vnez %v6364_v6  ;;  %vm6536_vm4 = vnez %v6298_v24  ;;  %v3908_v16 = vpop.permute.xlu0 %750 }
 0x3a5   :  { %v494_v19 = vmul.f32 %v488_v0, %v483_v35  ;;  %vm6537_vm7 = vmand %vm6501_vm10, %vm6536_vm4  ;;  %v6538_v41 = vstv %s2910_s15  ;;  %vm6540_vm13 = vcmp.lt.s32.totalorder %v2324_v13, 45  ;;  %v549_v39 = vstv %s3777_s9  ;;  %s3906_s15 = sld [smem:[#allocation6 + $0x6]]  ;;  %s6558_s9 = smov 111  }
 0x3a6   :  { %v489_v3 = vsel %vm6537_vm7, %v487_v45, 0.0  ;;  %v492_v4 = vsel %vm6539_vm8, %v6538_v41, 0.0  ;;  %v604_v43 = vsel %vm6540_vm13, %v2505_v46, %v2539_v55  ;;  %vm6542_vm7 = vmand %vm3628_vm11, %vm6439_vm1  ;;  %v469_v0 = vadd.f32 %v467_v12, %v465_v61  ;;  %1390 = vrot.lane.b32.xlu1 %v2352_v37, %s6558_s9  ;;  %s6564_s9 = sld [smem:[#allocation85_spill]] }
 0x3a7   :  { %v519_v45 = vsel %vm6542_vm7, %v518_v8, 0.0  ;;  %vm6543_vm13 = vcmp.lt.s32.totalorder %v2324_v13, 48  ;;  %v470_v41 = vadd.f32 %v3728_v62, %v466_v29  ;;  %vm6544_vm7 = vmmov %vm6533_vm0  ;;  %v482_v1 = vsel %vm6533_vm0, %v472_v26, %v474_v58 }
 0x3a8   :  { %v514_v35 = vsel %vm6543_vm13, %v2515_v49, %v3186_v11  ;;  %v481_v63 = vsel %vm6544_vm7, %v474_v58, %v2473_v38  ;;  %vm6545_vm8 = vmand %vm3530_vm9, %vm6439_vm1  ;;  %v496_v61 = vadd.f32 %v494_v19, %v469_v0  ;;  %v495_v49 = vmul.f32 %v489_v3, %v482_v1  ;;  %v505_v58 = vpop.permute.xlu1 %504 }
 0x3a9   :  { %v3927_v12 = vsel %vm6545_vm8, %v6193_v59, 0.0  ;;  %v498_v62 = vmul.f32 %v492_v4, %v481_v63  ;;  %v3934_v38 = vmul.f32 %v3153_v15, %v604_v43  ;;  %v6547_v26 = vstv %s3759_s18  ;;  %vm6548_vm0 = vmand %vm3530_vm9, %vm6535_vm2  ;;  %v3957_v4 = vpop.permute.xlu0 %781  ;;  %s6574_s18 = smov 110  }
 0x3aa   :  { %v3943_v29 = vsel %vm6548_vm0, %v6547_v26, 0.0  ;;  %vm6549_vm8 = vmand %vm3628_vm11, %vm6535_vm2  ;;  %vm6550_vm13 = vnez %v6277_v32  ;;  %v525_v19 = vmul.f32 %v519_v45, %v514_v35  ;;  %v497_v1 = vadd.f32 %v495_v49, %v470_v41  ;;  %1421 = vrot.lane.b32.xlu1 %v2352_v37, %s6574_s18  ;;  %s4076_s18 = sld [smem:[#allocation6 + $0x9]] }
 0x3ab   :  { %v550_v63 = vsel %vm6549_vm8, %v549_v39, 0.0  ;;  %vm6551_vm7 = vmand %vm6501_vm10, %vm6550_vm13  ;;  %v500_v3 = vadd.f32 %v498_v62, %v496_v61  ;;  %v6552_v43 = vstv %s2916_s16  ;;  %vm6554_vm13 = vcmp.lt.s32.totalorder %v2324_v13, 48  ;;  %s6557_s16 = smov 83  }
 0x3ac   :  { %v520_v15 = vsel %vm6551_vm7, %v518_v8, 0.0  ;;  %vm6553_vm0 = vmand %vm3628_vm11, %vm6439_vm1  ;;  %v580_v8 = vstv %s3852_s14  ;;  %v512_v45 = vsel %vm6554_vm13, %v505_v58, %v2481_v40  ;;  %v501_v61 = vadd.f32 %v3774_v54, %v497_v1  ;;  %1698 = vrot.lane.b32.xlu0 %v2349_v36, %s6557_s16  ;;  %s4006_s14 = sld [smem:[#allocation6 + $0x5a]] }
 0x3ad   :  { %v523_v0 = vsel %vm6553_vm0, %v6552_v43, 0.0  ;;  %vm6555_vm4 = vmmov %vm6554_vm13  ;;  %vm6556_vm0 = vcmp.lt.s32.totalorder %v2324_v13, 47  ;;  %v527_v49 = vadd.f32 %v525_v19, %v500_v3  ;;  %v6190_v26 = vstv %s3894_s21  ;;  %v4016_v1 = vpop.permute.xlu0 %812  ;;  %v536_v3 = vpop.permute.xlu1 %535  ;;  %s6587_s21 = smov 109  }
 0x3ae   :  { %v513_v35 = vsel %vm6555_vm4, %v3186_v11, %v505_v58  ;;  %v545_v41 = vsel %vm6556_vm0, %v2523_v51, %v3268_v7  ;;  %v529_v40 = vmul.f32 %v523_v0, %v512_v45  ;;  %vm6559_vm4 = vnez %v6302_v27  ;;  %vm6562_vm0 = vmmov %vm6549_vm8  ;;  %1452 = vrot.lane.b32.xlu1 %v2352_v37, %s6587_s21  ;;  %s4126_s21 = sld [smem:[#allocation6 + $0xa]] }
 0x3af   :  { %v526_v62 = vmul.f32 %v520_v15, %v513_v35  ;;  %vm6560_vm13 = vmand %vm6501_vm10, %vm6559_vm4  ;;  %v6561_v51 = vstv %s2924_s17  ;;  %v611_v15 = vstv %s3906_s15  ;;  %s4014_s17 = sld [smem:[#allocation6 + $0x8]]  ;;  %v556_v43 = vmul.f32 %v550_v63, %v545_v41  ;;  %s6572_s15 = smov 82  }
 0x3b0   :  { %v551_v11 = vsel %vm6560_vm13, %v549_v39, 0.0  ;;  %v554_v54 = vsel %vm6562_vm0, %v6561_v51, 0.0  ;;  %vm6563_vm13 = vmand %vm3628_vm11, %vm6460_vm15  ;;  %v531_v0 = vadd.f32 %v529_v40, %v527_v49  ;;  %vm6565_vm8 = vcmp.lt.s32.totalorder %v2324_v13, 47  ;;  %1729 = vrot.lane.b32.xlu0 %v2349_v36, %s6572_s15 }
 0x3b1   :  { %v581_v39 = vsel %vm6563_vm13, %v580_v8, 0.0  ;;  %v528_v19 = vadd.f32 %v526_v62, %v501_v61  ;;  %v543_v58 = vsel %vm6565_vm8, %v536_v3, %v2489_v42  ;;  %vm6566_vm13 = vmmov %vm6565_vm8  ;;  %vm6567_vm7 = vcmp.lt.s32.totalorder %v2324_v13, 46 }
 0x3b2   :  { %v544_v45 = vsel %vm6566_vm13, %v3268_v7, %v536_v3  ;;  %v576_v63 = vsel %vm6567_vm7, %v2531_v53, %v3403_v5  ;;  %vm6568_vm4 = vcmp.lt.s32.totalorder %v2769_v28, 18  ;;  %vm6569_vm2 = vcmp.ge.s32.totalorder %v2769_v28, 2  ;;  %vm6579_vm13 = vmand %vm3530_vm9, %vm6460_vm15  ;;  %1483 = vrot.lane.b32.xlu1 %v2352_v37, %s6431_s11  ;;  %s4181_s11 = sld [smem:[#allocation6 + $0xb]] }
 0x3b3   :  { %vm4036_vm0 = vmand %vm6569_vm2, %vm6568_vm4  ;;  %v532_v41 = vadd.f32 %v3830_v10, %v528_v19  ;;  %v557_v42 = vmul.f32 %v551_v11, %v544_v45  ;;  %v560_v61 = vmul.f32 %v554_v54, %v543_v58  ;;  %vm6573_vm8 = vcmp.lt.s32.totalorder %v2324_v13, 35  ;;  %v4078_v54 = vpop.permute.xlu0 %843  ;;  %v567_v19 = vpop.permute.xlu1 %566 }
 0x3b4   :  { %v635_v53 = vsel %vm6573_vm8, %v2513_v48, %v2547_v57  ;;  %v558_v7 = vadd.f32 %v556_v43, %v531_v0  ;;  %vm6575_vm2 = vnez %v6305_v18  ;;  %v6577_v49 = vstv %s6564_s9  ;;  %vm6578_vm4 = vmand %vm3628_vm11, %vm6460_vm15  ;;  %s6582_s9 = sld [smem:[#allocation88_spill]] }
 0x3b5   :  { %vm6576_vm7 = vmand %vm6501_vm10, %vm6575_vm2  ;;  %v585_v62 = vsel %vm6578_vm4, %v6577_v49, 0.0  ;;  %v4068_v40 = vsel %vm6579_vm13, %v6190_v26, 0.0  ;;  %v642_v11 = vstv %s3955_s24  ;;  %v559_v51 = vadd.f32 %v557_v42, %v532_v41  ;;  %s6586_s24 = smov 81   ;;  %v6831_v26 = vld [vmem:[#allocation47_spill] sm:$0xff] }
 0x3b6   :  { %v582_v10 = vsel %vm6576_vm7, %v580_v8, 0.0  ;;  %6580 = vst [vmem:[#allocation150_spill] sm:$0xff] %v4068_v40  ;;  %vm6581_vm8 = vmand %vm3628_vm11, %vm6466_vm14  ;;  %v587_v3 = vmul.f32 %v581_v39, %v576_v63  ;;  %v562_v43 = vadd.f32 %v560_v61, %v558_v7  ;;  %vm6583_vm13 = vcmp.lt.s32.totalorder %v2324_v13, 46  ;;  %1760 = vrot.lane.b32.xlu0 %v2349_v36, %s6586_s24  ;;  %1514 = vrot.lane.b32.xlu1 %v2352_v37, %s6461_s20  ;;  %s4227_s20 = sld [smem:[#allocation6 + $0xc]] }
 0x3b7   :  { %v612_v8 = vsel %vm6581_vm8, %v611_v15, 0.0  ;;  %v574_v0 = vsel %vm6583_vm13, %v567_v19, %v2497_v44  ;;  %vm6584_vm8 = vmmov %vm6583_vm13  ;;  %vm6585_vm7 = vcmp.lt.s32.totalorder %v2324_v13, 45  ;;  %v563_v45 = vadd.f32 %v3858_v50, %v559_v51  ;;  %v4128_v61 = vpop.permute.xlu0 %874  ;;  %v6596_v51 = vld [vmem:[#allocation135_spill] sm:$0xff] }
 0x3b8   :  { %v575_v58 = vsel %vm6584_vm8, %v3403_v5, %v567_v19  ;;  %v607_v39 = vsel %vm6585_vm7, %v2539_v55, %v3502_v33  ;;  %v591_v41 = vmul.f32 %v585_v62, %v574_v0  ;;  %v4099_v42 = vmul.f32 %v3162_v2, %v635_v53  ;;  %vm6591_vm7 = vmand %vm3628_vm11, %vm6466_vm14  ;;  %v598_v53 = vpop.permute.xlu1 %597  ;;  %v6599_v0 = vld [vmem:[#allocation18_spill] sm:$0xff] }
 0x3b9   :  { %v588_v63 = vmul.f32 %v582_v10, %v575_v58  ;;  %v589_v44 = vadd.f32 %v587_v3, %v562_v43  ;;  %vm6588_vm13 = vnez %v6312_v25  ;;  %vm6171_vm4 = vmand %vm3530_vm9, %vm6466_vm14  ;;  %v6189_v2 = vstv %s4006_s14  ;;  %v6600_v58 = vld [vmem:[#allocation13_spill] sm:$0xff] }
 0x3ba   :  { %vm6589_vm8 = vmand %vm6501_vm10, %vm6588_vm13  ;;  %v6590_v5 = vstv %s6582_s9  ;;  %s6593_s9 = sld [smem:[#allocation89_spill]]  ;;  %v618_v7 = vmul.f32 %v612_v8, %v607_v39  ;;  %1545 = vrot.lane.b32.xlu1 %v2352_v37, %s6496_s10  ;;  %s4274_s10 = sld [smem:[#allocation6 + $0xd]] }
 0x3bb   :  { %v613_v55 = vsel %vm6589_vm8, %v611_v15, 0.0  ;;  %v616_v50 = vsel %vm6591_vm7, %v6590_v5, 0.0  ;;  %vm6592_vm2 = vmand %vm4036_vm0, %vm3304_vm5  ;;  %v673_v15 = vstv %s4014_s17  ;;  %v590_v34 = vadd.f32 %v588_v63, %v563_v45  ;;  %s6598_s17 = smov 80   ;;  %v6604_v45 = vld [vmem:[#allocation82_spill] sm:$0xff]  ;;  %v4183_v5 = vpop.permute.xlu0 %905 }
 0x3bc   :  { %v643_v31 = vsel %vm6592_vm2, %v642_v11, 0.0  ;;  %vm670_vm10 = vmand %vm4036_vm0, %vm3334_vm12  ;;  %v593_v10 = vadd.f32 %v591_v41, %v589_v44  ;;  %vm6594_vm2 = vcmp.lt.s32.totalorder %v2324_v13, 45  ;;  %vm6597_vm7 = vcmp.lt.s32.totalorder %v2324_v13, 35  ;;  %1791 = vrot.lane.b32.xlu0 %v2349_v36, %s6598_s17 }
 0x3bd   :  { %v605_v49 = vsel %vm6594_vm2, %v598_v53, %v2505_v46  ;;  %vm6595_vm8 = vmmov %vm6594_vm2  ;;  %v638_v8 = vsel %vm6597_vm7, %v2547_v57, %v6596_v51  ;;  %v594_v19 = vadd.f32 %v3870_v47, %v590_v34  ;;  %vm6601_vm2 = vcmp.lt.s32.totalorder %v2324_v13, 34 }
 0x3be   :  { %v606_v62 = vsel %vm6595_vm8, %v3502_v33, %v598_v53  ;;  %v622_v43 = vmul.f32 %v616_v50, %v605_v49  ;;  %v666_v46 = vsel %vm6601_vm2, %v6600_v58, %v6599_v0  ;;  %v620_v39 = vadd.f32 %v618_v7, %v593_v10  ;;  %v6602_v33 = vld [vmem:[#allocation90_spill] sm:$0xff]  ;;  %vm6607_vm11 = vmand %vm4036_vm0, %vm3304_vm5  ;;  %v629_v50 = vpop.permute.xlu1 %628  ;;  %1576 = vrot.lane.b32.xlu1 %v2352_v37, %s6516_s1  ;;  %s4317_s1 = sld [smem:[#allocation6 + $0xe]] }
 0x3bf   :  { %v619_v3 = vmul.f32 %v613_v55, %v606_v62  ;;  %vm6603_vm8 = vnez %v6602_v33  ;;  %v4173_v41 = vsel %vm6171_vm4, %v6189_v2, 0.0  ;;  %v704_v44 = vstv %s4076_s18  ;;  %v6612_v49 = vld [vmem:[#allocation144_spill] sm:$0xff]  ;;  %s6614_s18 = smov 79   ;;  %vm6636_vm9 = vmand %vm4036_vm0, %vm6439_vm1  ;;  %v6830_v2 = vld [vmem:[#allocation56_spill] sm:$0xff] }
 0x3c0   :  { %vm6605_vm7 = vmand %vm6603_vm8, %vm6421_vm3  ;;  %v6606_v47 = vstv %s6593_s9  ;;  %6608 = vst [vmem:[#allocation135_spill] sm:$0xff] %v4173_v41  ;;  %s6609_s9 = sld [smem:[#allocation93_spill]]  ;;  %v649_v34 = vmul.f32 %v643_v31, %v638_v8  ;;  %v624_v53 = vadd.f32 %v622_v43, %v620_v39  ;;  %vm6610_vm2 = vcmp.lt.s32.totalorder %v2324_v13, 35  ;;  %1822 = vrot.lane.b32.xlu0 %v2349_v36, %s6614_s18  ;;  %v6912_v41 = vld [vmem:[#allocation61_spill] sm:$0xff] }
 0x3c1   :  { %v644_v57 = vsel %vm6605_vm7, %v642_v11, 0.0  ;;  %v647_v63 = vsel %vm6607_vm11, %v6606_v47, 0.0  ;;  %v674_v11 = vsel %vm670_vm10, %v673_v15, 0.0  ;;  %v621_v55 = vadd.f32 %v619_v3, %v594_v19  ;;  %vm6172_vm11 = vmand %vm4036_vm0, %vm3368_vm6  ;;  %v6615_v3 = vld [vmem:[#allocation111_spill] sm:$0xff] }
 0x3c2   :  { %v636_v7 = vsel %vm6610_vm2, %v629_v50, %v2513_v48  ;;  %vm6611_vm7 = vmmov %vm6610_vm2  ;;  %vm6613_vm4 = vcmp.lt.s32.totalorder %v2324_v13, 34  ;;  %v685_v43 = vmul.f32 %v6615_v3, %v666_v46  ;;  %v651_v39 = vadd.f32 %v649_v34, %v624_v53  ;;  %1607 = vrot.lane.b32.xlu1 %v2352_v37, %s6527_s13  ;;  %s4363_s13 = sld [smem:[#allocation6 + $0xf]] }
 0x3c3   :  { %v637_v10 = vsel %vm6611_vm7, %v6596_v51, %v629_v50  ;;  %v669_v31 = vsel %vm6613_vm4, %v6599_v0, %v6612_v49  ;;  %v625_v62 = vadd.f32 %v3934_v38, %v621_v55  ;;  %v653_v19 = vmul.f32 %v647_v63, %v636_v7  ;;  %v6619_v0 = vld [vmem:[#allocation20_spill] sm:$0xff]  ;;  %v4229_v55 = vpop.permute.xlu0 %936  ;;  %v660_v50 = vpop.permute.xlu1 %659 }
 0x3c4   :  { %v650_v8 = vmul.f32 %v644_v57, %v637_v10  ;;  %vm6616_vm2 = vnez %v6296_v30  ;;  %v6620_v57 = vld [vmem:[#allocation14_spill] sm:$0xff]  ;;  %vm6621_vm4 = vcmp.lt.s32.totalorder %v2324_v13, 33  ;;  %v705_v47 = vsel %vm6172_vm11, %v704_v44, 0.0 }
 0x3c5   :  { %vm6617_vm7 = vmand %vm6603_vm8, %vm6616_vm2  ;;  %v697_v46 = vsel %vm6621_vm4, %v6620_v57, %v6619_v0  ;;  %v735_v63 = vstv %s4126_s21  ;;  %v680_v34 = vmul.f32 %v674_v11, %v669_v31  ;;  %v655_v53 = vadd.f32 %v653_v19, %v651_v39  ;;  %s6627_s21 = smov 78   ;;  %v6628_v19 = vld [vmem:[#allocation112_spill] sm:$0xff] }
 0x3c6   :  { %v675_v48 = vsel %vm6617_vm7, %v673_v15, 0.0  ;;  %v6618_v51 = vstv %s6609_s9  ;;  %v652_v15 = vadd.f32 %v650_v8, %v625_v62  ;;  %s6622_s9 = sld [smem:[#allocation94_spill]]  ;;  %vm6623_vm4 = vcmp.lt.s32.totalorder %v2324_v13, 34  ;;  %v6625_v62 = vld [vmem:[#allocation148_spill] sm:$0xff]  ;;  %1853 = vrot.lane.b32.xlu0 %v2349_v36, %s6627_s21  ;;  %1638 = vrot.lane.b32.xlu1 %v2352_v37, %s6534_s23  ;;  %s4415_s23 = sld [smem:[#allocation6 + $0x10]] }
 0x3c7   :  { %v678_v38 = vsel %vm670_vm10, %v6618_v51, 0.0  ;;  %v667_v7 = vsel %vm6623_vm4, %v660_v50, %v6600_v58  ;;  %vm6624_vm11 = vmmov %vm6623_vm4  ;;  %vm6626_vm10 = vcmp.lt.s32.totalorder %v2324_v13, 33  ;;  %v716_v39 = vmul.f32 %v6628_v19, %v697_v46 }
 0x3c8   :  { %v668_v10 = vsel %vm6624_vm11, %v6612_v49, %v660_v50  ;;  %v700_v11 = vsel %vm6626_vm10, %v6619_v0, %v6625_v62  ;;  %v656_v31 = vadd.f32 %v4099_v42, %v652_v15  ;;  %v684_v3 = vmul.f32 %v678_v38, %v667_v7  ;;  %vm6632_vm10 = vmand %vm4036_vm0, %vm3368_vm6  ;;  %v6634_v38 = vld [vmem:[#allocation15_spill] sm:$0xff]  ;;  %v4276_v50 = vpop.permute.xlu0 %967 }
 0x3c9   :  { %v681_v8 = vmul.f32 %v675_v48, %v668_v10  ;;  %v682_v51 = vadd.f32 %v680_v34, %v655_v53  ;;  %vm6629_vm11 = vnez %v6298_v24  ;;  %v6633_v48 = vld [vmem:[#allocation22_spill] sm:$0xff]  ;;  %vm6635_vm7 = vcmp.lt.s32.totalorder %v2324_v13, 32  ;;  %v691_v34 = vpop.permute.xlu1 %690 }
 0x3ca   :  { %vm6630_vm4 = vmand %vm6603_vm8, %vm6629_vm11  ;;  %v728_v0 = vsel %vm6635_vm7, %v6634_v38, %v6633_v48  ;;  %v736_v46 = vsel %vm6636_vm9, %v735_v63, 0.0  ;;  %v766_v15 = vstv %s4181_s11  ;;  %v711_v53 = vmul.f32 %v705_v47, %v700_v11  ;;  %s2269_s11 = smov 77   ;;  %1669 = vrot.lane.b32.xlu1 %v2352_v37, %s6546_s8  ;;  %s4459_s8 = sld [smem:[#allocation6 + $0x11]] }
 0x3cb   :  { %v706_v58 = vsel %vm6630_vm4, %v704_v44, 0.0  ;;  %v683_v44 = vadd.f32 %v681_v8, %v656_v31  ;;  %v686_v7 = vadd.f32 %v684_v3, %v682_v51  ;;  %vm6639_vm9 = vcmp.lt.s32.totalorder %v2324_v13, 33  ;;  %1884 = vrot.lane.b32.xlu0 %v2349_v36, %s2269_s11  ;;  %v6642_v3 = vld [vmem:[#allocation114_spill] sm:$0xff] }
 0x3cc   :  { %v6631_v49 = vstv %s6622_s9  ;;  %s6637_s9 = sld [smem:[#allocation96_spill]]  ;;  %v698_v10 = vsel %vm6639_vm9, %v691_v34, %v6620_v57  ;;  %vm6640_vm11 = vmmov %vm6639_vm9  ;;  %vm6641_vm4 = vcmp.lt.s32.totalorder %v2324_v13, 32  ;;  %v747_v51 = vmul.f32 %v6642_v3, %v728_v0 }
 0x3cd   :  { %v709_v42 = vsel %vm6632_vm10, %v6631_v49, 0.0  ;;  %vm6638_vm10 = vnez %v6364_v6  ;;  %v699_v31 = vsel %vm6640_vm11, %v6625_v62, %v691_v34  ;;  %v731_v47 = vsel %vm6641_vm4, %v6633_v48, %v3836_v17  ;;  %vm6646_vm4 = vmand %vm4036_vm0, %vm6439_vm1  ;;  %v722_v48 = vpop.permute.xlu1 %721 }
 0x3ce   :  { %vm6175_vm7 = vmand %vm4036_vm0, %vm6638_vm10  ;;  %v687_v11 = vadd.f32 %v685_v43, %v683_v44  ;;  %v712_v8 = vmul.f32 %v706_v58, %v699_v31  ;;  %v715_v19 = vmul.f32 %v709_v42, %v698_v10  ;;  %v713_v49 = vadd.f32 %v711_v53, %v686_v7  ;;  %v6650_v7 = vld [vmem:[#allocation24_spill] sm:$0xff]  ;;  %1700 = vrot.lane.b32.xlu1 %v2352_v37, %s6557_s16  ;;  %s4503_s16 = sld [smem:[#allocation6 + $0x12]] }
 0x3cf   :  { %vm6643_vm11 = vnez %v6277_v32  ;;  %v767_v36 = vsel %vm6175_vm7, %v766_v15, 0.0  ;;  %v797_v58 = vstv %s4227_s20  ;;  %v742_v0 = vmul.f32 %v736_v46, %v731_v47  ;;  %s6660_s20 = sld [smem:[#allocation99_spill]] }
 0x3d0   :  { %vm6644_vm9 = vmand %vm6603_vm8, %vm6643_vm11  ;;  %v714_v42 = vadd.f32 %v712_v8, %v687_v11  ;;  %v717_v44 = vadd.f32 %v715_v19, %v713_v49  ;;  %vm6648_vm2 = vcmp.lt.s32.totalorder %v2324_v13, 32  ;;  %v6652_v11 = vld [vmem:[#allocation11_spill] sm:$0xff]  ;;  %v6657_v19 = vld [vmem:[#allocation16_spill] sm:$0xff] }
 0x3d1   :  { %v737_v57 = vsel %vm6644_vm9, %v735_v63, 0.0  ;;  %v4319_v63 = vpop.permute.xlu0 %998  ;;  %v729_v34 = vsel %vm6648_vm2, %v722_v48, %v6634_v38  ;;  %vm6649_vm7 = vmmov %vm6648_vm2  ;;  %vm6651_vm9 = vcmp.lt.s32.totalorder %v2324_v13, 31  ;;  %1888 = vrot.lane.b32.xlu0 %v6652_v11, %s2269_s11  ;;  %vm6653_vm2 = vnez %v6302_v27 }
 0x3d2   :  { %v6645_v62 = vstv %s6637_s9  ;;  %s6647_s9 = sld [smem:[#allocation97_spill]]  ;;  %v730_v53 = vsel %vm6649_vm7, %v3836_v17, %v722_v48  ;;  %v762_v46 = vsel %vm6651_vm9, %v6650_v7, %v3908_v16  ;;  %v718_v10 = vadd.f32 %v716_v39, %v714_v42  ;;  %vm6654_vm7 = vmand %vm6603_vm8, %vm6653_vm2  ;;  %1731 = vrot.lane.b32.xlu1 %v2352_v37, %s6572_s15  ;;  %s4547_s15 = sld [smem:[#allocation6 + $0x13]] }
 0x3d3   :  { %v740_v43 = vsel %vm6646_vm4, %v6645_v62, 0.0  ;;  %v743_v31 = vmul.f32 %v737_v57, %v730_v53  ;;  %v744_v8 = vadd.f32 %v742_v0, %v717_v44  ;;  %v768_v17 = vsel %vm6654_vm7, %v766_v15, 0.0  ;;  %vm6656_vm9 = vmand %vm4036_vm0, %vm6638_vm10 }
 0x3d4   :  { %v746_v47 = vmul.f32 %v740_v43, %v729_v34  ;;  %vm6658_vm4 = vcmp.lt.s32.totalorder %v2324_v13, 31  ;;  %vm6659_vm11 = vmand %vm4036_vm0, %vm6460_vm15  ;;  %v828_v57 = vstv %s4274_s10  ;;  %v753_v43 = vpop.permute.xlu1 %752  ;;  %v773_v42 = vmul.f32 %v767_v36, %v762_v46  ;;  %v6663_v34 = vld [vmem:[#allocation26_spill] sm:$0xff]  ;;  %s6677_s10 = sld [smem:[#allocation100_spill]] }
 0x3d5   :  { %v759_v3 = vsel %vm6658_vm4, %v6657_v19, %v6650_v7  ;;  %v798_v49 = vsel %vm6659_vm11, %v797_v58, 0.0  ;;  %v745_v15 = vadd.f32 %v743_v31, %v718_v10  ;;  %v4365_v62 = vpop.permute.xlu0 %1029  ;;  %vm6661_vm11 = vmmov %vm6658_vm4  ;;  %vm6664_vm7 = vcmp.lt.s32.totalorder %v2324_v13, 30  ;;  %v6669_v31 = vld [vmem:[#allocation115_spill] sm:$0xff] }
 0x3d6   :  { %v748_v48 = vadd.f32 %v746_v47, %v744_v8  ;;  %v760_v0 = vsel %vm6661_vm11, %v753_v43, %v6657_v19  ;;  %v793_v36 = vsel %vm6664_vm7, %v6663_v34, %v3957_v4  ;;  %vm6665_vm2 = vcmp.lt.s32.totalorder %v2769_v28, 17  ;;  %1762 = vrot.lane.b32.xlu1 %v2352_v37, %s6586_s24  ;;  %s4591_s24 = sld [smem:[#allocation6 + $0x14]] }
 0x3d7   :  { %vm6666_vm10 = vcmp.ge.s32.totalorder %v2769_v28, 1  ;;  %v749_v7 = vadd.f32 %v747_v51, %v745_v15  ;;  %v778_v47 = vmul.f32 %v6669_v31, %v759_v3  ;;  %vm6670_vm7 = vnez %v6305_v18 }
 0x3d8   :  { %v6655_v38 = vstv %s6647_s9  ;;  %v775_v11 = vadd.f32 %v773_v42, %v748_v48  ;;  %vm6671_vm11 = vmand %vm6603_vm8, %vm6670_vm7  ;;  %v6672_v8 = vstv %s6660_s20  ;;  %v859_v19 = vstv %s4317_s1  ;;  %v784_v15 = vpop.permute.xlu1 %783  ;;  %s6687_s1 = sld [smem:[#allocation103_spill]]  ;;  %s6699_s9 = sld [smem:[#allocation104_spill]] }
 0x3d9   :  { %v771_v39 = vsel %vm6656_vm9, %v6655_v38, 0.0  ;;  %vm6662_vm9 = vmmov %vm6658_vm4  ;;  %v4417_v3 = vpop.permute.xlu0 %1060  ;;  %s6721_s20 = sld [smem:[#allocation106_spill]] }
 0x3da   :  { %v761_v44 = vsel %vm6662_vm9, %v3908_v16, %v753_v43  ;;  %vm4386_vm4 = vmand %vm6666_vm10, %vm6665_vm2  ;;  %v777_v10 = vmul.f32 %v771_v39, %v760_v0  ;;  %v799_v16 = vsel %vm6671_vm11, %v797_v58, 0.0  ;;  %vm6675_vm2 = vcmp.lt.s32.totalorder %v2324_v13, 30  ;;  %1793 = vrot.lane.b32.xlu1 %v2352_v37, %s6598_s17  ;;  %s4635_s17 = sld [smem:[#allocation6 + $0x15]] }
 0x3db   :  { %v774_v46 = vmul.f32 %v768_v17, %v761_v44  ;;  %vm6673_vm10 = vmand %vm4036_vm0, %vm6460_vm15  ;;  %v6674_v17 = vld [vmem:[#allocation17_spill] sm:$0xff]  ;;  %v804_v43 = vmul.f32 %v798_v49, %v793_v36  ;;  %v6679_v44 = vld [vmem:[#allocation28_spill] sm:$0xff]  ;;  %vm6680_vm11 = vcmp.lt.s32.totalorder %v2324_v13, 29 }
 0x3dc   :  { %v802_v51 = vsel %vm6673_vm10, %v6672_v8, 0.0  ;;  %v790_v38 = vsel %vm6675_vm2, %v6674_v17, %v6663_v34  ;;  %vm6676_vm9 = vmand %vm4036_vm0, %vm6466_vm14  ;;  %v779_v42 = vadd.f32 %v777_v10, %v775_v11  ;;  %v791_v48 = vsel %vm6675_vm2, %v784_v15, %v6674_v17  ;;  %v6685_v11 = vld [vmem:[#allocation19_spill] sm:$0xff]  ;;  %v815_v17 = vpop.permute.xlu1 %814 }
 0x3dd   :  { %v829_v39 = vsel %vm6676_vm9, %v828_v57, 0.0  ;;  %v776_v58 = vadd.f32 %v774_v46, %v749_v7  ;;  %vm856_vm10 = vmand %vm4386_vm4, %vm3304_vm5  ;;  %v824_v49 = vsel %vm6680_vm11, %v6679_v44, %v4016_v1  ;;  %v808_v7 = vmul.f32 %v802_v51, %v791_v48  ;;  %v6681_v46 = vld [vmem:[#allocation117_spill] sm:$0xff]  ;;  %v4461_v35 = vpop.permute.xlu0 %1091 }
 0x3de   :  { %vm6678_vm9 = vmmov %vm6675_vm2  ;;  %v809_v31 = vmul.f32 %v6681_v46, %v790_v38  ;;  %v806_v8 = vadd.f32 %v804_v43, %v779_v42  ;;  %v6683_v10 = vstv %s6677_s10  ;;  %v860_v33 = vsel %vm856_vm10, %v859_v19, 0.0  ;;  %v6690_v42 = vld [vmem:[#allocation30_spill] sm:$0xff]  ;;  %1824 = vrot.lane.b32.xlu1 %v2352_v37, %s6614_s18  ;;  %s4679_s18 = sld [smem:[#allocation6 + $0x16]]  ;;  %s4916_s10 = sld [smem:[#allocation6 + $0x1a]] }
 0x3df   :  { %v792_v0 = vsel %vm6678_vm9, %v3957_v4, %v784_v15  ;;  %v780_v34 = vadd.f32 %v778_v47, %v776_v58  ;;  %vm6682_vm2 = vmand %vm6603_vm8, %vm6588_vm13  ;;  %vm6686_vm9 = vcmp.lt.s32.totalorder %v2324_v13, 29  ;;  %v890_v51 = vstv %s4363_s13  ;;  %s6709_s13 = sld [smem:[#allocation105_spill]] }
 0x3e0   :  { %v805_v36 = vmul.f32 %v799_v16, %v792_v0  ;;  %v830_v4 = vsel %vm6682_vm2, %v828_v57, 0.0  ;;  %vm6684_vm11 = vmand %vm4036_vm0, %vm6466_vm14  ;;  %v821_v16 = vsel %vm6686_vm9, %v6685_v11, %v6679_v44  ;;  %v835_v38 = vmul.f32 %v829_v39, %v824_v49  ;;  %v6692_v49 = vld [vmem:[#allocation118_spill] sm:$0xff] }
 0x3e1   :  { %v833_v47 = vsel %vm6684_vm11, %v6683_v10, 0.0  ;;  %vm887_vm8 = vmand %vm4386_vm4, %vm3334_vm12  ;;  %v810_v58 = vadd.f32 %v808_v7, %v806_v8  ;;  %v6693_v7 = vld [vmem:[#allocation95_spill] sm:$0xff]  ;;  %v6696_v46 = vstv %s6687_s1  ;;  %v6697_v8 = vld [vmem:[#allocation21_spill] sm:$0xff]  ;;  %s5023_s1 = sld [smem:[#allocation6 + $0x1c]] }
 0x3e2   :  { %v807_v57 = vadd.f32 %v805_v36, %v780_v34  ;;  %vm6688_vm2 = vmmov %vm6686_vm9  ;;  %vm6691_vm9 = vcmp.lt.s32.totalorder %v2324_v13, 19  ;;  %v840_v34 = vmul.f32 %v6692_v49, %v821_v16  ;;  %v891_v10 = vsel %vm887_vm8, %v890_v51, 0.0  ;;  %v846_v16 = vpop.permute.xlu1 %845  ;;  %1855 = vrot.lane.b32.xlu1 %v2352_v37, %s6627_s21  ;;  %s4835_s21 = sld [smem:[#allocation6 + $0x5e]] }
 0x3e3   :  { %v822_v15 = vsel %vm6688_vm2, %v815_v17, %v6685_v11  ;;  %vm6689_vm11 = vmmov %vm6688_vm2  ;;  %v855_v39 = vsel %vm6691_vm9, %v6690_v42, %v4078_v54  ;;  %v837_v36 = vadd.f32 %v835_v38, %v810_v58  ;;  %vm6694_vm2 = vnez %v6693_v7  ;;  %v4505_v11 = vpop.permute.xlu0 %1122 }
 0x3e4   :  { %v823_v43 = vsel %vm6689_vm11, %v4016_v1, %v815_v17  ;;  %v811_v48 = vadd.f32 %v809_v31, %v807_v57  ;;  %v839_v44 = vmul.f32 %v833_v47, %v822_v15  ;;  %vm6695_vm0 = vmand %vm6694_vm2, %vm6421_vm3  ;;  %v864_v31 = vsel %vm856_vm10, %v6696_v46, 0.0  ;;  %v6701_v15 = vld [vmem:[#allocation32_spill] sm:$0xff] }
 0x3e5   :  { %v836_v0 = vmul.f32 %v830_v4, %v823_v43  ;;  %v861_v1 = vsel %vm6695_vm0, %v859_v19, 0.0  ;;  %vm6698_vm11 = vmmov %vm6691_vm9  ;;  %v921_v47 = vstv %s4415_s23  ;;  %v866_v57 = vmul.f32 %v860_v33, %v855_v39  ;;  %s6793_s23 = sld [smem:[#allocation108_spill]] }
 0x3e6   :  { %v852_v4 = vsel %vm6698_vm11, %v6697_v8, %v6690_v42  ;;  %v841_v17 = vadd.f32 %v839_v44, %v837_v36  ;;  %v853_v38 = vsel %vm6691_vm9, %v846_v16, %v6697_v8  ;;  %vm6700_vm11 = vmmov %vm6691_vm9  ;;  %vm6702_vm10 = vcmp.lt.s32.totalorder %v2324_v13, 18  ;;  %v6707_v36 = vld [vmem:[#allocation23_spill] sm:$0xff]  ;;  %1886 = vrot.lane.b32.xlu1 %v2352_v37, %s2269_s11 }
 0x3e7   :  { %v838_v19 = vadd.f32 %v836_v0, %v811_v48  ;;  %v854_v58 = vsel %vm6700_vm11, %v4078_v54, %v846_v16  ;;  %v886_v33 = vsel %vm6702_vm10, %v6701_v15, %v4128_v61  ;;  %v870_v39 = vmul.f32 %v864_v31, %v853_v38  ;;  %v6703_v48 = vld [vmem:[#allocation120_spill] sm:$0xff]  ;;  %vm6708_vm11 = vmand %vm4386_vm4, %vm3368_vm6  ;;  %v4549_v8 = vpop.permute.xlu0 %1171  ;;  %v6711_v38 = vld [vmem:[#allocation34_spill] sm:$0xff] }
 0x3e8   :  { %v867_v42 = vmul.f32 %v861_v1, %v854_v58  ;;  %v871_v0 = vmul.f32 %v6703_v48, %v852_v4  ;;  %v868_v49 = vadd.f32 %v866_v57, %v841_v17  ;;  %vm6704_vm9 = vnez %v6296_v30  ;;  %v877_v4 = vpop.permute.xlu1 %876 }
 0x3e9   :  { %v842_v43 = vadd.f32 %v840_v34, %v838_v19  ;;  %vm6705_vm0 = vmand %vm6694_vm2, %vm6704_vm9  ;;  %v6706_v44 = vstv %s6699_s9  ;;  %v883_v1 = vsel %vm6702_vm10, %v6707_v36, %v6701_v15  ;;  %v922_v46 = vsel %vm6708_vm11, %v921_v47, 0.0  ;;  %s5138_s9 = sld [smem:[#allocation6 + $0x1f]] }
 0x3ea   :  { %v892_v54 = vsel %vm6705_vm0, %v890_v51, 0.0  ;;  %v895_v34 = vsel %vm887_vm8, %v6706_v44, 0.0  ;;  %v952_v31 = vstv %s4459_s8  ;;  %v897_v19 = vmul.f32 %v891_v10, %v886_v33  ;;  %vm6710_vm11 = vmmov %vm6702_vm10  ;;  %s4951_s8 = sld [smem:[#allocation6 + $0x1b]] }
 0x3eb   :  { %v869_v51 = vadd.f32 %v867_v42, %v842_v43  ;;  %v872_v16 = vadd.f32 %v870_v39, %v868_v49  ;;  %v884_v57 = vsel %vm6702_vm10, %v877_v4, %v6707_v36  ;;  %v885_v17 = vsel %vm6710_vm11, %v4128_v61, %v877_v4  ;;  %v6713_v43 = vld [vmem:[#allocation121_spill] sm:$0xff]  ;;  %v6718_v49 = vld [vmem:[#allocation25_spill] sm:$0xff]  ;;  %vm6720_vm9 = vmand %vm4386_vm4, %vm6439_vm1  ;;  %v4593_v36 = vpop.permute.xlu0 %1202 }
 0x3ec   :  { %vm6712_vm8 = vcmp.lt.s32.totalorder %v2324_v13, 17  ;;  %v898_v15 = vmul.f32 %v892_v54, %v885_v17  ;;  %v901_v33 = vmul.f32 %v895_v34, %v884_v57  ;;  %v902_v42 = vmul.f32 %v6713_v43, %v883_v1  ;;  %v908_v1 = vpop.permute.xlu1 %907  ;;  %v6725_v57 = vld [vmem:[#allocation36_spill] sm:$0xff] }
 0x3ed   :  { %v917_v10 = vsel %vm6712_vm8, %v6711_v38, %v4183_v5  ;;  %v873_v58 = vadd.f32 %v871_v0, %v869_v51  ;;  %v899_v48 = vadd.f32 %v897_v19, %v872_v16  ;;  %vm6714_vm10 = vnez %v6298_v24  ;;  %vm6717_vm8 = vmand %vm4386_vm4, %vm3368_vm6 }
 0x3ee   :  { %vm6715_vm0 = vmand %vm6694_vm2, %vm6714_vm10  ;;  %v6716_v39 = vstv %s6709_s13  ;;  %vm6719_vm11 = vcmp.lt.s32.totalorder %v2324_v13, 17  ;;  %v953_v44 = vsel %vm6720_vm9, %v952_v31, 0.0  ;;  %v983_v34 = vstv %s4503_s16  ;;  %s6844_s16 = sld [smem:[#allocation113_spill]]  ;;  %s5212_s13 = sld [smem:[#allocation6 + $0x21]] }
 0x3ef   :  { %v923_v61 = vsel %vm6715_vm0, %v921_v47, 0.0  ;;  %v926_v0 = vsel %vm6717_vm8, %v6716_v39, 0.0  ;;  %v914_v54 = vsel %vm6719_vm11, %v6718_v49, %v6711_v38  ;;  %v900_v47 = vadd.f32 %v898_v15, %v873_v58  ;;  %vm6723_vm9 = vmmov %vm6719_vm11  ;;  %v6727_v58 = vld [vmem:[#allocation123_spill] sm:$0xff] }
 0x3f0   :  { %v928_v51 = vmul.f32 %v922_v46, %v917_v10  ;;  %vm6722_vm8 = vnez %v6364_v6  ;;  %v903_v4 = vadd.f32 %v901_v33, %v899_v48  ;;  %v915_v19 = vsel %vm6723_vm9, %v908_v1, %v6718_v49  ;;  %vm6724_vm10 = vmmov %vm6723_vm9  ;;  %v6732_v48 = vld [vmem:[#allocation27_spill] sm:$0xff]  ;;  %v4637_v49 = vpop.permute.xlu0 %1233 }
 0x3f1   :  { %v916_v16 = vsel %vm6724_vm10, %v4183_v5, %v908_v1  ;;  %vm6726_vm0 = vcmp.lt.s32.totalorder %v2324_v13, 16  ;;  %v904_v17 = vadd.f32 %v902_v42, %v900_v47  ;;  %v932_v10 = vmul.f32 %v926_v0, %v915_v19  ;;  %vm6731_vm10 = vmand %vm4386_vm4, %vm6439_vm1  ;;  %v6735_v19 = vld [vmem:[#allocation38_spill] sm:$0xff] }
 0x3f2   :  { %v948_v46 = vsel %vm6726_vm0, %v6725_v57, %v4229_v55  ;;  %v929_v38 = vmul.f32 %v923_v61, %v916_v16  ;;  %v933_v15 = vmul.f32 %v6727_v58, %v914_v54  ;;  %v930_v43 = vadd.f32 %v928_v51, %v903_v4  ;;  %vm6733_vm6 = vmand %vm4386_vm4, %vm6722_vm8  ;;  %v939_v54 = vpop.permute.xlu1 %938 }
 0x3f3   :  { %vm6728_vm9 = vnez %v6277_v32  ;;  %v6730_v33 = vstv %s6721_s20  ;;  %v945_v61 = vsel %vm6726_vm0, %v6732_v48, %v6725_v57  ;;  %v984_v39 = vsel %vm6733_vm6, %v983_v34, 0.0  ;;  %vm6734_vm6 = vmmov %vm6726_vm0  ;;  %s5273_s20 = sld [smem:[#allocation6 + $0x23]] }
 0x3f4   :  { %vm6729_vm11 = vmand %vm6694_vm2, %vm6728_vm9  ;;  %v957_v42 = vsel %vm6731_vm10, %v6730_v33, 0.0  ;;  %v1014_v0 = vstv %s4547_s15  ;;  %v959_v47 = vmul.f32 %v953_v44, %v948_v46  ;;  %v934_v1 = vadd.f32 %v932_v10, %v930_v43  ;;  %v6742_v43 = vld [vmem:[#allocation29_spill] sm:$0xff]  ;;  %s6881_s15 = sld [smem:[#allocation116_spill]] }
 0x3f5   :  { %v954_v5 = vsel %vm6729_vm11, %v952_v31, 0.0  ;;  %v931_v31 = vadd.f32 %v929_v38, %v904_v17  ;;  %v946_v51 = vsel %vm6734_vm6, %v939_v54, %v6732_v48  ;;  %v947_v4 = vsel %vm6726_vm0, %v4229_v55, %v939_v54  ;;  %v6737_v17 = vld [vmem:[#allocation124_spill] sm:$0xff]  ;;  %vm6744_vm9 = vmand %vm4386_vm4, %vm6460_vm15  ;;  %v4681_v48 = vpop.permute.xlu0 %1264 }
 0x3f6   :  { %vm6736_vm11 = vcmp.lt.s32.totalorder %v2324_v13, 15  ;;  %v960_v57 = vmul.f32 %v954_v5, %v947_v4  ;;  %v963_v46 = vmul.f32 %v957_v42, %v946_v51  ;;  %v964_v38 = vmul.f32 %v6737_v17, %v945_v61  ;;  %v970_v61 = vpop.permute.xlu1 %969  ;;  %v6746_v51 = vld [vmem:[#allocation40_spill] sm:$0xff] }
 0x3f7   :  { %v979_v44 = vsel %vm6736_vm11, %v6735_v19, %v4276_v50  ;;  %v935_v16 = vadd.f32 %v933_v15, %v931_v31  ;;  %v961_v58 = vadd.f32 %v959_v47, %v934_v1  ;;  %vm6738_vm6 = vnez %v6302_v27  ;;  %vm6741_vm11 = vmand %vm4386_vm4, %vm6722_vm8 }
 0x3f8   :  { %vm6739_vm10 = vmand %vm6694_vm2, %vm6738_vm6  ;;  %v6740_v10 = vstv %s3172_s30  ;;  %vm6743_vm0 = vcmp.lt.s32.totalorder %v2324_v13, 15  ;;  %v1015_v33 = vsel %vm6744_vm9, %v1014_v0, 0.0  ;;  %v1045_v42 = vstv %s4591_s24  ;;  %s4723_s30 = sld [smem:[#allocation6 + $0x17]]  ;;  %s5242_s24 = sld [smem:[#allocation6 + $0x22]] }
 0x3f9   :  { %v985_v55 = vsel %vm6739_vm10, %v983_v34, 0.0  ;;  %v988_v15 = vsel %vm6741_vm11, %v6740_v10, 0.0  ;;  %v976_v5 = vsel %vm6743_vm0, %v6742_v43, %v6735_v19  ;;  %v962_v34 = vadd.f32 %v960_v57, %v935_v16  ;;  %vm6180_vm11 = vmand %vm4386_vm4, %vm6466_vm14  ;;  %v6748_v16 = vld [vmem:[#allocation125_spill] sm:$0xff] }
 0x3fa   :  { %v990_v31 = vmul.f32 %v984_v39, %v979_v44  ;;  %v965_v54 = vadd.f32 %v963_v46, %v961_v58  ;;  %vm6745_vm9 = vmmov %vm6743_vm0  ;;  %v978_v1 = vsel %vm6743_vm0, %v4276_v50, %v970_v61  ;;  %vm6747_vm10 = vcmp.lt.s32.totalorder %v2324_v13, 14  ;;  %v6752_v58 = vld [vmem:[#allocation31_spill] sm:$0xff] }
 0x3fb   :  { %v977_v47 = vsel %vm6745_vm9, %v970_v61, %v6742_v43  ;;  %v1010_v39 = vsel %vm6747_vm10, %v6746_v51, %v4319_v63  ;;  %v966_v4 = vadd.f32 %v964_v38, %v962_v34  ;;  %v991_v19 = vmul.f32 %v985_v55, %v978_v1  ;;  %vm6749_vm9 = vmand %vm6694_vm2, %vm6670_vm7  ;;  %v4725_v43 = vpop.permute.xlu0 %1295  ;;  %v6754_v61 = vld [vmem:[#allocation79_spill] sm:$0xff]  ;;  %v6758_v1 = vld [vmem:[#allocation42_spill] sm:$0xff] }
 0x3fc   :  { %v994_v44 = vmul.f32 %v988_v15, %v977_v47  ;;  %v995_v57 = vmul.f32 %v6748_v16, %v976_v5  ;;  %v992_v17 = vadd.f32 %v990_v31, %v965_v54  ;;  %v1016_v50 = vsel %vm6749_vm9, %v1014_v0, 0.0  ;;  %vm6751_vm10 = vmand %vm4386_vm4, %vm6460_vm15  ;;  %v1001_v5 = vpop.permute.xlu1 %1000 }
 0x3fd   :  { %v6750_v46 = vstv %s3174_s0  ;;  %vm6753_vm0 = vcmp.lt.s32.totalorder %v2324_v13, 14  ;;  %v1046_v10 = vsel %vm6180_vm11, %v1045_v42, 0.0  ;;  %v1076_v15 = vstv %s4635_s17  ;;  %s4808_s0 = sld [smem:[#allocation6 + $0x5c]]  ;;  %s5549_s17 = sld [smem:[#allocation6 + $0x60]] }
 0x3fe   :  { %v1019_v38 = vsel %vm6751_vm10, %v6750_v46, 0.0  ;;  %v1007_v55 = vsel %vm6753_vm0, %v6752_v58, %v6746_v51  ;;  %v993_v0 = vadd.f32 %v991_v19, %v966_v4  ;;  %v1021_v34 = vmul.f32 %v1015_v33, %v1010_v39  ;;  %vm6756_vm7 = vmmov %vm6753_vm0  ;;  %v6760_v19 = vld [vmem:[#allocation127_spill] sm:$0xff] }
 0x3ff   :  { %vm6755_vm15 = vnez %v6754_v61  ;;  %v996_v31 = vadd.f32 %v994_v44, %v992_v17  ;;  %v1008_v54 = vsel %vm6756_vm7, %v1001_v5, %v6752_v58  ;;  %vm6757_vm9 = vmmov %vm6753_vm0  ;;  %vm6759_vm10 = vcmp.lt.s32.totalorder %v2324_v13, 13  ;;  %v6764_v17 = vld [vmem:[#allocation33_spill] sm:$0xff] }
 0x400   :  { %vm1073_vm11 = vmand %vm6755_vm15, %vm3304_vm5  ;;  %v1009_v47 = vsel %vm6757_vm9, %v4319_v63, %v1001_v5  ;;  %v1041_v33 = vsel %vm6759_vm10, %v6758_v1, %v4365_v62  ;;  %v997_v51 = vadd.f32 %v995_v57, %v993_v0  ;;  %v1025_v4 = vmul.f32 %v1019_v38, %v1008_v54  ;;  %v4769_v38 = vpop.permute.xlu0 %1326  ;;  %v1032_v53 = vpop.permute.xlu1 %1031 }
 0x401   :  { %v1022_v39 = vmul.f32 %v1016_v50, %v1009_v47  ;;  %v1026_v16 = vmul.f32 %v6760_v19, %v1007_v55  ;;  %v1023_v46 = vadd.f32 %v1021_v34, %v996_v31  ;;  %vm6761_vm7 = vmand %vm6694_vm2, %vm6588_vm13  ;;  %v6762_v44 = vstv %s3196_s28  ;;  %v6767_v34 = vld [vmem:[#allocation44_spill] sm:$0xff]  ;;  %s4787_s28 = sld [smem:[#allocation6 + $0x5b]] }
 0x402   :  { %v1047_v63 = vsel %vm6761_vm7, %v1045_v42, 0.0  ;;  %vm6763_vm9 = vmand %vm4386_vm4, %vm6466_vm14  ;;  %v1038_v50 = vsel %vm6759_vm10, %v6764_v17, %v6758_v1  ;;  %v1077_v37 = vsel %vm1073_vm11, %v1076_v15, 0.0  ;;  %v1107_v7 = vstv %s4679_s18  ;;  %v6769_v1 = vld [vmem:[#allocation128_spill] sm:$0xff]  ;;  %s5564_s18 = sld [smem:[#allocation6 + $0x2a]] }
 0x403   :  { %v1050_v57 = vsel %vm6763_vm9, %v6762_v44, 0.0  ;;  %v1024_v42 = vadd.f32 %v1022_v39, %v997_v51  ;;  %v1052_v58 = vmul.f32 %v1046_v10, %v1041_v33  ;;  %vm1104_vm2 = vmand %vm6755_vm15, %vm3334_vm12  ;;  %v1027_v55 = vadd.f32 %v1025_v4, %v1023_v46  ;;  %v6770_v39 = vld [vmem:[#allocation12_spill] sm:$0xff]  ;;  %v6771_v4 = vld [vmem:[#allocation78_spill] sm:$0xff] }
 0x404   :  { %vm6765_vm7 = vmmov %vm6759_vm10  ;;  %vm6768_vm10 = vcmp.lt.s32.totalorder %v2324_v13, 3  ;;  %v1057_v33 = vmul.f32 %v6769_v1, %v1038_v50  ;;  %1890 = vrot.lane.b32.xlu1 %v6770_v39, %s2269_s11  ;;  %v6774_v19 = vstv %s3202_s29  ;;  %v6775_v46 = vld [vmem:[#allocation35_spill] sm:$0xff]  ;;  %v1138_v44 = vstv %s4723_s30  ;;  %s4829_s29 = sld [smem:[#allocation6 + $0x5d]]  ;;  %s4837_s11 = sld [smem:[#allocation6 + $0x5f]] }
 0x405   :  { %v1039_v0 = vsel %vm6765_vm7, %v1032_v53, %v6764_v17  ;;  %vm6766_vm9 = vmmov %vm6765_vm7  ;;  %v1072_v10 = vsel %vm6768_vm10, %v6767_v34, %v4417_v3  ;;  %v1028_v31 = vadd.f32 %v1026_v16, %v1024_v42  ;;  %v1054_v51 = vadd.f32 %v1052_v58, %v1027_v55  ;;  %v1063_v17 = vpop.permute.xlu1 %1062  ;;  %v6784_v1 = vld [vmem:[#allocation98_spill] sm:$0xff]  ;;  %s6991_s30 = sld [smem:[#allocation149_spill]] }
 0x406   :  { %v1040_v5 = vsel %vm6766_vm9, %v4365_v62, %v1032_v53  ;;  %v1056_v47 = vmul.f32 %v1050_v57, %v1039_v0  ;;  %vm6772_vm7 = vnez %v6771_v4  ;;  %v1081_v16 = vsel %vm1073_vm11, %v6774_v19, 0.0  ;;  %v4821_v53 = vpop.permute.xlu0 %1357  ;;  %vm6777_vm4 = vmmov %vm6768_vm10  ;;  %v6786_v19 = vld [vmem:[#allocation37_spill] sm:$0xff] }
 0x407   :  { %v1053_v54 = vmul.f32 %v1047_v63, %v1040_v5  ;;  %vm6773_vm9 = vmand %vm6772_vm7, %vm6421_vm3  ;;  %v1069_v63 = vsel %vm6768_vm10, %v6775_v46, %v6767_v34  ;;  %v1083_v50 = vmul.f32 %v1077_v37, %v1072_v10  ;;  %v1070_v58 = vsel %vm6777_vm4, %v1063_v17, %v6775_v46  ;;  %v6779_v37 = vld [vmem:[#allocation46_spill] sm:$0xff] }
 0x408   :  { %v1078_v62 = vsel %vm6773_vm9, %v1076_v15, 0.0  ;;  %v1108_v15 = vsel %vm1104_vm2, %v1107_v7, 0.0  ;;  %vm6776_vm9 = vnez %v6417_v14  ;;  %v1058_v42 = vadd.f32 %v1056_v47, %v1054_v51  ;;  %vm6778_vm0 = vmmov %vm6777_vm4  ;;  %v6785_v51 = vld [vmem:[#allocation129_spill] sm:$0xff] }
 0x409   :  { %v1055_v57 = vadd.f32 %v1053_v54, %v1028_v31  ;;  %v1071_v55 = vsel %vm6778_vm0, %v4417_v3, %v1063_v17  ;;  %vm6780_vm11 = vcmp.lt.s32.totalorder %v2324_v13, 2  ;;  %v1087_v10 = vmul.f32 %v1081_v16, %v1070_v58 }
 0x40a   :  { %v1103_v0 = vsel %vm6780_vm11, %v6779_v37, %v4461_v35  ;;  %v1084_v34 = vmul.f32 %v1078_v62, %v1071_v55  ;;  %v1085_v31 = vadd.f32 %v1083_v50, %v1058_v42  ;;  %vm6781_vm4 = vnez %v6296_v30  ;;  %v6796_v42 = vld [vmem:[#allocation48_spill] sm:$0xff] }
 0x40b   :  { %v1059_v5 = vadd.f32 %v1057_v33, %v1055_v57  ;;  %vm6782_vm0 = vmand %vm6772_vm7, %vm6781_vm4  ;;  %v6783_v54 = vstv %s3220_s3  ;;  %v4853_v33 = vmul.f32 %v6784_v1, %v6770_v39  ;;  %v1088_v62 = vmul.f32 %v6785_v51, %v1069_v63  ;;  %v1094_v63 = vpop.permute.xlu1 %1093  ;;  %s4873_s3 = sld [smem:[#allocation6 + $0x19]] }
 0x40c   :  { %v1109_v3 = vsel %vm6782_vm0, %v1107_v7, 0.0  ;;  %v1112_v47 = vsel %vm1104_vm2, %v6783_v54, 0.0  ;;  %v1100_v16 = vsel %vm6780_vm11, %v6786_v19, %v6779_v37  ;;  %vm6787_vm0 = vcmp.lt.s32.totalorder %v2769_v28, 13  ;;  %vm6792_vm2 = vmand %vm6755_vm15, %vm6776_vm9 }
 0x40d   :  { %vm6788_vm10 = vcmp.ge.s32.totalorder %v2769_v28, 4294967293  ;;  %v6789_v7 = vmov 0  ;;  %v1139_v39 = vsel %vm6792_vm2, %v1138_v44, 0.0  ;;  %v1086_v46 = vadd.f32 %v1084_v34, %v1059_v5 }
 0x40e   :  { %vm4864_vm4 = vmand %vm6788_vm10, %vm6787_vm0  ;;  %v1114_v28 = vmul.f32 %v1108_v15, %v1103_v0  ;;  %v1089_v57 = vadd.f32 %v1087_v10, %v1085_v31  ;;  %vm6797_vm2 = vcmp.lt.s32.totalorder %v2324_v13, 1  ;;  %v6188_v15 = vstv %s4787_s28  ;;  %v4892_v0 = vpop.permute.xlu0 %1388 }
 0x40f   :  { %v6790_v7 = vsel %vm4864_vm4, 4294967295, %v6789_v7  ;;  %vm6794_vm10 = vmmov %vm6780_vm11  ;;  %v1134_v58 = vsel %vm6797_vm2, %v6796_v42, %v4505_v11  ;;  %v1090_v55 = vadd.f32 %v1088_v62, %v1086_v46  ;;  %v6800_v10 = vstv %s6793_s23  ;;  %v1125_v62 = vpop.permute.xlu1 %1124  ;;  %s5656_s23 = sld [smem:[#allocation6 + $0x2c]] }
 0x410   :  { %6791 = vst [vmem:[#allocation18_spill] sm:$0xff] %v6790_v7  ;;  %v1101_v17 = vsel %vm6794_vm10, %v1094_v63, %v6786_v19  ;;  %vm6795_vm0 = vmmov %vm6794_vm10  ;;  %v1116_v34 = vadd.f32 %v1114_v28, %v1089_v57  ;;  %vm6798_vm10 = vnez %v6298_v24  ;;  %vm6804_vm11 = vcmp.lt.s32.totalorder %v2324_v13, 1 }
 0x411   :  { %v1102_v50 = vsel %vm6795_vm0, %v4461_v35, %v1094_v63  ;;  %v1118_v5 = vmul.f32 %v1112_v47, %v1101_v17  ;;  %vm6799_vm0 = vmand %vm6772_vm7, %vm6798_vm10  ;;  %v6803_v47 = vld [vmem:[#allocation39_spill] sm:$0xff]  ;;  %v1145_v19 = vmul.f32 %v1139_v39, %v1134_v58  ;;  %v6185_v28 = vstv %s4829_s29 }
 0x412   :  { %v1115_v37 = vmul.f32 %v1109_v3, %v1102_v50  ;;  %v1140_v35 = vsel %vm6799_vm0, %v1138_v44, 0.0  ;;  %vm6801_vm2 = vmand %vm6755_vm15, %vm6776_vm9  ;;  %v6802_v3 = vld [vmem:[#allocation130_spill] sm:$0xff]  ;;  %v1131_v1 = vsel %vm6804_vm11, %v6803_v47, %v6796_v42  ;;  %v6186_v44 = vstv %s4808_s0  ;;  %v6806_v50 = vld [vmem:[#allocation50_spill] sm:$0xff] }
 0x413   :  { %v1143_v31 = vsel %vm6801_vm2, %v6800_v10, 0.0  ;;  %v1119_v54 = vmul.f32 %v6802_v3, %v1100_v16  ;;  %vm6183_vm0 = vmand %vm4864_vm4, %vm6776_vm9  ;;  %v1120_v16 = vadd.f32 %v1118_v5, %v1116_v34  ;;  %v1132_v46 = vsel %vm6804_vm11, %v1125_v62, %v6803_v47  ;;  %v6807_v42 = vld [vmem:[#allocation41_spill] sm:$0xff]  ;;  %v6809_v5 = vld [vmem:[#allocation131_spill] sm:$0xff] }
 0x414   :  { %v1117_v51 = vadd.f32 %v1115_v37, %v1090_v55  ;;  %vm6805_vm2 = vmmov %vm6804_vm11  ;;  %v1149_v17 = vmul.f32 %v1143_v31, %v1132_v46  ;;  %vm6808_vm11 = vcmp.lt.s32.totalorder %v2324_v13, 127  ;;  %v6184_v55 = vstv %s4835_s21  ;;  %v6811_v10 = vld [vmem:[#allocation43_spill] sm:$0xff] }
 0x415   :  { %v1133_v63 = vsel %vm6805_vm2, %v4505_v11, %v1125_v62  ;;  %v1180_v58 = vsel %vm6808_vm11, %v6807_v42, %v6806_v50  ;;  %v6187_v11 = vstv %s4837_s11  ;;  %v1147_v37 = vadd.f32 %v1145_v19, %v1120_v16  ;;  %vm6814_vm2 = vmand %vm4864_vm4, %vm3304_vm5  ;;  %v4981_v19 = vpop.permute.xlu0 %1419  ;;  %v6819_v46 = vld [vmem:[#allocation132_spill] sm:$0xff] }
 0x416   :  { %v1121_v57 = vadd.f32 %v1119_v54, %v1117_v51  ;;  %v1146_v39 = vmul.f32 %v1140_v35, %v1133_v63  ;;  %v1150_v34 = vmul.f32 %v6809_v5, %v1131_v1  ;;  %v6810_v35 = vld [vmem:[#allocation52_spill] sm:$0xff]  ;;  %vm6812_vm3 = vcmp.lt.s32.totalorder %v2324_v13, 126  ;;  %v4948_v54 = vpop.permute.xlu1 %1859  ;;  %v6825_v5 = vld [vmem:[#allocation126_spill] sm:$0xff] }
 0x417   :  { %v1211_v31 = vsel %vm6812_vm3, %v6811_v10, %v6810_v35  ;;  %6813 = vst [vmem:[#allocation13_spill] sm:$0xff] %v4948_v54  ;;  %v1187_v47 = vstv %s4873_s3  ;;  %v4961_v1 = vsel %vm6814_vm2, %v6188_v15, 0.0  ;;  %vm6816_vm3 = vmand %vm4864_vm4, %vm3334_vm12  ;;  %v4979_v62 = vsel %vm6183_vm0, %v6185_v28, 0.0  ;;  %s5602_s3 = sld [smem:[#allocation6 + $0x2b]] }
 0x418   :  { %v1148_v3 = vadd.f32 %v1146_v39, %v1121_v57  ;;  %6815 = vst [vmem:[#allocation90_spill] sm:$0xff] %v4961_v1  ;;  %v4970_v51 = vsel %vm6816_vm3, %v6186_v44, 0.0  ;;  %6818 = vst [vmem:[#allocation144_spill] sm:$0xff] %v4979_v62  ;;  %v1151_v16 = vadd.f32 %v1149_v17, %v1147_v37  ;;  %v1198_v63 = vmul.f32 %v6819_v46, %v1180_v58  ;;  %v6824_v58 = vld [vmem:[#allocation133_spill] sm:$0xff]  ;;  %v6827_v44 = vld [vmem:[#allocation54_spill] sm:$0xff] }
 0x419   :  { %6817 = vst [vmem:[#allocation82_spill] sm:$0xff] %v4970_v51  ;;  %vm6820_vm2 = vmand %vm4864_vm4, %vm6439_vm1  ;;  %v1229_v37 = vmul.f32 %v6824_v58, %v1211_v31  ;;  %vm6832_vm11 = vcmp.lt.s32.totalorder %v2324_v13, 115  ;;  %v6833_v31 = vld [vmem:[#allocation136_spill] sm:$0xff]  ;;  %v1218_v58 = vstv %s4916_s10  ;;  %v6840_v62 = vld [vmem:[#allocation69_spill] sm:$0xff]  ;;  %v6858_v1 = vstv %s6844_s16 }
 0x41a   :  { %v4991_v57 = vsel %vm6820_vm2, %v6184_v55, 0.0  ;;  %vm6822_vm3 = vmand %vm4864_vm4, %vm6722_vm8  ;;  %v1152_v17 = vadd.f32 %v1150_v34, %v1148_v3  ;;  %v1165_v46 = vadd.f32 %v6825_v5, %v1151_v16  ;;  %v1273_v34 = vsel %vm6832_vm11, %v6831_v26, %v6830_v2  ;;  %v1174_v16 = vpop.permute.xlu1 %1173 }
 0x41b   :  { %6821 = vst [vmem:[#allocation111_spill] sm:$0xff] %v4991_v57  ;;  %v5000_v39 = vsel %vm6822_vm3, %v6187_v11, 0.0  ;;  %vm1185_vm0 = vmand %vm6772_vm7, %vm6738_vm6  ;;  %v6828_v11 = vld [vmem:[#allocation45_spill] sm:$0xff]  ;;  %vm6829_vm3 = vcmp.lt.s32.totalorder %v2324_v13, 125  ;;  %v6834_v5 = vstv %s3252_s6  ;;  %s5059_s6 = sld [smem:[#allocation6 + $0x1d]]  ;;  %v7013_v56 = vstv %s4787_s28  ;;  %s5742_s28 = sld [smem:[#allocation6 + $0x2e]] }
 0x41c   :  { %6823 = vst [vmem:[#allocation20_spill] sm:$0xff] %v5000_v39  ;;  %vm6826_vm2 = vmand %vm6755_vm15, %vm6722_vm8  ;;  %v1189_v28 = vsel %vm1185_vm0, %v1187_v47, 0.0  ;;  %v1242_v15 = vsel %vm6829_vm3, %v6828_v11, %v6827_v44  ;;  %v1166_v3 = vadd.f32 %v6833_v31, %v1152_v17  ;;  %vm6838_vm8 = vnez %v6305_v18 }
 0x41d   :  { %v1188_v55 = vsel %vm6826_vm2, %v1187_v47, 0.0  ;;  %v1193_v47 = vsel %vm1185_vm0, %v6834_v5, 0.0  ;;  %vm6835_vm2 = vcmp.lt.s32.totalorder %v2324_v13, 127  ;;  %vm1216_vm4 = vmand %vm6772_vm7, %vm6838_vm8  ;;  %v6839_v5 = vld [vmem:[#allocation137_spill] sm:$0xff]  ;;  %vm6850_vm8 = vcmp.ge.s32.totalorder %v6840_v62, 4294967295 }
 0x41e   :  { %v1183_v59 = vsel %vm6835_vm2, %v6806_v50, %v4549_v8  ;;  %vm6836_vm3 = vmmov %vm6835_vm2  ;;  %v1170_v31 = vadd.f32 %v4853_v33, %v1166_v3  ;;  %v1169_v39 = vadd.f32 %v6839_v5, %v1165_v46  ;;  %v1220_v33 = vsel %vm1216_vm4, %v1218_v58, 0.0  ;;  %v1205_v46 = vpop.permute.xlu1 %1204 }
 0x41f   :  { %v1181_v54 = vsel %vm6836_vm3, %v1174_v16, %v6807_v42  ;;  %vm6837_vm11 = vmmov %vm6835_vm2  ;;  %v5046_v42 = vpop.permute.xlu0 %1450  ;;  %vm6841_vm3 = vnez %v6369_v23  ;;  %v1249_v3 = vstv %s4951_s8  ;;  %v6845_v5 = vstv %s3254_s19  ;;  %s5105_s19 = sld [smem:[#allocation6 + $0x1e]] }
 0x420   :  { %v1182_v17 = vsel %vm6837_vm11, %v4549_v8, %v1174_v16  ;;  %v1195_v57 = vmul.f32 %v1189_v28, %v1181_v54  ;;  %vm6842_vm11 = vmand %vm6755_vm15, %vm6841_vm3  ;;  %v6843_v16 = vld [vmem:[#allocation134_spill] sm:$0xff]  ;;  %v1224_v51 = vsel %vm1216_vm4, %v6845_v5, 0.0  ;;  %vm6846_vm2 = vcmp.lt.s32.totalorder %v2324_v13, 126 }
 0x421   :  { %v1194_v50 = vmul.f32 %v1188_v55, %v1182_v17  ;;  %v1219_v8 = vsel %vm6842_vm11, %v1218_v58, 0.0  ;;  %v1199_v55 = vmul.f32 %v1193_v47, %v1183_v59  ;;  %v1260_v17 = vmul.f32 %v6843_v16, %v1242_v15  ;;  %vm1247_vm11 = vmand %vm6772_vm7, %vm6588_vm13  ;;  %v6853_v47 = vld [vmem:[#allocation138_spill] sm:$0xff] }
 0x422   :  { %v1197_v54 = vadd.f32 %v1195_v57, %v1170_v31  ;;  %v1212_v59 = vsel %vm6846_vm2, %v1205_v46, %v6811_v10  ;;  %vm6847_vm0 = vmmov %vm6846_vm2  ;;  %vm6849_vm4 = vcmp.lt.s32.totalorder %v6840_v62, 15  ;;  %v1291_v31 = vmul.f32 %v6853_v47, %v1273_v34  ;;  %v6856_v16 = vld [vmem:[#allocation49_spill] sm:$0xff]  ;;  %v6867_v47 = vld [vmem:[#allocation60_spill] sm:$0xff] }
 0x423   :  { %v1196_v28 = vadd.f32 %v1194_v50, %v1169_v39  ;;  %v1213_v15 = vsel %vm6847_vm0, %v4593_v36, %v1205_v46  ;;  %vm6848_vm3 = vmmov %vm6847_vm0  ;;  %v1226_v50 = vmul.f32 %v1220_v33, %v1212_v59  ;;  %v6855_v46 = vld [vmem:[#allocation58_spill] sm:$0xff]  ;;  %v1255_v7 = vsel %vm1247_vm11, %v6858_v1, 0.0  ;;  %v5112_v34 = vpop.permute.xlu0 %1481 }
 0x424   :  { %v1214_v57 = vsel %vm6848_vm3, %v6810_v35, %v4593_v36  ;;  %vm5088_vm6 = vmand %vm6850_vm8, %vm6849_vm4  ;;  %v1201_v39 = vadd.f32 %v1199_v55, %v1197_v54  ;;  %v1225_v10 = vmul.f32 %v1219_v8, %v1213_v15  ;;  %v1251_v35 = vsel %vm1247_vm11, %v1249_v3, 0.0  ;;  %v6863_v15 = vld [vmem:[#allocation139_spill] sm:$0xff] }
 0x425   :  { %v1200_v58 = vadd.f32 %v1198_v63, %v1196_v28  ;;  %vm6854_vm7 = vmand %vm6755_vm15, %vm6466_vm14  ;;  %vm6857_vm8 = vcmp.lt.s32.totalorder %v2324_v13, 114  ;;  %v1236_v63 = vpop.permute.xlu1 %1235  ;;  %v1280_v8 = vstv %s5023_s1  ;;  %v1230_v61 = vmul.f32 %v1224_v51, %v1214_v57 }
 0x426   :  { %v1250_v36 = vsel %vm6854_vm7, %v1249_v3, 0.0  ;;  %v1304_v5 = vsel %vm6857_vm8, %v6856_v16, %v6855_v46  ;;  %vm6859_vm2 = vnez %v6604_v45  ;;  %v1228_v33 = vadd.f32 %v1226_v50, %v1201_v39  ;;  %v6868_v50 = vld [vmem:[#allocation51_spill] sm:$0xff] }
 0x427   :  { %v1227_v55 = vadd.f32 %v1225_v10, %v1200_v58  ;;  %vm1278_vm15 = vmand %vm5088_vm6, %vm6859_vm2  ;;  %vm6860_vm3 = vcmp.lt.s32.totalorder %v2324_v13, 125  ;;  %v1322_v57 = vmul.f32 %v6863_v15, %v1304_v5  ;;  %v6864_v58 = vld [vmem:[#allocation109_spill] sm:$0xff] }
 0x428   :  { %v1243_v1 = vsel %vm6860_vm3, %v1236_v63, %v6828_v11  ;;  %vm6861_vm11 = vmmov %vm6860_vm3  ;;  %v1232_v39 = vadd.f32 %v1230_v61, %v1228_v33  ;;  %vm6865_vm7 = vnez %v6864_v58  ;;  %v1282_v10 = vsel %vm1278_vm15, %v1280_v8, 0.0 }
 0x429   :  { %v1244_v28 = vsel %vm6861_vm11, %v4637_v49, %v1236_v63  ;;  %vm6862_vm4 = vmmov %vm6860_vm3  ;;  %v1231_v54 = vadd.f32 %v1229_v37, %v1227_v55  ;;  %v1257_v59 = vmul.f32 %v1251_v35, %v1243_v1  ;;  %vm6869_vm3 = vcmp.lt.s32.totalorder %v2324_v13, 113 }
 0x42a   :  { %v1245_v51 = vsel %vm6862_vm4, %v6827_v44, %v4637_v49  ;;  %v1256_v3 = vmul.f32 %v1250_v36, %v1244_v28  ;;  %vm6866_vm8 = vmand %vm6865_vm7, %vm3304_vm5  ;;  %v1335_v63 = vsel %vm6869_vm3, %v6868_v50, %v6867_v47  ;;  %v6870_v49 = vstv %s3308_s22  ;;  %v1267_v36 = vpop.permute.xlu1 %1266  ;;  %s5170_s22 = sld [smem:[#allocation6 + $0x20]] }
 0x42b   :  { %v1281_v11 = vsel %vm6866_vm8, %v1280_v8, 0.0  ;;  %v1286_v44 = vsel %vm1278_vm15, %v6870_v49, 0.0  ;;  %v1311_v35 = vstv %s5059_s6  ;;  %v1261_v5 = vmul.f32 %v1255_v7, %v1245_v51  ;;  %v6875_v51 = vld [vmem:[#allocation140_spill] sm:$0xff]  ;;  %v6878_v49 = vld [vmem:[#allocation53_spill] sm:$0xff] }
 0x42c   :  { %v1258_v37 = vadd.f32 %v1256_v3, %v1231_v54  ;;  %vm6871_vm8 = vnez %v6296_v30  ;;  %v1259_v55 = vadd.f32 %v1257_v59, %v1232_v39  ;;  %vm6872_vm3 = vcmp.lt.s32.totalorder %v2324_v13, 115  ;;  %v5156_v3 = vpop.permute.xlu0 %1512  ;;  %v6877_v39 = vld [vmem:[#allocation62_spill] sm:$0xff] }
 0x42d   :  { %vm1309_vm0 = vmand %vm5088_vm6, %vm6871_vm8  ;;  %v1274_v8 = vsel %vm6872_vm3, %v1267_v36, %v6831_v26  ;;  %v1353_v54 = vmul.f32 %v6875_v51, %v1335_v63  ;;  %v1342_v63 = vstv %s5105_s19  ;;  %v6887_v51 = vld [vmem:[#allocation64_spill] sm:$0xff] }
 0x42e   :  { %vm6873_vm15 = vmmov %vm6872_vm3  ;;  %v1262_v33 = vadd.f32 %v1260_v17, %v1258_v37  ;;  %v1288_v28 = vmul.f32 %v1282_v10, %v1274_v8  ;;  %v1263_v59 = vadd.f32 %v1261_v5, %v1259_v55  ;;  %v1313_v15 = vsel %vm1309_vm0, %v1311_v35, 0.0  ;;  %v1298_v10 = vpop.permute.xlu1 %1297 }
 0x42f   :  { %v1275_v61 = vsel %vm6873_vm15, %v4681_v48, %v1267_v36  ;;  %vm6874_vm4 = vmmov %vm6872_vm3  ;;  %vm6879_vm15 = vcmp.lt.s32.totalorder %v2324_v13, 112 }
 0x430   :  { %v1276_v7 = vsel %vm6874_vm4, %v6830_v2, %v4681_v48  ;;  %v1287_v1 = vmul.f32 %v1281_v11, %v1275_v61  ;;  %vm6876_vm3 = vmand %vm6865_vm7, %vm3334_vm12  ;;  %v1366_v2 = vsel %vm6879_vm15, %v6878_v49, %v6877_v39  ;;  %v6880_v48 = vstv %s3338_s2  ;;  %s6892_s2 = sld [smem:[#allocation119_spill]] }
 0x431   :  { %v1312_v26 = vsel %vm6876_vm3, %v1311_v35, 0.0  ;;  %v1317_v17 = vsel %vm1309_vm0, %v6880_v48, 0.0  ;;  %v1292_v37 = vmul.f32 %v1286_v44, %v1276_v7  ;;  %vm1340_vm3 = vmand %vm5088_vm6, %vm6798_vm10  ;;  %v1290_v36 = vadd.f32 %v1288_v28, %v1263_v59  ;;  %v6885_v7 = vld [vmem:[#allocation141_spill] sm:$0xff]  ;;  %v6888_v59 = vld [vmem:[#allocation55_spill] sm:$0xff] }
 0x432   :  { %v1289_v11 = vadd.f32 %v1287_v1, %v1262_v33  ;;  %vm6882_vm15 = vcmp.lt.s32.totalorder %v2324_v13, 114  ;;  %v1384_v33 = vmul.f32 %v6885_v7, %v1366_v2  ;;  %v1344_v28 = vsel %vm1340_vm3, %v1342_v63, 0.0  ;;  %v5204_v2 = vpop.permute.xlu0 %1543 }
 0x433   :  { %v1305_v35 = vsel %vm6882_vm15, %v1298_v10, %v6856_v16  ;;  %vm6883_vm0 = vmmov %vm6882_vm15  ;;  %v1294_v1 = vadd.f32 %v1292_v37, %v1290_v36 }
 0x434   :  { %v1306_v5 = vsel %vm6883_vm0, %v4725_v43, %v1298_v10  ;;  %vm6884_vm4 = vmmov %vm6883_vm0  ;;  %v1293_v55 = vadd.f32 %v1291_v31, %v1289_v11  ;;  %v1319_v61 = vmul.f32 %v1313_v15, %v1305_v35  ;;  %vm6889_vm0 = vcmp.lt.s32.totalorder %v2324_v13, 111 }
 0x435   :  { %v1307_v44 = vsel %vm6884_vm4, %v6855_v46, %v4725_v43  ;;  %v1318_v8 = vmul.f32 %v1312_v26, %v1306_v5  ;;  %vm6886_vm15 = vmand %vm6865_vm7, %vm6776_vm9  ;;  %v1397_v48 = vsel %vm6889_vm0, %v6888_v59, %v6887_v51  ;;  %v6890_v10 = vstv %s6881_s15  ;;  %v1329_v46 = vpop.permute.xlu1 %1328 }
 0x436   :  { %v1343_v16 = vsel %vm6886_vm15, %v1342_v63, 0.0  ;;  %v1348_v43 = vsel %vm1340_vm3, %v6890_v10, 0.0  ;;  %v1373_v26 = vstv %s5138_s9  ;;  %v1323_v15 = vmul.f32 %v1317_v17, %v1307_v44  ;;  %v6896_v44 = vld [vmem:[#allocation66_spill] sm:$0xff]  ;;  %v6901_v10 = vld [vmem:[#allocation59_spill] sm:$0xff] }
 0x437   :  { %v1320_v31 = vadd.f32 %v1318_v8, %v1293_v55  ;;  %vm6891_vm4 = vnez %v6277_v32  ;;  %v1321_v11 = vadd.f32 %v1319_v61, %v1294_v1  ;;  %vm6893_vm15 = vcmp.lt.s32.totalorder %v2324_v13, 113  ;;  %v6897_v55 = vld [vmem:[#allocation57_spill] sm:$0xff]  ;;  %v6900_v1 = vld [vmem:[#allocation68_spill] sm:$0xff] }
 0x438   :  { %vm1371_vm11 = vmand %vm5088_vm6, %vm6891_vm4  ;;  %v1336_v63 = vsel %vm6893_vm15, %v1329_v46, %v6868_v50  ;;  %vm6898_vm4 = vcmp.lt.s32.totalorder %v2324_v13, 110 }
 0x439   :  { %vm6894_vm3 = vmmov %vm6893_vm15  ;;  %v1324_v36 = vadd.f32 %v1322_v57, %v1320_v31  ;;  %v1350_v5 = vmul.f32 %v1344_v28, %v1336_v63  ;;  %v1428_v8 = vsel %vm6898_vm4, %v6897_v55, %v6896_v44  ;;  %v1325_v50 = vadd.f32 %v1323_v15, %v1321_v11  ;;  %v1360_v28 = vpop.permute.xlu1 %1359 }
 0x43a   :  { %v1337_v37 = vsel %vm6894_vm3, %v4769_v38, %v1329_v46  ;;  %vm6895_vm0 = vmmov %vm6894_vm3  ;;  %v1375_v7 = vsel %vm1371_vm11, %v1373_v26, 0.0  ;;  %vm6902_vm3 = vcmp.lt.s32.totalorder %v2324_v13, 109  ;;  %v6903_v57 = vstv %s6892_s2 }
 0x43b   :  { %v1338_v17 = vsel %vm6895_vm0, %v6867_v47, %v4769_v38  ;;  %v1349_v35 = vmul.f32 %v1343_v16, %v1337_v37  ;;  %vm6899_vm15 = vmand %vm6865_vm7, %vm6439_vm1  ;;  %v1459_v38 = vsel %vm6902_vm3, %v6901_v10, %v6900_v1  ;;  %v1379_v47 = vsel %vm1371_vm11, %v6903_v57, 0.0 }
 0x43c   :  { %v1374_v61 = vsel %vm6899_vm15, %v1373_v26, 0.0  ;;  %v1404_v31 = vstv %s5170_s22  ;;  %v1354_v46 = vmul.f32 %v1348_v43, %v1338_v17  ;;  %v1352_v15 = vadd.f32 %v1350_v5, %v1325_v50  ;;  %v6908_v17 = vld [vmem:[#allocation142_spill] sm:$0xff]  ;;  %v6910_v50 = vld [vmem:[#allocation145_spill] sm:$0xff] }
 0x43d   :  { %v1351_v16 = vadd.f32 %v1349_v35, %v1324_v36  ;;  %vm6904_vm15 = vcmp.lt.s32.totalorder %v2324_v13, 112  ;;  %vm6907_vm3 = vnez %v6302_v27  ;;  %v1415_v36 = vmul.f32 %v6908_v17, %v1397_v48  ;;  %v6909_v35 = vld [vmem:[#allocation143_spill] sm:$0xff] }
 0x43e   :  { %v1367_v26 = vsel %vm6904_vm15, %v1360_v28, %v6878_v49  ;;  %vm6905_vm1 = vmmov %vm6904_vm15  ;;  %v5254_v5 = vmul.f32 %v6909_v35, %v1428_v8  ;;  %v5257_v57 = vmul.f32 %v6910_v50, %v1459_v38  ;;  %vm6914_vm15 = vnez %v6364_v6 }
 0x43f   :  { %v1368_v11 = vsel %vm6905_vm1, %v4821_v53, %v1360_v28  ;;  %vm6906_vm11 = vmmov %vm6905_vm1  ;;  %v1355_v43 = vadd.f32 %v1353_v54, %v1351_v16  ;;  %v1381_v37 = vmul.f32 %v1375_v7, %v1367_v26  ;;  %v5259_v28 = vpop.permute.xlu0 %1574  ;;  %vm6913_vm1 = vcmp.lt.s32.totalorder %v2324_v13, 99  ;;  %v1391_v26 = vpop.permute.xlu1 %1390 }
 0x440   :  { %v1369_v63 = vsel %vm6906_vm11, %v6877_v39, %v4821_v53  ;;  %vm1402_vm0 = vmand %vm5088_vm6, %vm6907_vm3  ;;  %v1380_v49 = vmul.f32 %v1374_v61, %v1368_v11  ;;  %v1356_v53 = vadd.f32 %v1354_v46, %v1352_v15  ;;  %v6911_v39 = vld [vmem:[#allocation71_spill] sm:$0xff]  ;;  %v6916_v7 = vstv %s3374_s4  ;;  %s5309_s4 = sld [smem:[#allocation6 + $0x24]] }
 0x441   :  { %v1490_v40 = vsel %vm6913_vm1, %v6912_v41, %v6911_v39  ;;  %vm6915_vm11 = vmand %vm6865_vm7, %vm6914_vm15  ;;  %v1406_v8 = vsel %vm1402_vm0, %v1404_v31, 0.0  ;;  %v1385_v61 = vmul.f32 %v1379_v47, %v1369_v63  ;;  %v1410_v38 = vsel %vm1402_vm0, %v6916_v7, 0.0 }
 0x442   :  { %v1382_v54 = vadd.f32 %v1380_v49, %v1355_v43  ;;  %v1405_v48 = vsel %vm6915_vm11, %v1404_v31, 0.0  ;;  %v1383_v16 = vadd.f32 %v1381_v37, %v1356_v53  ;;  %v1435_v11 = vstv %s5212_s13  ;;  %v6920_v31 = vld [vmem:[#allocation146_spill] sm:$0xff] }
 0x443   :  { %vm6917_vm1 = vcmp.lt.s32.totalorder %v2324_v13, 111  ;;  %v5286_v63 = vmul.f32 %v6920_v31, %v1490_v40  ;;  %vm6921_vm0 = vnez %v6305_v18  ;;  %v5306_v37 = vpop.permute.xlu0 %1605  ;;  %v1422_v50 = vpop.permute.xlu1 %1421  ;;  %v1466_v53 = vstv %s5242_s24 }
 0x444   :  { %v1400_v46 = vsel %vm6917_vm1, %v6887_v51, %v4892_v0  ;;  %v1386_v15 = vadd.f32 %v1384_v33, %v1382_v54  ;;  %vm6918_vm4 = vmmov %vm6917_vm1  ;;  %v1387_v49 = vadd.f32 %v1385_v61, %v1383_v16  ;;  %v6924_v54 = vstv %s3421_s26  ;;  %s5359_s26 = sld [smem:[#allocation6 + $0x25]] }
 0x445   :  { %v1398_v43 = vsel %vm6918_vm4, %v1391_v26, %v6888_v59  ;;  %vm6919_vm11 = vmmov %vm6917_vm1  ;;  %vm358_vm4 = vcmp.lt.s32.totalorder %v6840_v62, 14  ;;  %v1416_v59 = vmul.f32 %v1410_v38, %v1400_v46  ;;  %v6929_v46 = vld [vmem:[#allocation63_spill] sm:$0xff] }
 0x446   :  { %v1399_v47 = vsel %vm6919_vm11, %v4892_v0, %v1391_v26  ;;  %vm1433_vm15 = vmand %vm5088_vm6, %vm6921_vm0  ;;  %v1412_v51 = vmul.f32 %v1406_v8, %v1398_v43  ;;  %vm6922_vm11 = vnez %v6369_v23  ;;  %v6932_v43 = vld [vmem:[#allocation65_spill] sm:$0xff] }
 0x447   :  { %v1411_v33 = vmul.f32 %v1405_v48, %v1399_v47  ;;  %vm6923_vm3 = vmand %vm6865_vm7, %vm6922_vm11  ;;  %v1437_v0 = vsel %vm1433_vm15, %v1435_v11, 0.0  ;;  %v1441_v48 = vsel %vm1433_vm15, %v6924_v54, 0.0  ;;  %vm6930_vm15 = vcmp.lt.s32.totalorder %v2324_v13, 98  ;;  %v5382_v4 = vpop.permute.xlu0 %1636 }
 0x448   :  { %v1436_v40 = vsel %vm6923_vm3, %v1435_v11, 0.0  ;;  %v1414_v35 = vadd.f32 %v1412_v51, %v1387_v49  ;;  %vm6925_vm3 = vcmp.lt.s32.totalorder %v2324_v13, 110  ;;  %vm6937_vm1 = vmand %vm6865_vm7, %vm6466_vm14 }
 0x449   :  { %v1413_v17 = vadd.f32 %v1411_v33, %v1386_v15  ;;  %v1431_v8 = vsel %vm6925_vm3, %v6896_v44, %v4981_v19  ;;  %vm6926_vm10 = vmmov %vm6925_vm3  ;;  %v6928_v44 = vld [vmem:[#allocation73_spill] sm:$0xff]  ;;  %v6931_v15 = vld [vmem:[#allocation75_spill] sm:$0xff] }
 0x44a   :  { %v1429_v61 = vsel %vm6926_vm10, %v1422_v50, %v6897_v55  ;;  %vm6927_vm9 = vmmov %vm6925_vm3  ;;  %v1418_v38 = vadd.f32 %v1416_v59, %v1414_v35  ;;  %v1521_v55 = vsel %vm6930_vm15, %v6929_v46, %v6928_v44  ;;  %vm6933_vm10 = vcmp.lt.s32.totalorder %v2324_v13, 97 }
 0x44b   :  { %v1430_v7 = vsel %vm6927_vm9, %v4981_v19, %v1422_v50  ;;  %v1417_v16 = vadd.f32 %v1415_v36, %v1413_v17  ;;  %v1443_v11 = vmul.f32 %v1437_v0, %v1429_v61  ;;  %v1552_v19 = vsel %vm6933_vm10, %v6932_v43, %v6931_v15  ;;  %vm6938_vm15 = vmand %vm5088_vm6, %vm6588_vm13 }
 0x44c   :  { %v1442_v26 = vmul.f32 %v1436_v40, %v1430_v7  ;;  %vm6934_vm9 = vcmp.ge.s32.totalorder %v6840_v62, 4294967294  ;;  %v1467_v36 = vsel %vm6937_vm1, %v1466_v53, 0.0  ;;  %v1468_v31 = vsel %vm6938_vm15, %v1466_v53, 0.0  ;;  %v1453_v40 = vpop.permute.xlu1 %1452  ;;  %vm6940_vm7 = vmmov %vm6938_vm15 }
 0x44d   :  { %vm5344_vm3 = vmand %vm6934_vm9, %vm358_vm4  ;;  %v1447_v49 = vmul.f32 %v1441_v48, %v1431_v8  ;;  %v1445_v51 = vadd.f32 %v1443_v11, %v1418_v38  ;;  %v1497_v0 = vstv %s5273_s20  ;;  %v6939_v59 = vstv %s3430_s5  ;;  %s5402_s5 = sld [smem:[#allocation6 + $0x26]] }
 0x44e   :  { %v1444_v33 = vadd.f32 %v1442_v26, %v1417_v16  ;;  %v1472_v58 = vsel %vm6940_vm7, %v6939_v59, 0.0  ;;  %vm6941_vm1 = vcmp.lt.s32.totalorder %v2324_v13, 109  ;;  %vm1495_vm9 = vmand %vm5344_vm3, %vm6859_vm2  ;;  %v5387_v8 = vmul.f32 %v3845_v9, %v1552_v19 }
 0x44f   :  { %v1462_v17 = vsel %vm6941_vm1, %v6900_v1, %v5046_v42  ;;  %vm6942_vm4 = vmmov %vm6941_vm1  ;;  %v1449_v53 = vadd.f32 %v1447_v49, %v1445_v51  ;;  %vm6944_vm6 = vnez %v6459_v21  ;;  %v1499_v61 = vsel %vm1495_vm9, %v1497_v0, 0.0  ;;  %v6951_v51 = vld [vmem:[#allocation67_spill] sm:$0xff] }
 0x450   :  { %v1460_v35 = vsel %vm6942_vm4, %v1453_v40, %v6901_v10  ;;  %vm6943_vm10 = vmmov %vm6941_vm1  ;;  %v1448_v1 = vadd.f32 %v5254_v5, %v1444_v33  ;;  %v1539_v10 = vmul.f32 %v3822_v20, %v1521_v55  ;;  %v1478_v20 = vmul.f32 %v1472_v58, %v1462_v17  ;;  %v1484_v7 = vpop.permute.xlu1 %1483  ;;  %v6950_v33 = vld [vmem:[#allocation77_spill] sm:$0xff]  ;;  %v5444_v17 = vpop.permute.xlu0 %1667 }
 0x451   :  { %v1461_v50 = vsel %vm6943_vm10, %v5046_v42, %v1453_v40  ;;  %v1474_v48 = vmul.f32 %v1468_v31, %v1460_v35  ;;  %vm6945_vm15 = vmand %vm6944_vm6, %vm3304_vm5  ;;  %v1528_v38 = vstv %s5309_s4  ;;  %v6946_v16 = vstv %s3434_s27  ;;  %v6953_v40 = vld [vmem:[#allocation81_spill] sm:$0xff]  ;;  %s5447_s27 = sld [smem:[#allocation6 + $0x27]] }
 0x452   :  { %v1473_v54 = vmul.f32 %v1467_v36, %v1461_v50  ;;  %v1498_v42 = vsel %vm6945_vm15, %v1497_v0, 0.0  ;;  %v1503_v26 = vsel %vm1495_vm9, %v6946_v16, 0.0  ;;  %vm6947_vm4 = vcmp.lt.s32.totalorder %v2324_v13, 99  ;;  %vm1526_vm1 = vmand %vm5344_vm3, %vm6871_vm8  ;;  %v6954_v0 = vld [vmem:[#allocation70_spill] sm:$0xff] }
 0x453   :  { %v1476_v9 = vadd.f32 %v1474_v48, %v1449_v53  ;;  %v1493_v11 = vsel %vm6947_vm4, %v6911_v39, %v5112_v34  ;;  %vm6948_vm10 = vmmov %vm6947_vm4  ;;  %vm6952_vm9 = vcmp.lt.s32.totalorder %v2324_v13, 96 }
 0x454   :  { %v1475_v5 = vadd.f32 %v1473_v54, %v1448_v1  ;;  %v1491_v55 = vsel %vm6948_vm10, %v1484_v7, %v6912_v41  ;;  %vm6949_vm15 = vmmov %vm6947_vm4  ;;  %v1583_v41 = vsel %vm6952_vm9, %v6951_v51, %v6950_v33  ;;  %vm6955_vm4 = vcmp.lt.s32.totalorder %v2324_v13, 95  ;;  %v1515_v53 = vpop.permute.xlu1 %1514 }
 0x455   :  { %v1492_v19 = vsel %vm6949_vm15, %v5112_v34, %v1484_v7  ;;  %v1480_v36 = vadd.f32 %v1478_v20, %v1476_v9  ;;  %v1505_v39 = vmul.f32 %v1499_v61, %v1491_v55  ;;  %v1614_v34 = vsel %vm6955_vm4, %v6954_v0, %v6953_v40  ;;  %vm6956_vm10 = vmand %vm6944_vm6, %vm3334_vm12 }
 0x456   :  { %v1479_v31 = vadd.f32 %v5257_v57, %v1475_v5  ;;  %v1504_v49 = vmul.f32 %v1498_v42, %v1492_v19  ;;  %v1529_v59 = vsel %vm6956_vm10, %v1528_v38, 0.0  ;;  %v1530_v57 = vsel %vm1526_vm1, %v1528_v38, 0.0 }
 0x457   :  { %v1509_v58 = vmul.f32 %v1503_v26, %v1493_v11  ;;  %v1507_v50 = vadd.f32 %v1505_v39, %v1480_v36  ;;  %v1559_v1 = vstv %s5359_s26  ;;  %v6957_v54 = vstv %s3586_s7  ;;  %s5481_s7 = sld [smem:[#allocation6 + $0x28]]  ;;  %v5499_v39 = vpop.permute.xlu0 %1698 }
 0x458   :  { %v1506_v35 = vadd.f32 %v1504_v49, %v1479_v31  ;;  %v1534_v48 = vsel %vm1526_vm1, %v6957_v54, 0.0  ;;  %vm6958_vm15 = vcmp.lt.s32.totalorder %v2324_v13, 98  ;;  %vm6961_vm10 = vnez %v6298_v24  ;;  %v1546_v19 = vpop.permute.xlu1 %1545 }
 0x459   :  { %v1524_v42 = vsel %vm6958_vm15, %v6928_v44, %v5156_v3  ;;  %vm6959_vm9 = vmmov %vm6958_vm15  ;;  %v1511_v5 = vadd.f32 %v1509_v58, %v1507_v50  ;;  %v1601_v38 = vmul.f32 %v3927_v12, %v1583_v41  ;;  %v5473_v16 = vmul.f32 %v3943_v29, %v1614_v34  ;;  %v6970_v58 = vld [vmem:[#allocation72_spill] sm:$0xff] }
 0x45a   :  { %v1522_v61 = vsel %vm6959_vm9, %v1515_v53, %v6929_v46  ;;  %vm6960_vm4 = vmmov %vm6959_vm9  ;;  %v1510_v9 = vadd.f32 %v5286_v63, %v1506_v35  ;;  %vm6962_vm15 = vnez %v6417_v14  ;;  %v1540_v26 = vmul.f32 %v1534_v48, %v1524_v42  ;;  %v6972_v35 = vld [vmem:[#allocation87_spill] sm:$0xff] }
 0x45b   :  { %v1523_v20 = vsel %vm6960_vm4, %v5156_v3, %v1515_v53  ;;  %vm1557_vm1 = vmand %vm5344_vm3, %vm6961_vm10  ;;  %v1536_v44 = vmul.f32 %v1530_v57, %v1522_v61  ;;  %v1590_v36 = vstv %s5402_s5  ;;  %v6964_v63 = vstv %s3660_s25  ;;  %v6969_v57 = vld [vmem:[#allocation84_spill] sm:$0xff]  ;;  %s5521_s25 = sld [smem:[#allocation6 + $0x29]] }
 0x45c   :  { %v1535_v7 = vmul.f32 %v1529_v59, %v1523_v20  ;;  %vm6963_vm9 = vmand %vm6944_vm6, %vm6962_vm15  ;;  %v1561_v46 = vsel %vm1557_vm1, %v1559_v1, 0.0  ;;  %v1565_v31 = vsel %vm1557_vm1, %v6964_v63, 0.0  ;;  %vm6965_vm4 = vcmp.lt.s32.totalorder %v2324_v13, 97  ;;  %v1577_v42 = vpop.permute.xlu1 %1576  ;;  %v5561_v63 = vpop.permute.xlu0 %1729 }
 0x45d   :  { %v1560_v3 = vsel %vm6963_vm9, %v1559_v1, 0.0  ;;  %v1538_v55 = vadd.f32 %v1536_v44, %v1511_v5  ;;  %v1555_v12 = vsel %vm6965_vm4, %v6931_v15, %v5204_v2  ;;  %vm6966_vm7 = vmmov %vm6965_vm4  ;;  %vm6968_vm15 = vnez %v6277_v32 }
 0x45e   :  { %v1537_v11 = vadd.f32 %v1535_v7, %v1510_v9  ;;  %v1553_v29 = vsel %vm6966_vm7, %v1546_v19, %v6932_v43  ;;  %vm6967_vm9 = vmmov %vm6965_vm4  ;;  %vm6971_vm7 = vcmp.lt.s32.totalorder %v2324_v13, 94  ;;  %vm6974_vm1 = vcmp.lt.s32.totalorder %v2324_v13, 93 }
 0x45f   :  { %v1554_v49 = vsel %vm6967_vm9, %v5204_v2, %v1546_v19  ;;  %vm1588_vm10 = vmand %vm5344_vm3, %vm6968_vm15  ;;  %v1542_v41 = vadd.f32 %v1540_v26, %v1538_v55  ;;  %v1567_v59 = vmul.f32 %v1561_v46, %v1553_v29  ;;  %v1645_v43 = vsel %vm6971_vm7, %v6970_v58, %v6969_v57  ;;  %v6973_v2 = vld [vmem:[#allocation74_spill] sm:$0xff] }
 0x460   :  { %v1541_v34 = vadd.f32 %v1539_v10, %v1537_v11  ;;  %v1566_v15 = vmul.f32 %v1560_v3, %v1554_v49  ;;  %v1676_v50 = vsel %vm6974_vm1, %v6973_v2, %v6972_v35  ;;  %vm6975_vm4 = vnez %v6286_v22  ;;  %v6983_v11 = vld [vmem:[#allocation150_spill] sm:$0xff]  ;;  %v6984_v19 = vld [vmem:[#allocation135_spill] sm:$0xff]  ;;  %v1608_v29 = vpop.permute.xlu1 %1607 }
 0x461   :  { %vm6976_vm9 = vmand %vm6944_vm6, %vm6975_vm4  ;;  %v1592_v10 = vsel %vm1588_vm10, %v1590_v36, 0.0  ;;  %v1571_v1 = vmul.f32 %v1565_v31, %v1555_v12  ;;  %v1569_v48 = vadd.f32 %v1567_v59, %v1542_v41  ;;  %v1621_v61 = vstv %s5447_s27 }
 0x462   :  { %v1591_v53 = vsel %vm6976_vm9, %v1590_v36, 0.0  ;;  %v1568_v54 = vadd.f32 %v1566_v15, %v1541_v34  ;;  %v6977_v20 = vstv %s3739_s12  ;;  %vm6978_vm7 = vcmp.lt.s32.totalorder %v2324_v13, 96  ;;  %s6982_s12 = sld [smem:[#allocation147_spill]] }
 0x463   :  { %v1596_v5 = vsel %vm1588_vm10, %v6977_v20, 0.0  ;;  %v1586_v9 = vsel %vm6978_vm7, %v6950_v33, %v5259_v28  ;;  %vm6979_vm1 = vmmov %vm6978_vm7  ;;  %vm6981_vm12 = vnez %v6302_v27  ;;  %v1573_v3 = vadd.f32 %v1571_v1, %v1569_v48 }
 0x464   :  { %v1584_v7 = vsel %vm6979_vm1, %v1577_v42, %v6951_v51  ;;  %vm6980_vm9 = vmmov %vm6979_vm1  ;;  %v1572_v46 = vadd.f32 %v5387_v8, %v1568_v54  ;;  %v1663_v55 = vmul.f32 %v6983_v11, %v1645_v43  ;;  %v5547_v51 = vmul.f32 %v6984_v19, %v1676_v50  ;;  %v1639_v48 = vpop.permute.xlu1 %1638 }
 0x465   :  { %v1585_v44 = vsel %vm6980_vm9, %v5259_v28, %v1577_v42  ;;  %vm1619_vm4 = vmand %vm5344_vm3, %vm6981_vm12  ;;  %v1598_v33 = vmul.f32 %v1592_v10, %v1584_v7  ;;  %vm6985_vm10 = vnez %v6364_v6  ;;  %v1602_v36 = vmul.f32 %v1596_v5, %v1586_v9 }
 0x466   :  { %v1597_v26 = vmul.f32 %v1591_v53, %v1585_v44  ;;  %vm6986_vm7 = vmand %vm6944_vm6, %vm6985_vm10  ;;  %v1623_v8 = vsel %vm1619_vm4, %v1621_v61, 0.0  ;;  %v1652_v49 = vstv %s5481_s7  ;;  %vm6988_vm1 = vcmp.lt.s32.totalorder %v2324_v13, 95  ;;  %v5625_v44 = vpop.permute.xlu0 %1760 }
 0x467   :  { %v1622_v28 = vsel %vm6986_vm7, %v1621_v61, 0.0  ;;  %v1600_v12 = vadd.f32 %v1598_v33, %v1573_v3  ;;  %v1617_v15 = vsel %vm6988_vm1, %v6953_v40, %v5306_v37  ;;  %vm6989_vm9 = vmmov %vm6988_vm1  ;;  %v1683_v42 = vstv %s5521_s25  ;;  %v6997_v33 = vld [vmem:[#allocation92_spill] sm:$0xff] }
 0x468   :  { %v1599_v31 = vadd.f32 %v1597_v26, %v1572_v46  ;;  %v6987_v41 = vstv %s6982_s12  ;;  %v1615_v59 = vsel %vm6989_vm9, %v1608_v29, %v6954_v0  ;;  %vm6990_vm7 = vmmov %vm6988_vm1  ;;  %vm364_vm1 = vcmp.lt.s32.totalorder %v6840_v62, 13  ;;  %v1670_v21 = vpop.permute.xlu1 %1669 }
 0x469   :  { %v1627_v34 = vsel %vm1619_vm4, %v6987_v41, 0.0  ;;  %v1616_v43 = vsel %vm6990_vm7, %v5306_v37, %v1608_v29  ;;  %vm1650_vm10 = vmand %vm5344_vm3, %vm6921_vm0  ;;  %v1604_v50 = vadd.f32 %v1602_v36, %v1600_v12  ;;  %v1629_v1 = vmul.f32 %v1623_v8, %v1615_v59  ;;  %v7004_v8 = vld [vmem:[#allocation18_spill] sm:$0xff] }
 0x46a   :  { %v1603_v53 = vadd.f32 %v1601_v38, %v1599_v31  ;;  %v1628_v10 = vmul.f32 %v1622_v28, %v1616_v43  ;;  %vm6992_vm9 = vmand %vm6944_vm6, %vm6922_vm11  ;;  %v1654_v40 = vsel %vm1650_vm10, %v1652_v49, 0.0  ;;  %v1633_v0 = vmul.f32 %v1627_v34, %v1617_v15 }
 0x46b   :  { %v1653_v37 = vsel %vm6992_vm9, %v1652_v49, 0.0  ;;  %v1631_v54 = vadd.f32 %v1629_v1, %v1604_v50  ;;  %v6993_v61 = vstv %s6991_s30  ;;  %vm6994_vm9 = vcmp.lt.s32.totalorder %v2324_v13, 94  ;;  %vm1681_vm4 = vmand %vm5344_vm3, %vm6588_vm13  ;;  %v5701_v1 = vpop.permute.xlu0 %1791 }
 0x46c   :  { %v1630_v38 = vadd.f32 %v1628_v10, %v1603_v53  ;;  %v1658_v20 = vsel %vm1650_vm10, %v6993_v61, 0.0  ;;  %v1648_v5 = vsel %vm6994_vm9, %v6969_v57, %v5382_v4  ;;  %vm6995_vm12 = vmmov %vm6994_vm9  ;;  %vm7000_vm10 = vcmp.ge.s32.totalorder %v6840_v62, 4294967293 }
 0x46d   :  { %v1646_v9 = vsel %vm6995_vm12, %v1639_v48, %v6970_v58  ;;  %vm6996_vm7 = vmmov %vm6994_vm9  ;;  %v1635_v3 = vadd.f32 %v1633_v0, %v1631_v54  ;;  %v6998_v58 = vld [vmem:[#allocation76_spill] sm:$0xff]  ;;  %vm6999_vm12 = vcmp.lt.s32.totalorder %v2324_v13, 83  ;;  %v1685_v28 = vsel %vm1681_vm4, %v1683_v42, 0.0  ;;  %v1701_v0 = vpop.permute.xlu1 %1700 }
 0x46e   :  { %v1647_v7 = vsel %vm6996_vm7, %v5382_v4, %v1639_v48  ;;  %v1634_v57 = vadd.f32 %v5473_v16, %v1630_v38  ;;  %v1660_v26 = vmul.f32 %v1654_v40, %v1646_v9  ;;  %v1707_v11 = vsel %vm6999_vm12, %v6998_v58, %v6997_v33  ;;  %vm5637_vm7 = vmand %vm7000_vm10, %vm364_vm1 }
 0x46f   :  { %v1659_v46 = vmul.f32 %v1653_v37, %v1647_v7  ;;  %v1873_v4 = vstv %s5549_s17  ;;  %vm7003_vm9 = vmand %vm6944_vm6, %vm6466_vm14  ;;  %vm7005_vm12 = vnez %v7004_v8  ;;  %v1664_v62 = vmul.f32 %v1658_v20, %v1648_v5  ;;  %v7017_v7 = vld [vmem:[#allocation102_spill] sm:$0xff] }
 0x470   :  { %v1684_v16 = vsel %vm7003_vm9, %v1683_v42, 0.0  ;;  %v1662_v31 = vadd.f32 %v1660_v26, %v1635_v3  ;;  %v1714_v12 = vstv %s5564_s18  ;;  %v7006_v29 = vstv %s4006_s14  ;;  %vm1712_vm1 = vmand %vm5637_vm7, %vm6859_vm2  ;;  %s5704_s14 = sld [smem:[#allocation6 + $0x2d]]  ;;  %v7018_v3 = vld [vmem:[#allocation80_spill] sm:$0xff]  ;;  %v7021_v26 = vld [vmem:[#allocation83_spill] sm:$0xff] }
 0x471   :  { %v1661_v36 = vadd.f32 %v1659_v46, %v1634_v57  ;;  %v1689_v49 = vsel %vm1681_vm4, %v7006_v29, 0.0  ;;  %vm7007_vm6 = vcmp.lt.s32.totalorder %v2324_v13, 93  ;;  %vm7011_vm3 = vmand %vm7005_vm12, %vm6922_vm11  ;;  %v1745_v38 = vstv %s5602_s3  ;;  %v7020_v46 = vld [vmem:[#allocation107_spill] sm:$0xff] }
 0x472   :  { %v1679_v41 = vsel %vm7007_vm6, %v6972_v35, %v5444_v17  ;;  %vm7008_vm10 = vmmov %vm7007_vm6  ;;  %v1666_v47 = vadd.f32 %v1664_v62, %v1662_v31  ;;  %v7010_v35 = vld [vmem:[#allocation90_spill] sm:$0xff]  ;;  %v1720_v54 = vsel %vm1712_vm1, %v7013_v56, 0.0  ;;  %v7025_v62 = vstv %s4808_s0  ;;  %s5773_s0 = sld [smem:[#allocation6 + $0x2f]] }
 0x473   :  { %v1677_v34 = vsel %vm7008_vm10, %v1670_v21, %v6973_v2  ;;  %vm7009_vm9 = vmmov %vm7007_vm6  ;;  %v1665_v59 = vadd.f32 %v1663_v55, %v1661_v36  ;;  %v1725_v53 = vmul.f32 %v7010_v35, %v1707_v11  ;;  %v1716_v55 = vsel %vm1712_vm1, %v1714_v12, 0.0 }
 0x474   :  { %v1678_v15 = vsel %vm7009_vm9, %v5444_v17, %v1670_v21  ;;  %v1691_v50 = vmul.f32 %v1685_v28, %v1677_v34  ;;  %v5687_v17 = vsel %vm7011_vm3, %v1873_v4, 0.0  ;;  %vm7012_vm4 = vmand %vm7005_vm12, %vm3304_vm5  ;;  %vm1799_vm6 = vcmp.lt.s32.totalorder %v2324_v13, 80 }
 0x475   :  { %v1690_v43 = vmul.f32 %v1684_v16, %v1678_v15  ;;  %v1715_v2 = vsel %vm7012_vm4, %v1714_v12, 0.0  ;;  %vm1830_vm10 = vcmp.lt.s32.totalorder %v2324_v13, 79  ;;  %v1695_v10 = vmul.f32 %v1689_v49, %v1679_v41  ;;  %vm1743_vm2 = vmand %vm5637_vm7, %vm6871_vm8  ;;  %v1732_v16 = vpop.permute.xlu1 %1731  ;;  %v1823_v12 = vpop.permute.xlu0 %1822  ;;  %v7029_v15 = vld [vmem:[#allocation82_spill] sm:$0xff] }
 0x476   :  { %v1693_v40 = vadd.f32 %v1691_v50, %v1666_v47  ;;  %vm7014_vm5 = vcmp.lt.s32.totalorder %v2324_v13, 83  ;;  %vm7019_vm1 = vcmp.lt.s32.totalorder %v2324_v13, 82  ;;  %vm7022_vm4 = vcmp.lt.s32.totalorder %v2324_v13, 81 }
 0x477   :  { %v1692_v37 = vadd.f32 %v1690_v43, %v1665_v59  ;;  %v1710_v48 = vsel %vm7014_vm5, %v6997_v33, %v5499_v39  ;;  %vm7015_vm9 = vmmov %vm7014_vm5  ;;  %v1738_v57 = vsel %vm7019_vm1, %v7018_v3, %v7017_v7  ;;  %v1747_v33 = vsel %vm1743_vm2, %v1745_v38, 0.0  ;;  %v7030_v59 = vld [vmem:[#allocation144_spill] sm:$0xff] }
 0x478   :  { %v1708_v42 = vsel %vm7015_vm9, %v1701_v0, %v6998_v58  ;;  %vm7016_vm3 = vmmov %vm7014_vm5  ;;  %v1697_v45 = vadd.f32 %v1695_v10, %v1693_v40  ;;  %vm7023_vm5 = vnez %v6403_v52  ;;  %v1776_v28 = vstv %s5656_s23 }
 0x479   :  { %v1709_v61 = vsel %vm7016_vm3, %v5499_v39, %v1701_v0  ;;  %v1696_v20 = vadd.f32 %v5547_v51, %v1692_v37  ;;  %v1722_v9 = vmul.f32 %v1716_v55, %v1708_v42  ;;  %v1769_v39 = vsel %vm7022_vm4, %v7021_v26, %v7020_v46  ;;  %vm7024_vm8 = vmand %vm7005_vm12, %vm7023_vm5  ;;  %v1763_v55 = vpop.permute.xlu1 %1762  ;;  %v7037_v42 = vld [vmem:[#allocation110_spill] sm:$0xff] }
 0x47a   :  { %v1721_v5 = vmul.f32 %v1715_v2, %v1709_v61  ;;  %v1746_v30 = vsel %vm7024_vm8, %v1745_v38, 0.0  ;;  %v1726_v51 = vmul.f32 %v1720_v54, %v1710_v48  ;;  %v1751_v36 = vsel %vm1743_vm2, %v7025_v62, 0.0  ;;  %vm7026_vm9 = vmmov %vm7019_vm1  ;;  %v7038_v61 = vld [vmem:[#allocation86_spill] sm:$0xff] }
 0x47b   :  { %v1724_v11 = vadd.f32 %v1722_v9, %v1697_v45  ;;  %v1741_v31 = vsel %vm7026_vm9, %v7017_v7, %v5561_v63  ;;  %vm7027_vm3 = vmmov %vm7019_vm1  ;;  %v1740_v21 = vsel %vm7019_vm1, %v5561_v63, %v1732_v16  ;;  %vm7028_vm4 = vnez %v6298_v24 }
 0x47c   :  { %v1723_v58 = vadd.f32 %v1721_v5, %v1696_v20  ;;  %v1739_v52 = vsel %vm7027_vm3, %v1732_v16, %v7018_v3  ;;  %vm1774_vm5 = vmand %vm5637_vm7, %vm7028_vm4  ;;  %v1752_v41 = vmul.f32 %v1746_v30, %v1740_v21  ;;  %v1756_v47 = vmul.f32 %v7029_v15, %v1738_v57  ;;  %v7039_v20 = vld [vmem:[#allocation122_spill] sm:$0xff]  ;;  %v1854_v57 = vpop.permute.xlu0 %1853 }
 0x47d   :  { %v1728_v29 = vadd.f32 %v1726_v51, %v1724_v11  ;;  %v1753_v34 = vmul.f32 %v1747_v33, %v1739_v52  ;;  %v1787_v43 = vmul.f32 %v7030_v59, %v1769_v39  ;;  %vm7031_vm2 = vnez %v6417_v14  ;;  %vm1805_vm4 = vmand %vm5637_vm7, %vm6968_vm15  ;;  %v1794_v39 = vpop.permute.xlu1 %1793  ;;  %v7046_v52 = vld [vmem:[#allocation20_spill] sm:$0xff] }
 0x47e   :  { %v1727_v49 = vadd.f32 %v1725_v53, %v1723_v58  ;;  %vm7032_vm8 = vmand %vm7005_vm12, %vm7031_vm2  ;;  %v1778_v50 = vsel %vm1774_vm5, %v1776_v28, 0.0  ;;  %v1757_v35 = vmul.f32 %v1751_v36, %v1741_v31  ;;  %v1807_v10 = vstv %s5704_s14  ;;  %v7045_v36 = vld [vmem:[#allocation111_spill] sm:$0xff] }
 0x47f   :  { %v1777_v63 = vsel %vm7032_vm8, %v1776_v28, 0.0  ;;  %v1755_v2 = vadd.f32 %v1753_v34, %v1728_v29  ;;  %v7033_v37 = vstv %s4829_s29  ;;  %vm7034_vm9 = vcmp.lt.s32.totalorder %v2324_v13, 81  ;;  %s5816_s29 = sld [smem:[#allocation6 + $0x30]] }
 0x480   :  { %v1754_v53 = vadd.f32 %v1752_v41, %v1727_v49  ;;  %v1782_v14 = vsel %vm1774_vm5, %v7033_v37, 0.0  ;;  %v1772_v40 = vsel %vm7034_vm9, %v7020_v46, %v5625_v44  ;;  %vm7035_vm3 = vmmov %vm7034_vm9  ;;  %vm1861_vm2 = vcmp.lt.s32.totalorder %v2324_v13, 78 }
 0x481   :  { %v1770_v0 = vsel %vm7035_vm3, %v1763_v55, %v7021_v26  ;;  %vm7036_vm1 = vmmov %vm7035_vm3  ;;  %v1759_v24 = vadd.f32 %v1757_v35, %v1755_v2  ;;  %v1800_v45 = vsel %vm1799_vm6, %v7038_v61, %v7037_v42  ;;  %vm7041_vm5 = vnez %v6286_v22  ;;  %v1885_v35 = vpop.permute.xlu0 %1884 }
 0x482   :  { %v1771_v38 = vsel %vm7036_vm1, %v5625_v44, %v1763_v55  ;;  %v1758_v56 = vadd.f32 %v1756_v47, %v1754_v53  ;;  %v1784_v48 = vmul.f32 %v1778_v50, %v1770_v0  ;;  %v7040_v44 = vld [vmem:[#allocation91_spill] sm:$0xff]  ;;  %vm7042_vm8 = vmand %vm7005_vm12, %vm7041_vm5  ;;  %v1809_v7 = vsel %vm1805_vm4, %v1807_v10, 0.0  ;;  %v7051_v0 = vld [vmem:[#allocation13_spill] sm:$0xff] }
 0x483   :  { %v1783_v54 = vmul.f32 %v1777_v63, %v1771_v38  ;;  %v1831_v5 = vsel %vm1830_vm10, %v7040_v44, %v7039_v20  ;;  %v1808_v9 = vsel %vm7042_vm8, %v1807_v10, 0.0  ;;  %v1788_v3 = vmul.f32 %v1782_v14, %v1772_v40  ;;  %vm1867_vm1 = vmand %vm5637_vm7, %vm6921_vm0  ;;  %v7052_v38 = vld [vmem:[#allocation101_spill] sm:$0xff] }
 0x484   :  { %v1786_v26 = vadd.f32 %v1784_v48, %v1759_v24  ;;  %v1838_v30 = vstv %s5742_s28  ;;  %v7043_v33 = vstv %s4835_s21  ;;  %v1803_v51 = vsel %vm1799_vm6, %v7037_v42, %v5701_v1  ;;  %s5851_s21 = sld [smem:[#allocation6 + $0x61]]  ;;  %vm1897_vm5 = vmand %vm7005_vm12, %vm6466_vm14 }
 0x485   :  { %v1785_v46 = vadd.f32 %v1783_v54, %v1758_v56  ;;  %v1813_v22 = vsel %vm1805_vm4, %v7043_v33, 0.0  ;;  %v1801_v58 = vsel %vm1799_vm6, %v1794_v39, %v7038_v61  ;;  %v1802_v11 = vsel %vm1799_vm6, %v5701_v1, %v1794_v39  ;;  %vm7050_vm4 = vmand %vm7005_vm12, %vm6922_vm11 }
 0x486   :  { %vm7044_vm9 = vnez %v6302_v27  ;;  %v1790_v32 = vadd.f32 %v1788_v3, %v1786_v26  ;;  %v1814_v28 = vmul.f32 %v1808_v9, %v1802_v11  ;;  %v1815_v62 = vmul.f32 %v1809_v7, %v1801_v58  ;;  %vm1898_vm11 = vmand %vm5637_vm7, %vm6588_vm13 }
 0x487   :  { %vm1836_vm15 = vmand %vm5637_vm7, %vm7044_vm9  ;;  %v1789_v16 = vadd.f32 %v1787_v43, %v1785_v46  ;;  %v1818_v31 = vmul.f32 %v7045_v36, %v1800_v45  ;;  %v1849_v21 = vmul.f32 %v7046_v52, %v1831_v5  ;;  %vm7047_vm3 = vnez %v6364_v6  ;;  %v1825_v6 = vpop.permute.xlu1 %1824 }
 0x488   :  { %vm7048_vm6 = vmand %vm7005_vm12, %vm7047_vm3  ;;  %v1840_v29 = vsel %vm1836_vm15, %v1838_v30, 0.0  ;;  %v1819_v49 = vmul.f32 %v1813_v22, %v1803_v51  ;;  %v1817_v34 = vadd.f32 %v1815_v62, %v1790_v32  ;;  %v1869_v15 = vstv %s5773_s0 }
 0x489   :  { %v1839_v1 = vsel %vm7048_vm6, %v1838_v30, 0.0  ;;  %v1816_v41 = vadd.f32 %v1814_v28, %v1789_v16  ;;  %v7049_v47 = vstv %s4837_s11  ;;  %v1834_v43 = vsel %vm1830_vm10, %v7039_v20, %v1823_v12  ;;  %s2270_s11 = smov [#allocation7]  }
 0x48a   :  { %v1844_v59 = vsel %vm1836_vm15, %v7049_v47, 0.0  ;;  %v1832_v63 = vsel %vm1830_vm10, %v1825_v6, %v7040_v44  ;;  %v1833_v50 = vsel %vm1830_vm10, %v1823_v12, %v1825_v6  ;;  %v1821_v53 = vadd.f32 %v1819_v49, %v1817_v34  ;;  %s1945_s10 = sshll.u32 %s2270_s11, 4  ;;  %s1946_s10 = int_to_ptr.vmem [resolvable:$true] %s1945_s10 }
 0x48b   :  { %v1820_v2 = vadd.f32 %v1818_v31, %v1816_v41  ;;  %v1845_v55 = vmul.f32 %v1839_v1, %v1833_v50  ;;  %v1846_v10 = vmul.f32 %v1840_v29, %v1832_v63  ;;  %v1875_v27 = vsel %vm1867_vm1, %v1873_v4, 0.0  ;;  %v1856_v23 = vpop.permute.xlu1 %1855  ;;  %s2183_s8 = scalar_lea.vmem %s1946_s10, 64  ;;  %p2188_p0 = scmp.lt.s32.totalorder %s1946_s10, %s1946_s10 }
 0x48c   :  { %v1870_v37 = vsel %vm7050_vm4, %v1869_v15, 0.0  ;;  %v1871_v12 = vsel %vm1867_vm1, %v1869_v15, 0.0  ;;  %vm1892_vm10 = vcmp.lt.s32.totalorder %v2324_v13, 77  ;;  %v1850_v4 = vmul.f32 %v1844_v59, %v1834_v43  ;;  %p2184_p13 = scmp.ne.s32.totalorder %s1946_s10, %s2183_s8  ;;  %p2189_p1 = scmp.lt.s32.totalorder %s2183_s8, %s2183_s8 }
 0x48d   :  { %v1847_v14 = vadd.f32 %v1845_v55, %v1820_v2  ;;  %v1848_v40 = vadd.f32 %v1846_v10, %v1821_v53  ;;  %v1900_v18 = vstv %s5816_s29  ;;  %v1862_v24 = vsel %vm1861_vm2, %v7052_v38, %v7051_v0 }
 0x48e   :  { %v1865_v56 = vsel %vm1861_vm2, %v7051_v0, %v1854_v57  ;;  %v1863_v54 = vsel %vm1861_vm2, %v1856_v23, %v7052_v38  ;;  %v1864_v48 = vsel %vm1861_vm2, %v1854_v57, %v1856_v23  ;;  %v1901_v44 = vsel %vm1897_vm5, %v1900_v18, 0.0  ;;  %v1889_v57 = vpop.permute.xlu0 %1888  ;;  %p2190_p2 = por %p2189_p1, %p2188_p0 }
 0x48f   :  { %v1852_v42 = vadd.f32 %v1850_v4, %v1848_v40  ;;  %v1851_v61 = vadd.f32 %v1849_v21, %v1847_v14  ;;  %v1876_v45 = vmul.f32 %v1870_v37, %v1864_v48  ;;  %v1877_v20 = vmul.f32 %v1871_v12, %v1863_v54  ;;  %v1887_v39 = vpop.permute.xlu1 %1886 }
 0x490   :  { %v1902_v5 = vsel %vm1898_vm11, %v1900_v18, 0.0  ;;  %v1904_v9 = vstv %s5851_s21  ;;  %v1880_v7 = vmul.f32 %v5687_v17, %v1862_v24  ;;  %v1881_v3 = vmul.f32 %v1875_v27, %v1865_v56  ;;  %p2191_p3 = pnand %p2190_p2, %p2184_p13 }
 0x491   :  { %v1878_v46 = vadd.f32 %v1876_v45, %v1851_v61  ;;  %v1879_v26 = vadd.f32 %v1877_v20, %v1852_v42  ;;  %v1894_v30 = vsel %vm1892_vm10, %v1887_v39, %v1889_v57  ;;  %v1895_v33 = vsel %vm1892_vm10, %v1885_v35, %v1887_v39 }
 0x492   :  { %v1907_v58 = vmul.f32 %v1901_v44, %v1895_v33  ;;  %v1908_v11 = vmul.f32 %v1902_v5, %v1894_v30  ;;  %v1905_v17 = vsel %vm1897_vm5, %v1904_v9, 0.0  ;;  %v1906_v32 = vsel %vm1898_vm11, %v1904_v9, 0.0 }
 0x493   :  { %v1883_v22 = vadd.f32 %v1881_v3, %v1879_v26  ;;  %v1882_v51 = vadd.f32 %v1880_v7, %v1878_v46  ;;  %v1891_v16 = vpop.permute.xlu1 %1890 }
 0x494   :  { %v1893_v28 = vsel %vm1892_vm10, %v1889_v57, %v1891_v16  ;;  %v1896_v62 = vsel %vm1892_vm10, %v1891_v16, %v1885_v35 }
 0x495   :  { %v1909_v36 = vadd.f32 %v1907_v58, %v1882_v51  ;;  %v1910_v31 = vadd.f32 %v1908_v11, %v1883_v22  ;;  %v1911_v8 = vmul.f32 %v1905_v17, %v1893_v28  ;;  %v1912_v52 = vmul.f32 %v1906_v32, %v1896_v62 }
 0x497   :  { %v1913_v60 = vadd.f32 %v1911_v8, %v1909_v36  ;;  %v1914_v21 = vadd.f32 %v1912_v52, %v1910_v31 }
 0x499   :  { %v2056_v1 = vmul.f32 -1.442695, %v1913_v60  ;;  %v2057_v29 = vmul.f32 -1.442695, %v1914_v21 }
 0x49b   :  { %2141 = vpow2.f32 %v2056_v1 }
 0x49c   :  { %2143 = vpow2.f32 %v2057_v29 }
 0x4a5   :  { %v2142_v25 = vpop.eup %2141 }
 0x4a6   :  { %v2144_v19 = vpop.eup %2143  ;;  %v1921_v49 = vadd.f32 1.0, %v2142_v25 }
 0x4a7   :  { %v1922_v41 = vadd.f32 1.0, %v2144_v19 }
 0x4a8   :  { %2145 = vrcp.f32 %v1921_v49 }
 0x4a9   :  { %2147 = vrcp.f32 %v1922_v41 }
 0x4b2   :  { %v2146_v13 = vpop.eup %2145 }
 0x4b3   :  { %v2148_v34 = vpop.eup %2147 }
 0x4b4   :  { %v1929_v6 = vcombine.low %v2146_v13, %v2148_v34 }
 0x4b6   :  { %2058 = vst.sshfl [vmem:[#allocation7] sm:$0x33 pattern:$0x76325410] %v1929_v6 }
 0x4b7   :  { %2194 = shalt.err (!%p2191_p3)
}
 0x4b8   :  { %s7053_s16 = sld [smem:[#allocation151_spill]] }
 0x4be   :  { %s2195_s19 = scalar_lea.hbm %s7053_s16, 64 }
 0x4bf   :  { %p2196_p4 = scmp.ne.s32.totalorder %s7053_s16, %s2195_s19  ;;  %p2199_p5 = scmp.lt.u32.totalorder %s2195_s19, %s7053_s16 }
 0x4c1   :  { %p2201_p6 = pnand %p2199_p5, %p2196_p4 }
 0x4c3   :  { %2204 = shalt.err (!%p2201_p6)
}
 0x4c4   :  { %1948 = dma.vmem_to_hbm [thread:$0]  %s1946_s10, 64, %s7053_s16, [#allocation4]  }
 0x4c5   :  { %2209 = dma.done.wait [#allocation4], 64  }
 0x4c6   :  { %2210 = vsyncadd [#allocation4], 4294967232 }
 0x4c7   :  { %1952 = vsyncpa [#allocation3], 1 }
 0x4c8   :  { %1953 = vsyncpa [#allocation4], 1 }
 0x4c9   :  { %1954 = vsyncpa [#allocation5], 1 }

</bundles_post_ra>
